<compile_context>
chip_gen: v6e
topology: v6e:2x2x1
jax: 0.10.0
libtpu: 0.0.40
codegen_flags: <defaults>
</compile_context>

<pallas_src>
import jax
import jax.numpy as jnp
from jax.experimental import pallas as pl

# Decoder stage-3 true sizes and lane-dense padded sizes.
DEC_C3 = 500        # gnn3_pool clusters
DEC_F3 = 20         # gnn3_embed output features
PAD_C = 512         # 500 -> 512 (lanes / sublanes)
PAD_F = 128         # 20  -> 128 (lanes)
LANE = 128


# ---------------------------------------------------------------------------
# In-kernel helpers (pure jnp, traced inside the fused Pallas kernel)
# ---------------------------------------------------------------------------
def _gcn2(x, adj, wa, ba, wb, bb):
    """Two stacked dense GCN layers, each fused with ReLU (one GNN module)."""
    h = jnp.dot(adj, x, preferred_element_type=jnp.float32)
    h = jnp.maximum(jnp.dot(h, wa, preferred_element_type=jnp.float32) + ba, 0.0)
    h = jnp.dot(adj, h, preferred_element_type=jnp.float32)
    return jnp.maximum(jnp.dot(h, wb, preferred_element_type=jnp.float32) + bb, 0.0)


def _diff_pool(x, adj, s_logits, n_valid=None):
    """dense_diff_pool hot path: softmax(s); s^T x; s^T adj s.

    If n_valid < s_logits.shape[-1], the trailing (padded) cluster columns are
    masked to -1e30 so they get exactly zero softmax weight (exact result).
    """
    if n_valid is not None and n_valid < s_logits.shape[-1]:
        col = jax.lax.broadcasted_iota(jnp.int32, s_logits.shape, 1)
        s_logits = jnp.where(col < n_valid, s_logits, -1e30)
    m = jnp.max(s_logits, axis=-1, keepdims=True)
    e = jnp.exp(s_logits - m)
    s = e / jnp.sum(e, axis=-1, keepdims=True)
    s_t = s.T                                                       # one transpose, reused
    x_new = jnp.dot(s_t, x, preferred_element_type=jnp.float32)     # (C, F)
    adj_new = jnp.dot(jnp.dot(s_t, adj, preferred_element_type=jnp.float32), s,
                      preferred_element_type=jnp.float32)           # (C, C)
    return x_new, adj_new


def _encode_one(x, adj, W):
    """DiffPoolEn forward for one batch item -> (1, 2) log-softmax."""
    s = _gcn2(x, adj, *W[0:4])           # gnn1_pool  -> (N, 5)
    h = _gcn2(x, adj, *W[4:8])           # gnn1_embed -> (N, 64)
    h, a = _diff_pool(h, adj, s)         # (5, 64), (5, 5)

    s = _gcn2(h, a, *W[8:12])            # gnn2_pool  -> (5, 2)
    h2 = _gcn2(h, a, *W[12:16])          # gnn2_embed -> (5, 64)
    h, a = _diff_pool(h2, a, s)          # (2, 64), (2, 2)

    h = _gcn2(h, a, *W[16:20])           # gnn3_embed -> (2, 64)

    lin1_w, lin1_b, lin2_w, lin2_b = W[20:24]
    m = jnp.mean(h, axis=0, keepdims=True)                                   # (1, 64)
    t = jnp.maximum(jnp.dot(m, lin1_w, preferred_element_type=jnp.float32) + lin1_b, 0.0)
    logits = jnp.dot(t, lin2_w, preferred_element_type=jnp.float32) + lin2_b  # (1, 2)
    lmax = jnp.max(logits, axis=-1, keepdims=True)
    lse = jnp.log(jnp.sum(jnp.exp(logits - lmax), axis=-1, keepdims=True))
    return logits - lmax - lse


# ---------------------------------------------------------------------------
# Fused kernel factory (offsets are static Python metadata closed over)
# ---------------------------------------------------------------------------
def _make_lgvae_kernel(batch, enc_off, dec_off, wide_off):
    def kernel(x_ref, adj_ref, eps_ref, encw_ref, decw_ref, widew_ref,
               encout_ref, xout_ref, adjout_ref):
        def take(ref, ent):
            r0, nr, nc = ent                       # static ints -> free ref slice
            return ref[r0:r0 + nr, 0:nc]

        # ---- encoder (both batch items, unrolled; weights carved once) ----
        encW = [take(encw_ref, e) for e in enc_off]        # 24 tensors
        ls0 = None
        for b in range(batch):
            ls = _encode_one(x_ref[b], adj_ref[b], encW)   # (1, 2)
            encout_ref[b:b + 1, :] = ls
            if b == 0:
                ls0 = ls

        # ---- reparameterization (faithful to the torch reference) ----
        # mu / sigma are exp(log_softmax) = softmax probabilities of item 0,
        # and the affine transform is applied twice (z0 = mu + sigma*eps,
        # then z = sigma*z0 + mu) exactly as in LGVAE.forward.
        probs = jnp.exp(ls0)                               # (1, 2)
        mu = probs[0:1, 0:1]
        sigma = probs[0:1, 1:2]
        eps = eps_ref[0]                                   # (1, 64) std normal
        z0 = mu + sigma * eps                              # torch.normal(mu, sigma, (1,1,64))
        z = sigma * z0 + mu                                # (1, 64)

        # ---- decoder (B = 1), lane-dense padded outputs ----
        decW = [take(decw_ref, e) for e in dec_off]        # 22 tensors
        wW = [take(widew_ref, e) for e in wide_off]        # gnn3_pool layer 2 (64,512),(1,512)
        adj_d = jnp.ones((1, 1), jnp.float32)              # np.array([1.]).view(1,1,1)

        s = _gcn2(z, adj_d, *decW[0:4])                    # gnn1_pool  -> (1, 2)
        h = _gcn2(z, adj_d, *decW[4:8])                    # gnn1_embed -> (1, 64)
        h, a = _diff_pool(h, adj_d, s)                     # (2, 64), (2, 2)

        s = _gcn2(h, a, *decW[8:12])                       # gnn2_pool  -> (2, 5)
        h2 = _gcn2(h, a, *decW[12:16])                     # gnn2_embed -> (2, 64)
        h, a = _diff_pool(h2, a, s)                        # (5, 64), (5, 5)

        s = _gcn2(h, a, decW[16], decW[17], wW[0], wW[1])  # gnn3_pool  -> (5, 512)
        h3 = _gcn2(h, a, *decW[18:22])                     # gnn3_embed -> (5, 128), cols 20.. = 0
        xo, ao = _diff_pool(h3, a, s, n_valid=DEC_C3)      # (512, 128), (512, 512)

        xout_ref[0] = xo
        adjout_ref[0] = ao

    return kernel


# ---------------------------------------------------------------------------
# Weight slab packing (trace/build time, outside the kernel)
# ---------------------------------------------------------------------------
def _pack_slab(arrays, lane_width):
    """Pack 2-D f32 arrays into one (R, lane_width) slab + static offsets.

    Each array is zero-padded to an 8-row block so every carved sub-view
    inside the kernel starts on an (8, 128) tile boundary.
    """
    blocks, offsets, r = [], [], 0
    for a in arrays:
        a = jnp.asarray(a, jnp.float32)
        nr, nc = a.shape
        nr_pad = ((nr + 7) // 8) * 8
        blocks.append(jnp.pad(a, ((0, nr_pad - nr), (0, lane_width - nc))))
        offsets.append((r, nr, nc))
        r += nr_pad
    return jnp.concatenate(blocks, axis=0), tuple(offsets)


def _gnn_list(g):
    return [g[0]["w"], g[0]["b"], g[1]["w"], g[1]["b"]]


def _enc_weight_list(p):
    return (_gnn_list(p["gnn1_pool"]) + _gnn_list(p["gnn1_embed"]) +
            _gnn_list(p["gnn2_pool"]) + _gnn_list(p["gnn2_embed"]) +
            _gnn_list(p["gnn3_embed"]) +
            [p["lin1_w"], p["lin1_b"], p["lin2_w"], p["lin2_b"]])


def _dec_narrow_list(p):
    w = (_gnn_list(p["gnn1_pool"]) + _gnn_list(p["gnn1_embed"]) +
         _gnn_list(p["gnn2_pool"]) + _gnn_list(p["gnn2_embed"]) +
         [p["gnn3_pool"][0]["w"], p["gnn3_pool"][0]["b"]] +
         _gnn_list(p["gnn3_embed"]))
    # Lane-dense zero padding of gnn3_embed layer 2 (exact: relu(0) = 0).
    w[20] = jnp.pad(w[20], ((0, 0), (0, PAD_F - w[20].shape[1])))   # (64, 20) -> (64, 128)
    w[21] = jnp.pad(w[21], ((0, 0), (0, PAD_F - w[21].shape[1])))   # (1, 20)  -> (1, 128)
    return w


def _dec_wide_list(p):
    w2 = p["gnn3_pool"][1]["w"]      # (64, 500)
    b2 = p["gnn3_pool"][1]["b"]      # (1, 500)
    return [jnp.pad(w2, ((0, 0), (0, PAD_C - w2.shape[1]))),        # (64, 512)
            jnp.pad(b2, ((0, 0), (0, PAD_C - b2.shape[1])))]        # (1, 512)


# ---------------------------------------------------------------------------
# Build the fused forward (one pallas_call, no grid)
# ---------------------------------------------------------------------------
def build_lgvae(enc_params, dec_params, batch, n_nodes, c_in):
    encw, enc_off = _pack_slab(_enc_weight_list(enc_params), LANE)
    decw, dec_off = _pack_slab(_dec_narrow_list(dec_params), LANE)
    widew, wide_off = _pack_slab(_dec_wide_list(dec_params), PAD_C)

    kernel = _make_lgvae_kernel(batch, enc_off, dec_off, wide_off)
    call = pl.pallas_call(
        kernel,
        out_shape=(jax.ShapeDtypeStruct((batch, 2), jnp.float32),       # encoder log-softmax
                   jax.ShapeDtypeStruct((1, PAD_C, PAD_F), jnp.float32),  # x_out (padded)
                   jax.ShapeDtypeStruct((1, PAD_C, PAD_C), jnp.float32)),  # adj_out (padded)
    )

    @jax.jit
    def forward(slabs, x, adj, eps):
        encw_, decw_, widew_ = slabs
        return call(x, adj, eps, encw_, decw_, widew_)

    return forward, (encw, decw, widew)


# ---------------------------------------------------------------------------
# Parameters (deterministic synthetic init, shapes from the module __init__)
# ---------------------------------------------------------------------------
def init_gcn_params(key, cin, cout):
    w = jax.random.normal(key, (cin, cout), jnp.float32) * 0.1
    b = jnp.zeros((1, cout), jnp.float32)
    return {"w": w, "b": b}


def init_gnn_params(key, cin, chid, cout):
    k1, k2 = jax.random.split(key)
    return (init_gcn_params(k1, cin, chid), init_gcn_params(k2, chid, cout))


def init_encoder(key):
    ks = jax.random.split(key, 7)
    return {
        "gnn1_pool": init_gnn_params(ks[0], 20, 64, 5),
        "gnn1_embed": init_gnn_params(ks[1], 20, 64, 64),
        "gnn2_pool": init_gnn_params(ks[2], 64, 64, 2),
        "gnn2_embed": init_gnn_params(ks[3], 64, 64, 64),
        "gnn3_embed": init_gnn_params(ks[4], 64, 64, 64),
        "lin1_w": jax.random.normal(ks[5], (64, 64), jnp.float32) * 0.1,
        "lin1_b": jnp.zeros((1, 64), jnp.float32),
        "lin2_w": jax.random.normal(ks[6], (64, 2), jnp.float32) * 0.1,
        "lin2_b": jnp.zeros((1, 2), jnp.float32),
    }


def init_decoder(key):
    ks = jax.random.split(key, 6)
    return {
        "gnn1_pool": init_gnn_params(ks[0], 64, 64, 2),
        "gnn1_embed": init_gnn_params(ks[1], 64, 64, 64),
        "gnn2_pool": init_gnn_params(ks[2], 64, 64, 5),
        "gnn2_embed": init_gnn_params(ks[3], 64, 64, 64),
        "gnn3_pool": init_gnn_params(ks[4], 64, 64, DEC_C3),
        "gnn3_embed": init_gnn_params(ks[5], 64, 64, DEC_F3),
    }


# ---------------------------------------------------------------------------
if __name__ == "__main__":
    key = jax.random.PRNGKey(0)
    kp, kx, ka, ke = jax.random.split(key, 4)
    enc_p = init_encoder(jax.random.fold_in(kp, 0))
    dec_p = init_decoder(jax.random.fold_in(kp, 1))

    B, N, C_IN = 2, 8, 20                          # encoder expects 20 input channels
    x = jax.random.normal(kx, (B, N, C_IN), jnp.float32)
    a = (jax.random.uniform(ka, (B, N, N)) > 0.5).astype(jnp.float32)
    adj = jnp.maximum(a, jnp.swapaxes(a, 1, 2))    # symmetric 0/1 adjacency
    eps = jax.random.normal(ke, (1, 1, 64), jnp.float32)   # pre-sampled N(0,1)

    forward, slabs = build_lgvae(enc_p, dec_p, B, N, C_IN)
    enc_ls, x_out, adj_out = forward(slabs, x, adj, eps)
    jax.block_until_ready((enc_ls, x_out, adj_out))

    assert enc_ls.shape == (B, 2), enc_ls.shape
    assert x_out.shape == (1, PAD_C, PAD_F), x_out.shape
    assert adj_out.shape == (1, PAD_C, PAD_C), adj_out.shape

    # Validation only (outside the hot path): valid regions are the first
    # (500, 20) / (500, 500) entries; padded lanes/sublanes are exact zeros.
    xv = x_out[:, :DEC_C3, :DEC_F3]
    av = adj_out[:, :DEC_C3, :DEC_C3]
    assert bool(jnp.all(jnp.isfinite(enc_ls)))
    assert bool(jnp.all(jnp.isfinite(xv))) and bool(jnp.all(jnp.isfinite(av)))
    assert bool(jnp.allclose(jnp.sum(jnp.exp(enc_ls), axis=-1), 1.0, atol=1e-5))
    print("KERNEL_OK")
</pallas_src>

<mosaic_0001>
module attributes {stable_mosaic.version = 11 : i64} {
  func.func @kernel(%arg0: memref<2x8x20xf32, #tpu.memory_space<vmem>>, %arg1: memref<2x8x8xf32, #tpu.memory_space<vmem>>, %arg2: memref<1x1x64xf32, #tpu.memory_space<vmem>>, %arg3: memref<784x128xf32, #tpu.memory_space<vmem>>, %arg4: memref<792x128xf32, #tpu.memory_space<vmem>>, %arg5: memref<72x512xf32, #tpu.memory_space<vmem>>, %arg6: memref<2x2xf32, #tpu.memory_space<vmem>>, %arg7: memref<1x512x128xf32, #tpu.memory_space<vmem>>, %arg8: memref<1x512x512xf32, #tpu.memory_space<vmem>>) attributes {dimension_semantics = [], scalar_prefetch = 0 : i64, scratch_operands = 0 : i64, tpu.core_type = #tpu.core_type<tc>} {
    %c0 = arith.constant 0 : index
    %c0_0 = arith.constant 0 : index
    %0 = vector.load %arg3[%c0, %c0_0] : memref<784x128xf32, #tpu.memory_space<vmem>>, vector<20x64xf32>
    %c24 = arith.constant 24 : index
    %c0_1 = arith.constant 0 : index
    %1 = vector.load %arg3[%c24, %c0_1] : memref<784x128xf32, #tpu.memory_space<vmem>>, vector<1x64xf32>
    %c32 = arith.constant 32 : index
    %c0_2 = arith.constant 0 : index
    %2 = vector.load %arg3[%c32, %c0_2] : memref<784x128xf32, #tpu.memory_space<vmem>>, vector<64x5xf32>
    %c96 = arith.constant 96 : index
    %c0_3 = arith.constant 0 : index
    %3 = vector.load %arg3[%c96, %c0_3] : memref<784x128xf32, #tpu.memory_space<vmem>>, vector<1x5xf32>
    %c104 = arith.constant 104 : index
    %c0_4 = arith.constant 0 : index
    %4 = vector.load %arg3[%c104, %c0_4] : memref<784x128xf32, #tpu.memory_space<vmem>>, vector<20x64xf32>
    %c128 = arith.constant 128 : index
    %c0_5 = arith.constant 0 : index
    %5 = vector.load %arg3[%c128, %c0_5] : memref<784x128xf32, #tpu.memory_space<vmem>>, vector<1x64xf32>
    %c136 = arith.constant 136 : index
    %c0_6 = arith.constant 0 : index
    %6 = vector.load %arg3[%c136, %c0_6] : memref<784x128xf32, #tpu.memory_space<vmem>>, vector<64x64xf32>
    %c200 = arith.constant 200 : index
    %c0_7 = arith.constant 0 : index
    %7 = vector.load %arg3[%c200, %c0_7] : memref<784x128xf32, #tpu.memory_space<vmem>>, vector<1x64xf32>
    %c208 = arith.constant 208 : index
    %c0_8 = arith.constant 0 : index
    %8 = vector.load %arg3[%c208, %c0_8] : memref<784x128xf32, #tpu.memory_space<vmem>>, vector<64x64xf32>
    %c272 = arith.constant 272 : index
    %c0_9 = arith.constant 0 : index
    %9 = vector.load %arg3[%c272, %c0_9] : memref<784x128xf32, #tpu.memory_space<vmem>>, vector<1x64xf32>
    %c280 = arith.constant 280 : index
    %c0_10 = arith.constant 0 : index
    %10 = vector.load %arg3[%c280, %c0_10] : memref<784x128xf32, #tpu.memory_space<vmem>>, vector<64x2xf32>
    %c344 = arith.constant 344 : index
    %c0_11 = arith.constant 0 : index
    %11 = vector.load %arg3[%c344, %c0_11] : memref<784x128xf32, #tpu.memory_space<vmem>>, vector<1x2xf32>
    %c352 = arith.constant 352 : index
    %c0_12 = arith.constant 0 : index
    %12 = vector.load %arg3[%c352, %c0_12] : memref<784x128xf32, #tpu.memory_space<vmem>>, vector<64x64xf32>
    %c416 = arith.constant 416 : index
    %c0_13 = arith.constant 0 : index
    %13 = vector.load %arg3[%c416, %c0_13] : memref<784x128xf32, #tpu.memory_space<vmem>>, vector<1x64xf32>
    %c424 = arith.constant 424 : index
    %c0_14 = arith.constant 0 : index
    %14 = vector.load %arg3[%c424, %c0_14] : memref<784x128xf32, #tpu.memory_space<vmem>>, vector<64x64xf32>
    %c488 = arith.constant 488 : index
    %c0_15 = arith.constant 0 : index
    %15 = vector.load %arg3[%c488, %c0_15] : memref<784x128xf32, #tpu.memory_space<vmem>>, vector<1x64xf32>
    %c496 = arith.constant 496 : index
    %c0_16 = arith.constant 0 : index
    %16 = vector.load %arg3[%c496, %c0_16] : memref<784x128xf32, #tpu.memory_space<vmem>>, vector<64x64xf32>
    %c560 = arith.constant 560 : index
    %c0_17 = arith.constant 0 : index
    %17 = vector.load %arg3[%c560, %c0_17] : memref<784x128xf32, #tpu.memory_space<vmem>>, vector<1x64xf32>
    %c568 = arith.constant 568 : index
    %c0_18 = arith.constant 0 : index
    %18 = vector.load %arg3[%c568, %c0_18] : memref<784x128xf32, #tpu.memory_space<vmem>>, vector<64x64xf32>
    %c632 = arith.constant 632 : index
    %c0_19 = arith.constant 0 : index
    %19 = vector.load %arg3[%c632, %c0_19] : memref<784x128xf32, #tpu.memory_space<vmem>>, vector<1x64xf32>
    %c640 = arith.constant 640 : index
    %c0_20 = arith.constant 0 : index
    %20 = vector.load %arg3[%c640, %c0_20] : memref<784x128xf32, #tpu.memory_space<vmem>>, vector<64x64xf32>
    %c704 = arith.constant 704 : index
    %c0_21 = arith.constant 0 : index
    %21 = vector.load %arg3[%c704, %c0_21] : memref<784x128xf32, #tpu.memory_space<vmem>>, vector<1x64xf32>
    %c712 = arith.constant 712 : index
    %c0_22 = arith.constant 0 : index
    %22 = vector.load %arg3[%c712, %c0_22] : memref<784x128xf32, #tpu.memory_space<vmem>>, vector<64x2xf32>
    %c776 = arith.constant 776 : index
    %c0_23 = arith.constant 0 : index
    %23 = vector.load %arg3[%c776, %c0_23] : memref<784x128xf32, #tpu.memory_space<vmem>>, vector<1x2xf32>
    %c0_24 = arith.constant 0 : index
    %c0_25 = arith.constant 0 : index
    %c0_26 = arith.constant 0 : index
    %24 = vector.load %arg0[%c0_24, %c0_25, %c0_26] : memref<2x8x20xf32, #tpu.memory_space<vmem>>, vector<1x8x20xf32>
    %25 = vector.shape_cast %24 : vector<1x8x20xf32> to vector<8x20xf32>
    %c0_27 = arith.constant 0 : index
    %c0_28 = arith.constant 0 : index
    %c0_29 = arith.constant 0 : index
    %26 = vector.load %arg1[%c0_27, %c0_28, %c0_29] : memref<2x8x8xf32, #tpu.memory_space<vmem>>, vector<1x8x8xf32>
    %27 = vector.shape_cast %26 : vector<1x8x8xf32> to vector<8x8xf32>
    %cst = arith.constant dense<0.000000e+00> : vector<8x20xf32>
    %28 = tpu.matmul %27, %25, %cst {dimension_numbers = #tpu.dot_dimension_numbers<[1], [0], [0], [1], [0, 0, 1, 1], [], []>} : vector<8x8xf32>, vector<8x20xf32>, vector<8x20xf32> -> vector<8x20xf32>
    %cst_30 = arith.constant dense<0.000000e+00> : vector<8x64xf32>
    %29 = tpu.matmul %28, %0, %cst_30 {dimension_numbers = #tpu.dot_dimension_numbers<[1], [0], [0], [1], [0, 0, 1, 1], [], []>} : vector<8x20xf32>, vector<20x64xf32>, vector<8x64xf32> -> vector<8x64xf32>
    %30 = vector.broadcast %1 : vector<1x64xf32> to vector<8x64xf32>
    %31 = arith.addf %29, %30 : vector<8x64xf32>
    %cst_31 = arith.constant 0.000000e+00 : f32
    %32 = vector.broadcast %cst_31 : f32 to vector<8x64xf32>
    %33 = arith.maximumf %31, %32 : vector<8x64xf32>
    %cst_32 = arith.constant dense<0.000000e+00> : vector<8x64xf32>
    %34 = tpu.matmul %27, %33, %cst_32 {dimension_numbers = #tpu.dot_dimension_numbers<[1], [0], [0], [1], [0, 0, 1, 1], [], []>} : vector<8x8xf32>, vector<8x64xf32>, vector<8x64xf32> -> vector<8x64xf32>
    %cst_33 = arith.constant dense<0.000000e+00> : vector<8x5xf32>
    %35 = tpu.matmul %34, %2, %cst_33 {dimension_numbers = #tpu.dot_dimension_numbers<[1], [0], [0], [1], [0, 0, 1, 1], [], []>} : vector<8x64xf32>, vector<64x5xf32>, vector<8x5xf32> -> vector<8x5xf32>
    %36 = vector.broadcast %3 : vector<1x5xf32> to vector<8x5xf32>
    %37 = arith.addf %35, %36 : vector<8x5xf32>
    %cst_34 = arith.constant 0.000000e+00 : f32
    %38 = vector.broadcast %cst_34 : f32 to vector<8x5xf32>
    %39 = arith.maximumf %37, %38 : vector<8x5xf32>
    %cst_35 = arith.constant dense<0.000000e+00> : vector<8x20xf32>
    %40 = tpu.matmul %27, %25, %cst_35 {dimension_numbers = #tpu.dot_dimension_numbers<[1], [0], [0], [1], [0, 0, 1, 1], [], []>} : vector<8x8xf32>, vector<8x20xf32>, vector<8x20xf32> -> vector<8x20xf32>
    %cst_36 = arith.constant dense<0.000000e+00> : vector<8x64xf32>
    %41 = tpu.matmul %40, %4, %cst_36 {dimension_numbers = #tpu.dot_dimension_numbers<[1], [0], [0], [1], [0, 0, 1, 1], [], []>} : vector<8x20xf32>, vector<20x64xf32>, vector<8x64xf32> -> vector<8x64xf32>
    %42 = vector.broadcast %5 : vector<1x64xf32> to vector<8x64xf32>
    %43 = arith.addf %41, %42 : vector<8x64xf32>
    %cst_37 = arith.constant 0.000000e+00 : f32
    %44 = vector.broadcast %cst_37 : f32 to vector<8x64xf32>
    %45 = arith.maximumf %43, %44 : vector<8x64xf32>
    %cst_38 = arith.constant dense<0.000000e+00> : vector<8x64xf32>
    %46 = tpu.matmul %27, %45, %cst_38 {dimension_numbers = #tpu.dot_dimension_numbers<[1], [0], [0], [1], [0, 0, 1, 1], [], []>} : vector<8x8xf32>, vector<8x64xf32>, vector<8x64xf32> -> vector<8x64xf32>
    %cst_39 = arith.constant dense<0.000000e+00> : vector<8x64xf32>
    %47 = tpu.matmul %46, %6, %cst_39 {dimension_numbers = #tpu.dot_dimension_numbers<[1], [0], [0], [1], [0, 0, 1, 1], [], []>} : vector<8x64xf32>, vector<64x64xf32>, vector<8x64xf32> -> vector<8x64xf32>
    %48 = vector.broadcast %7 : vector<1x64xf32> to vector<8x64xf32>
    %49 = arith.addf %47, %48 : vector<8x64xf32>
    %cst_40 = arith.constant 0.000000e+00 : f32
    %50 = vector.broadcast %cst_40 : f32 to vector<8x64xf32>
    %51 = arith.maximumf %49, %50 : vector<8x64xf32>
    %cst_41 = arith.constant dense<0xFF800000> : vector<8xf32>
    %52 = vector.multi_reduction <maximumf>, %39, %cst_41 [1] : vector<8x5xf32> to vector<8xf32>
    %53 = vector.shape_cast %52 : vector<8xf32> to vector<8x1xf32>
    %54 = vector.broadcast %53 : vector<8x1xf32> to vector<8x5xf32>
    %55 = arith.subf %39, %54 : vector<8x5xf32>
    %56 = math.exp %55 : vector<8x5xf32>
    %cst_42 = arith.constant dense<0.000000e+00> : vector<8xf32>
    %57 = vector.multi_reduction <add>, %56, %cst_42 [1] : vector<8x5xf32> to vector<8xf32>
    %58 = vector.shape_cast %57 : vector<8xf32> to vector<8x1xf32>
    %59 = vector.broadcast %58 : vector<8x1xf32> to vector<8x5xf32>
    %60 = arith.divf %56, %59 : vector<8x5xf32>
    %61 = tpu.transpose %60, [1, 0] : vector<8x5xf32> -> vector<5x8xf32>
    %cst_43 = arith.constant dense<0.000000e+00> : vector<5x64xf32>
    %62 = tpu.matmul %61, %51, %cst_43 {dimension_numbers = #tpu.dot_dimension_numbers<[1], [0], [0], [1], [0, 0, 1, 1], [], []>} : vector<5x8xf32>, vector<8x64xf32>, vector<5x64xf32> -> vector<5x64xf32>
    %cst_44 = arith.constant dense<0.000000e+00> : vector<5x8xf32>
    %63 = tpu.matmul %61, %27, %cst_44 {dimension_numbers = #tpu.dot_dimension_numbers<[1], [0], [0], [1], [0, 0, 1, 1], [], []>} : vector<5x8xf32>, vector<8x8xf32>, vector<5x8xf32> -> vector<5x8xf32>
    %cst_45 = arith.constant dense<0.000000e+00> : vector<5x5xf32>
    %64 = tpu.matmul %63, %60, %cst_45 {dimension_numbers = #tpu.dot_dimension_numbers<[1], [0], [0], [1], [0, 0, 1, 1], [], []>} : vector<5x8xf32>, vector<8x5xf32>, vector<5x5xf32> -> vector<5x5xf32>
    %cst_46 = arith.constant dense<0.000000e+00> : vector<5x64xf32>
    %65 = tpu.matmul %64, %62, %cst_46 {dimension_numbers = #tpu.dot_dimension_numbers<[1], [0], [0], [1], [0, 0, 1, 1], [], []>} : vector<5x5xf32>, vector<5x64xf32>, vector<5x64xf32> -> vector<5x64xf32>
    %cst_47 = arith.constant dense<0.000000e+00> : vector<5x64xf32>
    %66 = tpu.matmul %65, %8, %cst_47 {dimension_numbers = #tpu.dot_dimension_numbers<[1], [0], [0], [1], [0, 0, 1, 1], [], []>} : vector<5x64xf32>, vector<64x64xf32>, vector<5x64xf32> -> vector<5x64xf32>
    %67 = vector.broadcast %9 : vector<1x64xf32> to vector<5x64xf32>
    %68 = arith.addf %66, %67 : vector<5x64xf32>
    %cst_48 = arith.constant 0.000000e+00 : f32
    %69 = vector.broadcast %cst_48 : f32 to vector<5x64xf32>
    %70 = arith.maximumf %68, %69 : vector<5x64xf32>
    %cst_49 = arith.constant dense<0.000000e+00> : vector<5x64xf32>
    %71 = tpu.matmul %64, %70, %cst_49 {dimension_numbers = #tpu.dot_dimension_numbers<[1], [0], [0], [1], [0, 0, 1, 1], [], []>} : vector<5x5xf32>, vector<5x64xf32>, vector<5x64xf32> -> vector<5x64xf32>
    %cst_50 = arith.constant dense<0.000000e+00> : vector<5x2xf32>
    %72 = tpu.matmul %71, %10, %cst_50 {dimension_numbers = #tpu.dot_dimension_numbers<[1], [0], [0], [1], [0, 0, 1, 1], [], []>} : vector<5x64xf32>, vector<64x2xf32>, vector<5x2xf32> -> vector<5x2xf32>
    %73 = vector.broadcast %11 : vector<1x2xf32> to vector<5x2xf32>
    %74 = arith.addf %72, %73 : vector<5x2xf32>
    %cst_51 = arith.constant 0.000000e+00 : f32
    %75 = vector.broadcast %cst_51 : f32 to vector<5x2xf32>
    %76 = arith.maximumf %74, %75 : vector<5x2xf32>
    %cst_52 = arith.constant dense<0.000000e+00> : vector<5x64xf32>
    %77 = tpu.matmul %64, %62, %cst_52 {dimension_numbers = #tpu.dot_dimension_numbers<[1], [0], [0], [1], [0, 0, 1, 1], [], []>} : vector<5x5xf32>, vector<5x64xf32>, vector<5x64xf32> -> vector<5x64xf32>
    %cst_53 = arith.constant dense<0.000000e+00> : vector<5x64xf32>
    %78 = tpu.matmul %77, %12, %cst_53 {dimension_numbers = #tpu.dot_dimension_numbers<[1], [0], [0], [1], [0, 0, 1, 1], [], []>} : vector<5x64xf32>, vector<64x64xf32>, vector<5x64xf32> -> vector<5x64xf32>
    %79 = vector.broadcast %13 : vector<1x64xf32> to vector<5x64xf32>
    %80 = arith.addf %78, %79 : vector<5x64xf32>
    %cst_54 = arith.constant 0.000000e+00 : f32
    %81 = vector.broadcast %cst_54 : f32 to vector<5x64xf32>
    %82 = arith.maximumf %80, %81 : vector<5x64xf32>
    %cst_55 = arith.constant dense<0.000000e+00> : vector<5x64xf32>
    %83 = tpu.matmul %64, %82, %cst_55 {dimension_numbers = #tpu.dot_dimension_numbers<[1], [0], [0], [1], [0, 0, 1, 1], [], []>} : vector<5x5xf32>, vector<5x64xf32>, vector<5x64xf32> -> vector<5x64xf32>
    %cst_56 = arith.constant dense<0.000000e+00> : vector<5x64xf32>
    %84 = tpu.matmul %83, %14, %cst_56 {dimension_numbers = #tpu.dot_dimension_numbers<[1], [0], [0], [1], [0, 0, 1, 1], [], []>} : vector<5x64xf32>, vector<64x64xf32>, vector<5x64xf32> -> vector<5x64xf32>
    %85 = vector.broadcast %15 : vector<1x64xf32> to vector<5x64xf32>
    %86 = arith.addf %84, %85 : vector<5x64xf32>
    %cst_57 = arith.constant 0.000000e+00 : f32
    %87 = vector.broadcast %cst_57 : f32 to vector<5x64xf32>
    %88 = arith.maximumf %86, %87 : vector<5x64xf32>
    %cst_58 = arith.constant dense<0xFF800000> : vector<5xf32>
    %89 = vector.multi_reduction <maximumf>, %76, %cst_58 [1] : vector<5x2xf32> to vector<5xf32>
    %90 = vector.shape_cast %89 : vector<5xf32> to vector<5x1xf32>
    %91 = vector.broadcast %90 : vector<5x1xf32> to vector<5x2xf32>
    %92 = arith.subf %76, %91 : vector<5x2xf32>
    %93 = math.exp %92 : vector<5x2xf32>
    %cst_59 = arith.constant dense<0.000000e+00> : vector<5xf32>
    %94 = vector.multi_reduction <add>, %93, %cst_59 [1] : vector<5x2xf32> to vector<5xf32>
    %95 = vector.shape_cast %94 : vector<5xf32> to vector<5x1xf32>
    %96 = vector.broadcast %95 : vector<5x1xf32> to vector<5x2xf32>
    %97 = arith.divf %93, %96 : vector<5x2xf32>
    %98 = tpu.transpose %97, [1, 0] : vector<5x2xf32> -> vector<2x5xf32>
    %cst_60 = arith.constant dense<0.000000e+00> : vector<2x64xf32>
    %99 = tpu.matmul %98, %88, %cst_60 {dimension_numbers = #tpu.dot_dimension_numbers<[1], [0], [0], [1], [0, 0, 1, 1], [], []>} : vector<2x5xf32>, vector<5x64xf32>, vector<2x64xf32> -> vector<2x64xf32>
    %cst_61 = arith.constant dense<0.000000e+00> : vector<2x5xf32>
    %100 = tpu.matmul %98, %64, %cst_61 {dimension_numbers = #tpu.dot_dimension_numbers<[1], [0], [0], [1], [0, 0, 1, 1], [], []>} : vector<2x5xf32>, vector<5x5xf32>, vector<2x5xf32> -> vector<2x5xf32>
    %cst_62 = arith.constant dense<0.000000e+00> : vector<2x2xf32>
    %101 = tpu.matmul %100, %97, %cst_62 {dimension_numbers = #tpu.dot_dimension_numbers<[1], [0], [0], [1], [0, 0, 1, 1], [], []>} : vector<2x5xf32>, vector<5x2xf32>, vector<2x2xf32> -> vector<2x2xf32>
    %cst_63 = arith.constant dense<0.000000e+00> : vector<2x64xf32>
    %102 = tpu.matmul %101, %99, %cst_63 {dimension_numbers = #tpu.dot_dimension_numbers<[1], [0], [0], [1], [0, 0, 1, 1], [], []>} : vector<2x2xf32>, vector<2x64xf32>, vector<2x64xf32> -> vector<2x64xf32>
    %cst_64 = arith.constant dense<0.000000e+00> : vector<2x64xf32>
    %103 = tpu.matmul %102, %16, %cst_64 {dimension_numbers = #tpu.dot_dimension_numbers<[1], [0], [0], [1], [0, 0, 1, 1], [], []>} : vector<2x64xf32>, vector<64x64xf32>, vector<2x64xf32> -> vector<2x64xf32>
    %104 = vector.broadcast %17 : vector<1x64xf32> to vector<2x64xf32>
    %105 = arith.addf %103, %104 : vector<2x64xf32>
    %cst_65 = arith.constant 0.000000e+00 : f32
    %106 = vector.broadcast %cst_65 : f32 to vector<2x64xf32>
    %107 = arith.maximumf %105, %106 : vector<2x64xf32>
    %cst_66 = arith.constant dense<0.000000e+00> : vector<2x64xf32>
    %108 = tpu.matmul %101, %107, %cst_66 {dimension_numbers = #tpu.dot_dimension_numbers<[1], [0], [0], [1], [0, 0, 1, 1], [], []>} : vector<2x2xf32>, vector<2x64xf32>, vector<2x64xf32> -> vector<2x64xf32>
    %cst_67 = arith.constant dense<0.000000e+00> : vector<2x64xf32>
    %109 = tpu.matmul %108, %18, %cst_67 {dimension_numbers = #tpu.dot_dimension_numbers<[1], [0], [0], [1], [0, 0, 1, 1], [], []>} : vector<2x64xf32>, vector<64x64xf32>, vector<2x64xf32> -> vector<2x64xf32>
    %110 = vector.broadcast %19 : vector<1x64xf32> to vector<2x64xf32>
    %111 = arith.addf %109, %110 : vector<2x64xf32>
    %cst_68 = arith.constant 0.000000e+00 : f32
    %112 = vector.broadcast %cst_68 : f32 to vector<2x64xf32>
    %113 = arith.maximumf %111, %112 : vector<2x64xf32>
    %cst_69 = arith.constant dense<0.000000e+00> : vector<64xf32>
    %114 = vector.multi_reduction <add>, %113, %cst_69 [0] : vector<2x64xf32> to vector<64xf32>
    %115 = vector.shape_cast %114 : vector<64xf32> to vector<1x64xf32>
    %cst_70 = arith.constant 2.000000e+00 : f32
    %116 = vector.broadcast %cst_70 : f32 to vector<1x64xf32>
    %117 = arith.divf %115, %116 : vector<1x64xf32>
    %cst_71 = arith.constant dense<0.000000e+00> : vector<1x64xf32>
    %118 = tpu.matmul %117, %20, %cst_71 {dimension_numbers = #tpu.dot_dimension_numbers<[1], [0], [0], [1], [0, 0, 1, 1], [], []>} : vector<1x64xf32>, vector<64x64xf32>, vector<1x64xf32> -> vector<1x64xf32>
    %119 = arith.addf %118, %21 : vector<1x64xf32>
    %cst_72 = arith.constant 0.000000e+00 : f32
    %120 = vector.broadcast %cst_72 : f32 to vector<1x64xf32>
    %121 = arith.maximumf %119, %120 : vector<1x64xf32>
    %cst_73 = arith.constant dense<0.000000e+00> : vector<1x2xf32>
    %122 = tpu.matmul %121, %22, %cst_73 {dimension_numbers = #tpu.dot_dimension_numbers<[1], [0], [0], [1], [0, 0, 1, 1], [], []>} : vector<1x64xf32>, vector<64x2xf32>, vector<1x2xf32> -> vector<1x2xf32>
    %123 = arith.addf %122, %23 : vector<1x2xf32>
    %cst_74 = arith.constant dense<0xFF800000> : vector<1xf32>
    %124 = vector.multi_reduction <maximumf>, %123, %cst_74 [1] : vector<1x2xf32> to vector<1xf32>
    %125 = vector.shape_cast %124 : vector<1xf32> to vector<1x1xf32>
    %126 = vector.broadcast %125 : vector<1x1xf32> to vector<1x2xf32>
    %127 = arith.subf %123, %126 : vector<1x2xf32>
    %128 = math.exp %127 : vector<1x2xf32>
    %cst_75 = arith.constant dense<0.000000e+00> : vector<1xf32>
    %129 = vector.multi_reduction <add>, %128, %cst_75 [1] : vector<1x2xf32> to vector<1xf32>
    %130 = vector.shape_cast %129 : vector<1xf32> to vector<1x1xf32>
    %131 = math.log %130 : vector<1x1xf32>
    %132 = vector.broadcast %125 : vector<1x1xf32> to vector<1x2xf32>
    %133 = arith.subf %123, %132 : vector<1x2xf32>
    %134 = vector.broadcast %131 : vector<1x1xf32> to vector<1x2xf32>
    %135 = arith.subf %133, %134 : vector<1x2xf32>
    %c0_76 = arith.constant 0 : index
    %c0_77 = arith.constant 0 : index
    %136 = vector.load %arg6[%c0_76, %c0_77] : memref<2x2xf32, #tpu.memory_space<vmem>>, vector<1x2xf32>
    tpu.vector_store %arg6[%c0_76, %c0_77], %135 {strides = array<i32>} : memref<2x2xf32, #tpu.memory_space<vmem>>, vector<1x2xf32>,
    %c1 = arith.constant 1 : index
    %c0_78 = arith.constant 0 : index
    %c0_79 = arith.constant 0 : index
    %137 = vector.load %arg0[%c1, %c0_78, %c0_79] : memref<2x8x20xf32, #tpu.memory_space<vmem>>, vector<1x8x20xf32>
    %138 = vector.shape_cast %137 : vector<1x8x20xf32> to vector<8x20xf32>
    %c1_80 = arith.constant 1 : index
    %c0_81 = arith.constant 0 : index
    %c0_82 = arith.constant 0 : index
    %139 = vector.load %arg1[%c1_80, %c0_81, %c0_82] : memref<2x8x8xf32, #tpu.memory_space<vmem>>, vector<1x8x8xf32>
    %140 = vector.shape_cast %139 : vector<1x8x8xf32> to vector<8x8xf32>
    %cst_83 = arith.constant dense<0.000000e+00> : vector<8x20xf32>
    %141 = tpu.matmul %140, %138, %cst_83 {dimension_numbers = #tpu.dot_dimension_numbers<[1], [0], [0], [1], [0, 0, 1, 1], [], []>} : vector<8x8xf32>, vector<8x20xf32>, vector<8x20xf32> -> vector<8x20xf32>
    %cst_84 = arith.constant dense<0.000000e+00> : vector<8x64xf32>
    %142 = tpu.matmul %141, %0, %cst_84 {dimension_numbers = #tpu.dot_dimension_numbers<[1], [0], [0], [1], [0, 0, 1, 1], [], []>} : vector<8x20xf32>, vector<20x64xf32>, vector<8x64xf32> -> vector<8x64xf32>
    %143 = vector.broadcast %1 : vector<1x64xf32> to vector<8x64xf32>
    %144 = arith.addf %142, %143 : vector<8x64xf32>
    %cst_85 = arith.constant 0.000000e+00 : f32
    %145 = vector.broadcast %cst_85 : f32 to vector<8x64xf32>
    %146 = arith.maximumf %144, %145 : vector<8x64xf32>
    %cst_86 = arith.constant dense<0.000000e+00> : vector<8x64xf32>
    %147 = tpu.matmul %140, %146, %cst_86 {dimension_numbers = #tpu.dot_dimension_numbers<[1], [0], [0], [1], [0, 0, 1, 1], [], []>} : vector<8x8xf32>, vector<8x64xf32>, vector<8x64xf32> -> vector<8x64xf32>
    %cst_87 = arith.constant dense<0.000000e+00> : vector<8x5xf32>
    %148 = tpu.matmul %147, %2, %cst_87 {dimension_numbers = #tpu.dot_dimension_numbers<[1], [0], [0], [1], [0, 0, 1, 1], [], []>} : vector<8x64xf32>, vector<64x5xf32>, vector<8x5xf32> -> vector<8x5xf32>
    %149 = vector.broadcast %3 : vector<1x5xf32> to vector<8x5xf32>
    %150 = arith.addf %148, %149 : vector<8x5xf32>
    %cst_88 = arith.constant 0.000000e+00 : f32
    %151 = vector.broadcast %cst_88 : f32 to vector<8x5xf32>
    %152 = arith.maximumf %150, %151 : vector<8x5xf32>
    %cst_89 = arith.constant dense<0.000000e+00> : vector<8x20xf32>
    %153 = tpu.matmul %140, %138, %cst_89 {dimension_numbers = #tpu.dot_dimension_numbers<[1], [0], [0], [1], [0, 0, 1, 1], [], []>} : vector<8x8xf32>, vector<8x20xf32>, vector<8x20xf32> -> vector<8x20xf32>
    %cst_90 = arith.constant dense<0.000000e+00> : vector<8x64xf32>
    %154 = tpu.matmul %153, %4, %cst_90 {dimension_numbers = #tpu.dot_dimension_numbers<[1], [0], [0], [1], [0, 0, 1, 1], [], []>} : vector<8x20xf32>, vector<20x64xf32>, vector<8x64xf32> -> vector<8x64xf32>
    %155 = vector.broadcast %5 : vector<1x64xf32> to vector<8x64xf32>
    %156 = arith.addf %154, %155 : vector<8x64xf32>
    %cst_91 = arith.constant 0.000000e+00 : f32
    %157 = vector.broadcast %cst_91 : f32 to vector<8x64xf32>
    %158 = arith.maximumf %156, %157 : vector<8x64xf32>
    %cst_92 = arith.constant dense<0.000000e+00> : vector<8x64xf32>
    %159 = tpu.matmul %140, %158, %cst_92 {dimension_numbers = #tpu.dot_dimension_numbers<[1], [0], [0], [1], [0, 0, 1, 1], [], []>} : vector<8x8xf32>, vector<8x64xf32>, vector<8x64xf32> -> vector<8x64xf32>
    %cst_93 = arith.constant dense<0.000000e+00> : vector<8x64xf32>
    %160 = tpu.matmul %159, %6, %cst_93 {dimension_numbers = #tpu.dot_dimension_numbers<[1], [0], [0], [1], [0, 0, 1, 1], [], []>} : vector<8x64xf32>, vector<64x64xf32>, vector<8x64xf32> -> vector<8x64xf32>
    %161 = vector.broadcast %7 : vector<1x64xf32> to vector<8x64xf32>
    %162 = arith.addf %160, %161 : vector<8x64xf32>
    %cst_94 = arith.constant 0.000000e+00 : f32
    %163 = vector.broadcast %cst_94 : f32 to vector<8x64xf32>
    %164 = arith.maximumf %162, %163 : vector<8x64xf32>
    %cst_95 = arith.constant dense<0xFF800000> : vector<8xf32>
    %165 = vector.multi_reduction <maximumf>, %152, %cst_95 [1] : vector<8x5xf32> to vector<8xf32>
    %166 = vector.shape_cast %165 : vector<8xf32> to vector<8x1xf32>
    %167 = vector.broadcast %166 : vector<8x1xf32> to vector<8x5xf32>
    %168 = arith.subf %152, %167 : vector<8x5xf32>
    %169 = math.exp %168 : vector<8x5xf32>
    %cst_96 = arith.constant dense<0.000000e+00> : vector<8xf32>
    %170 = vector.multi_reduction <add>, %169, %cst_96 [1] : vector<8x5xf32> to vector<8xf32>
    %171 = vector.shape_cast %170 : vector<8xf32> to vector<8x1xf32>
    %172 = vector.broadcast %171 : vector<8x1xf32> to vector<8x5xf32>
    %173 = arith.divf %169, %172 : vector<8x5xf32>
    %174 = tpu.transpose %173, [1, 0] : vector<8x5xf32> -> vector<5x8xf32>
    %cst_97 = arith.constant dense<0.000000e+00> : vector<5x64xf32>
    %175 = tpu.matmul %174, %164, %cst_97 {dimension_numbers = #tpu.dot_dimension_numbers<[1], [0], [0], [1], [0, 0, 1, 1], [], []>} : vector<5x8xf32>, vector<8x64xf32>, vector<5x64xf32> -> vector<5x64xf32>
    %cst_98 = arith.constant dense<0.000000e+00> : vector<5x8xf32>
    %176 = tpu.matmul %174, %140, %cst_98 {dimension_numbers = #tpu.dot_dimension_numbers<[1], [0], [0], [1], [0, 0, 1, 1], [], []>} : vector<5x8xf32>, vector<8x8xf32>, vector<5x8xf32> -> vector<5x8xf32>
    %cst_99 = arith.constant dense<0.000000e+00> : vector<5x5xf32>
    %177 = tpu.matmul %176, %173, %cst_99 {dimension_numbers = #tpu.dot_dimension_numbers<[1], [0], [0], [1], [0, 0, 1, 1], [], []>} : vector<5x8xf32>, vector<8x5xf32>, vector<5x5xf32> -> vector<5x5xf32>
    %cst_100 = arith.constant dense<0.000000e+00> : vector<5x64xf32>
    %178 = tpu.matmul %177, %175, %cst_100 {dimension_numbers = #tpu.dot_dimension_numbers<[1], [0], [0], [1], [0, 0, 1, 1], [], []>} : vector<5x5xf32>, vector<5x64xf32>, vector<5x64xf32> -> vector<5x64xf32>
    %cst_101 = arith.constant dense<0.000000e+00> : vector<5x64xf32>
    %179 = tpu.matmul %178, %8, %cst_101 {dimension_numbers = #tpu.dot_dimension_numbers<[1], [0], [0], [1], [0, 0, 1, 1], [], []>} : vector<5x64xf32>, vector<64x64xf32>, vector<5x64xf32> -> vector<5x64xf32>
    %180 = vector.broadcast %9 : vector<1x64xf32> to vector<5x64xf32>
    %181 = arith.addf %179, %180 : vector<5x64xf32>
    %cst_102 = arith.constant 0.000000e+00 : f32
    %182 = vector.broadcast %cst_102 : f32 to vector<5x64xf32>
    %183 = arith.maximumf %181, %182 : vector<5x64xf32>
    %cst_103 = arith.constant dense<0.000000e+00> : vector<5x64xf32>
    %184 = tpu.matmul %177, %183, %cst_103 {dimension_numbers = #tpu.dot_dimension_numbers<[1], [0], [0], [1], [0, 0, 1, 1], [], []>} : vector<5x5xf32>, vector<5x64xf32>, vector<5x64xf32> -> vector<5x64xf32>
    %cst_104 = arith.constant dense<0.000000e+00> : vector<5x2xf32>
    %185 = tpu.matmul %184, %10, %cst_104 {dimension_numbers = #tpu.dot_dimension_numbers<[1], [0], [0], [1], [0, 0, 1, 1], [], []>} : vector<5x64xf32>, vector<64x2xf32>, vector<5x2xf32> -> vector<5x2xf32>
    %186 = vector.broadcast %11 : vector<1x2xf32> to vector<5x2xf32>
    %187 = arith.addf %185, %186 : vector<5x2xf32>
    %cst_105 = arith.constant 0.000000e+00 : f32
    %188 = vector.broadcast %cst_105 : f32 to vector<5x2xf32>
    %189 = arith.maximumf %187, %188 : vector<5x2xf32>
    %cst_106 = arith.constant dense<0.000000e+00> : vector<5x64xf32>
    %190 = tpu.matmul %177, %175, %cst_106 {dimension_numbers = #tpu.dot_dimension_numbers<[1], [0], [0], [1], [0, 0, 1, 1], [], []>} : vector<5x5xf32>, vector<5x64xf32>, vector<5x64xf32> -> vector<5x64xf32>
    %cst_107 = arith.constant dense<0.000000e+00> : vector<5x64xf32>
    %191 = tpu.matmul %190, %12, %cst_107 {dimension_numbers = #tpu.dot_dimension_numbers<[1], [0], [0], [1], [0, 0, 1, 1], [], []>} : vector<5x64xf32>, vector<64x64xf32>, vector<5x64xf32> -> vector<5x64xf32>
    %192 = vector.broadcast %13 : vector<1x64xf32> to vector<5x64xf32>
    %193 = arith.addf %191, %192 : vector<5x64xf32>
    %cst_108 = arith.constant 0.000000e+00 : f32
    %194 = vector.broadcast %cst_108 : f32 to vector<5x64xf32>
    %195 = arith.maximumf %193, %194 : vector<5x64xf32>
    %cst_109 = arith.constant dense<0.000000e+00> : vector<5x64xf32>
    %196 = tpu.matmul %177, %195, %cst_109 {dimension_numbers = #tpu.dot_dimension_numbers<[1], [0], [0], [1], [0, 0, 1, 1], [], []>} : vector<5x5xf32>, vector<5x64xf32>, vector<5x64xf32> -> vector<5x64xf32>
    %cst_110 = arith.constant dense<0.000000e+00> : vector<5x64xf32>
    %197 = tpu.matmul %196, %14, %cst_110 {dimension_numbers = #tpu.dot_dimension_numbers<[1], [0], [0], [1], [0, 0, 1, 1], [], []>} : vector<5x64xf32>, vector<64x64xf32>, vector<5x64xf32> -> vector<5x64xf32>
    %198 = vector.broadcast %15 : vector<1x64xf32> to vector<5x64xf32>
    %199 = arith.addf %197, %198 : vector<5x64xf32>
    %cst_111 = arith.constant 0.000000e+00 : f32
    %200 = vector.broadcast %cst_111 : f32 to vector<5x64xf32>
    %201 = arith.maximumf %199, %200 : vector<5x64xf32>
    %cst_112 = arith.constant dense<0xFF800000> : vector<5xf32>
    %202 = vector.multi_reduction <maximumf>, %189, %cst_112 [1] : vector<5x2xf32> to vector<5xf32>
    %203 = vector.shape_cast %202 : vector<5xf32> to vector<5x1xf32>
    %204 = vector.broadcast %203 : vector<5x1xf32> to vector<5x2xf32>
    %205 = arith.subf %189, %204 : vector<5x2xf32>
    %206 = math.exp %205 : vector<5x2xf32>
    %cst_113 = arith.constant dense<0.000000e+00> : vector<5xf32>
    %207 = vector.multi_reduction <add>, %206, %cst_113 [1] : vector<5x2xf32> to vector<5xf32>
    %208 = vector.shape_cast %207 : vector<5xf32> to vector<5x1xf32>
    %209 = vector.broadcast %208 : vector<5x1xf32> to vector<5x2xf32>
    %210 = arith.divf %206, %209 : vector<5x2xf32>
    %211 = tpu.transpose %210, [1, 0] : vector<5x2xf32> -> vector<2x5xf32>
    %cst_114 = arith.constant dense<0.000000e+00> : vector<2x64xf32>
    %212 = tpu.matmul %211, %201, %cst_114 {dimension_numbers = #tpu.dot_dimension_numbers<[1], [0], [0], [1], [0, 0, 1, 1], [], []>} : vector<2x5xf32>, vector<5x64xf32>, vector<2x64xf32> -> vector<2x64xf32>
    %cst_115 = arith.constant dense<0.000000e+00> : vector<2x5xf32>
    %213 = tpu.matmul %211, %177, %cst_115 {dimension_numbers = #tpu.dot_dimension_numbers<[1], [0], [0], [1], [0, 0, 1, 1], [], []>} : vector<2x5xf32>, vector<5x5xf32>, vector<2x5xf32> -> vector<2x5xf32>
    %cst_116 = arith.constant dense<0.000000e+00> : vector<2x2xf32>
    %214 = tpu.matmul %213, %210, %cst_116 {dimension_numbers = #tpu.dot_dimension_numbers<[1], [0], [0], [1], [0, 0, 1, 1], [], []>} : vector<2x5xf32>, vector<5x2xf32>, vector<2x2xf32> -> vector<2x2xf32>
    %cst_117 = arith.constant dense<0.000000e+00> : vector<2x64xf32>
    %215 = tpu.matmul %214, %212, %cst_117 {dimension_numbers = #tpu.dot_dimension_numbers<[1], [0], [0], [1], [0, 0, 1, 1], [], []>} : vector<2x2xf32>, vector<2x64xf32>, vector<2x64xf32> -> vector<2x64xf32>
    %cst_118 = arith.constant dense<0.000000e+00> : vector<2x64xf32>
    %216 = tpu.matmul %215, %16, %cst_118 {dimension_numbers = #tpu.dot_dimension_numbers<[1], [0], [0], [1], [0, 0, 1, 1], [], []>} : vector<2x64xf32>, vector<64x64xf32>, vector<2x64xf32> -> vector<2x64xf32>
    %217 = vector.broadcast %17 : vector<1x64xf32> to vector<2x64xf32>
    %218 = arith.addf %216, %217 : vector<2x64xf32>
    %cst_119 = arith.constant 0.000000e+00 : f32
    %219 = vector.broadcast %cst_119 : f32 to vector<2x64xf32>
    %220 = arith.maximumf %218, %219 : vector<2x64xf32>
    %cst_120 = arith.constant dense<0.000000e+00> : vector<2x64xf32>
    %221 = tpu.matmul %214, %220, %cst_120 {dimension_numbers = #tpu.dot_dimension_numbers<[1], [0], [0], [1], [0, 0, 1, 1], [], []>} : vector<2x2xf32>, vector<2x64xf32>, vector<2x64xf32> -> vector<2x64xf32>
    %cst_121 = arith.constant dense<0.000000e+00> : vector<2x64xf32>
    %222 = tpu.matmul %221, %18, %cst_121 {dimension_numbers = #tpu.dot_dimension_numbers<[1], [0], [0], [1], [0, 0, 1, 1], [], []>} : vector<2x64xf32>, vector<64x64xf32>, vector<2x64xf32> -> vector<2x64xf32>
    %223 = vector.broadcast %19 : vector<1x64xf32> to vector<2x64xf32>
    %224 = arith.addf %222, %223 : vector<2x64xf32>
    %cst_122 = arith.constant 0.000000e+00 : f32
    %225 = vector.broadcast %cst_122 : f32 to vector<2x64xf32>
    %226 = arith.maximumf %224, %225 : vector<2x64xf32>
    %cst_123 = arith.constant dense<0.000000e+00> : vector<64xf32>
    %227 = vector.multi_reduction <add>, %226, %cst_123 [0] : vector<2x64xf32> to vector<64xf32>
    %228 = vector.shape_cast %227 : vector<64xf32> to vector<1x64xf32>
    %cst_124 = arith.constant 2.000000e+00 : f32
    %229 = vector.broadcast %cst_124 : f32 to vector<1x64xf32>
    %230 = arith.divf %228, %229 : vector<1x64xf32>
    %cst_125 = arith.constant dense<0.000000e+00> : vector<1x64xf32>
    %231 = tpu.matmul %230, %20, %cst_125 {dimension_numbers = #tpu.dot_dimension_numbers<[1], [0], [0], [1], [0, 0, 1, 1], [], []>} : vector<1x64xf32>, vector<64x64xf32>, vector<1x64xf32> -> vector<1x64xf32>
    %232 = arith.addf %231, %21 : vector<1x64xf32>
    %cst_126 = arith.constant 0.000000e+00 : f32
    %233 = vector.broadcast %cst_126 : f32 to vector<1x64xf32>
    %234 = arith.maximumf %232, %233 : vector<1x64xf32>
    %cst_127 = arith.constant dense<0.000000e+00> : vector<1x2xf32>
    %235 = tpu.matmul %234, %22, %cst_127 {dimension_numbers = #tpu.dot_dimension_numbers<[1], [0], [0], [1], [0, 0, 1, 1], [], []>} : vector<1x64xf32>, vector<64x2xf32>, vector<1x2xf32> -> vector<1x2xf32>
    %236 = arith.addf %235, %23 : vector<1x2xf32>
    %cst_128 = arith.constant dense<0xFF800000> : vector<1xf32>
    %237 = vector.multi_reduction <maximumf>, %236, %cst_128 [1] : vector<1x2xf32> to vector<1xf32>
    %238 = vector.shape_cast %237 : vector<1xf32> to vector<1x1xf32>
    %239 = vector.broadcast %238 : vector<1x1xf32> to vector<1x2xf32>
    %240 = arith.subf %236, %239 : vector<1x2xf32>
    %241 = math.exp %240 : vector<1x2xf32>
    %cst_129 = arith.constant dense<0.000000e+00> : vector<1xf32>
    %242 = vector.multi_reduction <add>, %241, %cst_129 [1] : vector<1x2xf32> to vector<1xf32>
    %243 = vector.shape_cast %242 : vector<1xf32> to vector<1x1xf32>
    %244 = math.log %243 : vector<1x1xf32>
    %245 = vector.broadcast %238 : vector<1x1xf32> to vector<1x2xf32>
    %246 = arith.subf %236, %245 : vector<1x2xf32>
    %247 = vector.broadcast %244 : vector<1x1xf32> to vector<1x2xf32>
    %248 = arith.subf %246, %247 : vector<1x2xf32>
    %c1_130 = arith.constant 1 : index
    %c0_131 = arith.constant 0 : index
    %249 = vector.load %arg6[%c1_130, %c0_131] : memref<2x2xf32, #tpu.memory_space<vmem>>, vector<1x2xf32>
    tpu.vector_store %arg6[%c1_130, %c0_131], %248 {strides = array<i32>} : memref<2x2xf32, #tpu.memory_space<vmem>>, vector<1x2xf32>,
    %250 = math.exp %135 : vector<1x2xf32>
    %251 = vector.extract_strided_slice %250 {offsets = [0, 0], sizes = [1, 1], strides = [1, 1]} : vector<1x2xf32> to vector<1x1xf32>
    %252 = vector.extract_strided_slice %250 {offsets = [0, 1], sizes = [1, 1], strides = [1, 1]} : vector<1x2xf32> to vector<1x1xf32>
    %c0_132 = arith.constant 0 : index
    %c0_133 = arith.constant 0 : index
    %c0_134 = arith.constant 0 : index
    %253 = vector.load %arg2[%c0_132, %c0_133, %c0_134] : memref<1x1x64xf32, #tpu.memory_space<vmem>>, vector<1x1x64xf32>
    %254 = vector.shape_cast %253 : vector<1x1x64xf32> to vector<1x64xf32>
    %255 = vector.broadcast %252 : vector<1x1xf32> to vector<1x64xf32>
    %256 = arith.mulf %255, %254 : vector<1x64xf32>
    %257 = vector.broadcast %251 : vector<1x1xf32> to vector<1x64xf32>
    %258 = arith.addf %257, %256 : vector<1x64xf32>
    %259 = vector.broadcast %252 : vector<1x1xf32> to vector<1x64xf32>
    %260 = arith.mulf %259, %258 : vector<1x64xf32>
    %261 = vector.broadcast %251 : vector<1x1xf32> to vector<1x64xf32>
    %262 = arith.addf %260, %261 : vector<1x64xf32>
    %c0_135 = arith.constant 0 : index
    %c0_136 = arith.constant 0 : index
    %263 = vector.load %arg4[%c0_135, %c0_136] : memref<792x128xf32, #tpu.memory_space<vmem>>, vector<64x64xf32>
    %c64 = arith.constant 64 : index
    %c0_137 = arith.constant 0 : index
    %264 = vector.load %arg4[%c64, %c0_137] : memref<792x128xf32, #tpu.memory_space<vmem>>, vector<1x64xf32>
    %c72 = arith.constant 72 : index
    %c0_138 = arith.constant 0 : index
    %265 = vector.load %arg4[%c72, %c0_138] : memref<792x128xf32, #tpu.memory_space<vmem>>, vector<64x2xf32>
    %c136_139 = arith.constant 136 : index
    %c0_140 = arith.constant 0 : index
    %266 = vector.load %arg4[%c136_139, %c0_140] : memref<792x128xf32, #tpu.memory_space<vmem>>, vector<1x2xf32>
    %c144 = arith.constant 144 : index
    %c0_141 = arith.constant 0 : index
    %267 = vector.load %arg4[%c144, %c0_141] : memref<792x128xf32, #tpu.memory_space<vmem>>, vector<64x64xf32>
    %c208_142 = arith.constant 208 : index
    %c0_143 = arith.constant 0 : index
    %268 = vector.load %arg4[%c208_142, %c0_143] : memref<792x128xf32, #tpu.memory_space<vmem>>, vector<1x64xf32>
    %c216 = arith.constant 216 : index
    %c0_144 = arith.constant 0 : index
    %269 = vector.load %arg4[%c216, %c0_144] : memref<792x128xf32, #tpu.memory_space<vmem>>, vector<64x64xf32>
    %c280_145 = arith.constant 280 : index
    %c0_146 = arith.constant 0 : index
    %270 = vector.load %arg4[%c280_145, %c0_146] : memref<792x128xf32, #tpu.memory_space<vmem>>, vector<1x64xf32>
    %c288 = arith.constant 288 : index
    %c0_147 = arith.constant 0 : index
    %271 = vector.load %arg4[%c288, %c0_147] : memref<792x128xf32, #tpu.memory_space<vmem>>, vector<64x64xf32>
    %c352_148 = arith.constant 352 : index
    %c0_149 = arith.constant 0 : index
    %272 = vector.load %arg4[%c352_148, %c0_149] : memref<792x128xf32, #tpu.memory_space<vmem>>, vector<1x64xf32>
    %c360 = arith.constant 360 : index
    %c0_150 = arith.constant 0 : index
    %273 = vector.load %arg4[%c360, %c0_150] : memref<792x128xf32, #tpu.memory_space<vmem>>, vector<64x5xf32>
    %c424_151 = arith.constant 424 : index
    %c0_152 = arith.constant 0 : index
    %274 = vector.load %arg4[%c424_151, %c0_152] : memref<792x128xf32, #tpu.memory_space<vmem>>, vector<1x5xf32>
    %c432 = arith.constant 432 : index
    %c0_153 = arith.constant 0 : index
    %275 = vector.load %arg4[%c432, %c0_153] : memref<792x128xf32, #tpu.memory_space<vmem>>, vector<64x64xf32>
    %c496_154 = arith.constant 496 : index
    %c0_155 = arith.constant 0 : index
    %276 = vector.load %arg4[%c496_154, %c0_155] : memref<792x128xf32, #tpu.memory_space<vmem>>, vector<1x64xf32>
    %c504 = arith.constant 504 : index
    %c0_156 = arith.constant 0 : index
    %277 = vector.load %arg4[%c504, %c0_156] : memref<792x128xf32, #tpu.memory_space<vmem>>, vector<64x64xf32>
    %c568_157 = arith.constant 568 : index
    %c0_158 = arith.constant 0 : index
    %278 = vector.load %arg4[%c568_157, %c0_158] : memref<792x128xf32, #tpu.memory_space<vmem>>, vector<1x64xf32>
    %c576 = arith.constant 576 : index
    %c0_159 = arith.constant 0 : index
    %279 = vector.load %arg4[%c576, %c0_159] : memref<792x128xf32, #tpu.memory_space<vmem>>, vector<64x64xf32>
    %c640_160 = arith.constant 640 : index
    %c0_161 = arith.constant 0 : index
    %280 = vector.load %arg4[%c640_160, %c0_161] : memref<792x128xf32, #tpu.memory_space<vmem>>, vector<1x64xf32>
    %c648 = arith.constant 648 : index
    %c0_162 = arith.constant 0 : index
    %281 = vector.load %arg4[%c648, %c0_162] : memref<792x128xf32, #tpu.memory_space<vmem>>, vector<64x64xf32>
    %c712_163 = arith.constant 712 : index
    %c0_164 = arith.constant 0 : index
    %282 = vector.load %arg4[%c712_163, %c0_164] : memref<792x128xf32, #tpu.memory_space<vmem>>, vector<1x64xf32>
    %c720 = arith.constant 720 : index
    %c0_165 = arith.constant 0 : index
    %283 = vector.load %arg4[%c720, %c0_165] : memref<792x128xf32, #tpu.memory_space<vmem>>, vector<64x128xf32>
    %c784 = arith.constant 784 : index
    %c0_166 = arith.constant 0 : index
    %284 = vector.load %arg4[%c784, %c0_166] : memref<792x128xf32, #tpu.memory_space<vmem>>, vector<1x128xf32>
    %c0_167 = arith.constant 0 : index
    %c0_168 = arith.constant 0 : index
    %285 = vector.load %arg5[%c0_167, %c0_168] : memref<72x512xf32, #tpu.memory_space<vmem>>, vector<64x512xf32>
    %c64_169 = arith.constant 64 : index
    %c0_170 = arith.constant 0 : index
    %286 = vector.load %arg5[%c64_169, %c0_170] : memref<72x512xf32, #tpu.memory_space<vmem>>, vector<1x512xf32>
    %cst_171 = arith.constant 1.000000e+00 : f32
    %287 = vector.broadcast %cst_171 : f32 to vector<1x1xf32>
    %cst_172 = arith.constant dense<0.000000e+00> : vector<1x64xf32>
    %288 = tpu.matmul %287, %262, %cst_172 {dimension_numbers = #tpu.dot_dimension_numbers<[1], [0], [0], [1], [0, 0, 1, 1], [], []>} : vector<1x1xf32>, vector<1x64xf32>, vector<1x64xf32> -> vector<1x64xf32>
    %cst_173 = arith.constant dense<0.000000e+00> : vector<1x64xf32>
    %289 = tpu.matmul %288, %263, %cst_173 {dimension_numbers = #tpu.dot_dimension_numbers<[1], [0], [0], [1], [0, 0, 1, 1], [], []>} : vector<1x64xf32>, vector<64x64xf32>, vector<1x64xf32> -> vector<1x64xf32>
    %290 = arith.addf %289, %264 : vector<1x64xf32>
    %cst_174 = arith.constant 0.000000e+00 : f32
    %291 = vector.broadcast %cst_174 : f32 to vector<1x64xf32>
    %292 = arith.maximumf %290, %291 : vector<1x64xf32>
    %cst_175 = arith.constant dense<0.000000e+00> : vector<1x64xf32>
    %293 = tpu.matmul %287, %292, %cst_175 {dimension_numbers = #tpu.dot_dimension_numbers<[1], [0], [0], [1], [0, 0, 1, 1], [], []>} : vector<1x1xf32>, vector<1x64xf32>, vector<1x64xf32> -> vector<1x64xf32>
    %cst_176 = arith.constant dense<0.000000e+00> : vector<1x2xf32>
    %294 = tpu.matmul %293, %265, %cst_176 {dimension_numbers = #tpu.dot_dimension_numbers<[1], [0], [0], [1], [0, 0, 1, 1], [], []>} : vector<1x64xf32>, vector<64x2xf32>, vector<1x2xf32> -> vector<1x2xf32>
    %295 = arith.addf %294, %266 : vector<1x2xf32>
    %cst_177 = arith.constant 0.000000e+00 : f32
    %296 = vector.broadcast %cst_177 : f32 to vector<1x2xf32>
    %297 = arith.maximumf %295, %296 : vector<1x2xf32>
    %cst_178 = arith.constant dense<0.000000e+00> : vector<1x64xf32>
    %298 = tpu.matmul %287, %262, %cst_178 {dimension_numbers = #tpu.dot_dimension_numbers<[1], [0], [0], [1], [0, 0, 1, 1], [], []>} : vector<1x1xf32>, vector<1x64xf32>, vector<1x64xf32> -> vector<1x64xf32>
    %cst_179 = arith.constant dense<0.000000e+00> : vector<1x64xf32>
    %299 = tpu.matmul %298, %267, %cst_179 {dimension_numbers = #tpu.dot_dimension_numbers<[1], [0], [0], [1], [0, 0, 1, 1], [], []>} : vector<1x64xf32>, vector<64x64xf32>, vector<1x64xf32> -> vector<1x64xf32>
    %300 = arith.addf %299, %268 : vector<1x64xf32>
    %cst_180 = arith.constant 0.000000e+00 : f32
    %301 = vector.broadcast %cst_180 : f32 to vector<1x64xf32>
    %302 = arith.maximumf %300, %301 : vector<1x64xf32>
    %cst_181 = arith.constant dense<0.000000e+00> : vector<1x64xf32>
    %303 = tpu.matmul %287, %302, %cst_181 {dimension_numbers = #tpu.dot_dimension_numbers<[1], [0], [0], [1], [0, 0, 1, 1], [], []>} : vector<1x1xf32>, vector<1x64xf32>, vector<1x64xf32> -> vector<1x64xf32>
    %cst_182 = arith.constant dense<0.000000e+00> : vector<1x64xf32>
    %304 = tpu.matmul %303, %269, %cst_182 {dimension_numbers = #tpu.dot_dimension_numbers<[1], [0], [0], [1], [0, 0, 1, 1], [], []>} : vector<1x64xf32>, vector<64x64xf32>, vector<1x64xf32> -> vector<1x64xf32>
    %305 = arith.addf %304, %270 : vector<1x64xf32>
    %cst_183 = arith.constant 0.000000e+00 : f32
    %306 = vector.broadcast %cst_183 : f32 to vector<1x64xf32>
    %307 = arith.maximumf %305, %306 : vector<1x64xf32>
    %cst_184 = arith.constant dense<0xFF800000> : vector<1xf32>
    %308 = vector.multi_reduction <maximumf>, %297, %cst_184 [1] : vector<1x2xf32> to vector<1xf32>
    %309 = vector.shape_cast %308 : vector<1xf32> to vector<1x1xf32>
    %310 = vector.broadcast %309 : vector<1x1xf32> to vector<1x2xf32>
    %311 = arith.subf %297, %310 : vector<1x2xf32>
    %312 = math.exp %311 : vector<1x2xf32>
    %cst_185 = arith.constant dense<0.000000e+00> : vector<1xf32>
    %313 = vector.multi_reduction <add>, %312, %cst_185 [1] : vector<1x2xf32> to vector<1xf32>
    %314 = vector.shape_cast %313 : vector<1xf32> to vector<1x1xf32>
    %315 = vector.broadcast %314 : vector<1x1xf32> to vector<1x2xf32>
    %316 = arith.divf %312, %315 : vector<1x2xf32>
    %317 = tpu.transpose %316, [1, 0] : vector<1x2xf32> -> vector<2x1xf32>
    %cst_186 = arith.constant dense<0.000000e+00> : vector<2x64xf32>
    %318 = tpu.matmul %317, %307, %cst_186 {dimension_numbers = #tpu.dot_dimension_numbers<[1], [0], [0], [1], [0, 0, 1, 1], [], []>} : vector<2x1xf32>, vector<1x64xf32>, vector<2x64xf32> -> vector<2x64xf32>
    %cst_187 = arith.constant dense<0.000000e+00> : vector<2x1xf32>
    %319 = tpu.matmul %317, %287, %cst_187 {dimension_numbers = #tpu.dot_dimension_numbers<[1], [0], [0], [1], [0, 0, 1, 1], [], []>} : vector<2x1xf32>, vector<1x1xf32>, vector<2x1xf32> -> vector<2x1xf32>
    %cst_188 = arith.constant dense<0.000000e+00> : vector<2x2xf32>
    %320 = tpu.matmul %319, %316, %cst_188 {dimension_numbers = #tpu.dot_dimension_numbers<[1], [0], [0], [1], [0, 0, 1, 1], [], []>} : vector<2x1xf32>, vector<1x2xf32>, vector<2x2xf32> -> vector<2x2xf32>
    %cst_189 = arith.constant dense<0.000000e+00> : vector<2x64xf32>
    %321 = tpu.matmul %320, %318, %cst_189 {dimension_numbers = #tpu.dot_dimension_numbers<[1], [0], [0], [1], [0, 0, 1, 1], [], []>} : vector<2x2xf32>, vector<2x64xf32>, vector<2x64xf32> -> vector<2x64xf32>
    %cst_190 = arith.constant dense<0.000000e+00> : vector<2x64xf32>
    %322 = tpu.matmul %321, %271, %cst_190 {dimension_numbers = #tpu.dot_dimension_numbers<[1], [0], [0], [1], [0, 0, 1, 1], [], []>} : vector<2x64xf32>, vector<64x64xf32>, vector<2x64xf32> -> vector<2x64xf32>
    %323 = vector.broadcast %272 : vector<1x64xf32> to vector<2x64xf32>
    %324 = arith.addf %322, %323 : vector<2x64xf32>
    %cst_191 = arith.constant 0.000000e+00 : f32
    %325 = vector.broadcast %cst_191 : f32 to vector<2x64xf32>
    %326 = arith.maximumf %324, %325 : vector<2x64xf32>
    %cst_192 = arith.constant dense<0.000000e+00> : vector<2x64xf32>
    %327 = tpu.matmul %320, %326, %cst_192 {dimension_numbers = #tpu.dot_dimension_numbers<[1], [0], [0], [1], [0, 0, 1, 1], [], []>} : vector<2x2xf32>, vector<2x64xf32>, vector<2x64xf32> -> vector<2x64xf32>
    %cst_193 = arith.constant dense<0.000000e+00> : vector<2x5xf32>
    %328 = tpu.matmul %327, %273, %cst_193 {dimension_numbers = #tpu.dot_dimension_numbers<[1], [0], [0], [1], [0, 0, 1, 1], [], []>} : vector<2x64xf32>, vector<64x5xf32>, vector<2x5xf32> -> vector<2x5xf32>
    %329 = vector.broadcast %274 : vector<1x5xf32> to vector<2x5xf32>
    %330 = arith.addf %328, %329 : vector<2x5xf32>
    %cst_194 = arith.constant 0.000000e+00 : f32
    %331 = vector.broadcast %cst_194 : f32 to vector<2x5xf32>
    %332 = arith.maximumf %330, %331 : vector<2x5xf32>
    %cst_195 = arith.constant dense<0.000000e+00> : vector<2x64xf32>
    %333 = tpu.matmul %320, %318, %cst_195 {dimension_numbers = #tpu.dot_dimension_numbers<[1], [0], [0], [1], [0, 0, 1, 1], [], []>} : vector<2x2xf32>, vector<2x64xf32>, vector<2x64xf32> -> vector<2x64xf32>
    %cst_196 = arith.constant dense<0.000000e+00> : vector<2x64xf32>
    %334 = tpu.matmul %333, %275, %cst_196 {dimension_numbers = #tpu.dot_dimension_numbers<[1], [0], [0], [1], [0, 0, 1, 1], [], []>} : vector<2x64xf32>, vector<64x64xf32>, vector<2x64xf32> -> vector<2x64xf32>
    %335 = vector.broadcast %276 : vector<1x64xf32> to vector<2x64xf32>
    %336 = arith.addf %334, %335 : vector<2x64xf32>
    %cst_197 = arith.constant 0.000000e+00 : f32
    %337 = vector.broadcast %cst_197 : f32 to vector<2x64xf32>
    %338 = arith.maximumf %336, %337 : vector<2x64xf32>
    %cst_198 = arith.constant dense<0.000000e+00> : vector<2x64xf32>
    %339 = tpu.matmul %320, %338, %cst_198 {dimension_numbers = #tpu.dot_dimension_numbers<[1], [0], [0], [1], [0, 0, 1, 1], [], []>} : vector<2x2xf32>, vector<2x64xf32>, vector<2x64xf32> -> vector<2x64xf32>
    %cst_199 = arith.constant dense<0.000000e+00> : vector<2x64xf32>
    %340 = tpu.matmul %339, %277, %cst_199 {dimension_numbers = #tpu.dot_dimension_numbers<[1], [0], [0], [1], [0, 0, 1, 1], [], []>} : vector<2x64xf32>, vector<64x64xf32>, vector<2x64xf32> -> vector<2x64xf32>
    %341 = vector.broadcast %278 : vector<1x64xf32> to vector<2x64xf32>
    %342 = arith.addf %340, %341 : vector<2x64xf32>
    %cst_200 = arith.constant 0.000000e+00 : f32
    %343 = vector.broadcast %cst_200 : f32 to vector<2x64xf32>
    %344 = arith.maximumf %342, %343 : vector<2x64xf32>
    %cst_201 = arith.constant dense<0xFF800000> : vector<2xf32>
    %345 = vector.multi_reduction <maximumf>, %332, %cst_201 [1] : vector<2x5xf32> to vector<2xf32>
    %346 = vector.shape_cast %345 : vector<2xf32> to vector<2x1xf32>
    %347 = vector.broadcast %346 : vector<2x1xf32> to vector<2x5xf32>
    %348 = arith.subf %332, %347 : vector<2x5xf32>
    %349 = math.exp %348 : vector<2x5xf32>
    %cst_202 = arith.constant dense<0.000000e+00> : vector<2xf32>
    %350 = vector.multi_reduction <add>, %349, %cst_202 [1] : vector<2x5xf32> to vector<2xf32>
    %351 = vector.shape_cast %350 : vector<2xf32> to vector<2x1xf32>
    %352 = vector.broadcast %351 : vector<2x1xf32> to vector<2x5xf32>
    %353 = arith.divf %349, %352 : vector<2x5xf32>
    %354 = tpu.transpose %353, [1, 0] : vector<2x5xf32> -> vector<5x2xf32>
    %cst_203 = arith.constant dense<0.000000e+00> : vector<5x64xf32>
    %355 = tpu.matmul %354, %344, %cst_203 {dimension_numbers = #tpu.dot_dimension_numbers<[1], [0], [0], [1], [0, 0, 1, 1], [], []>} : vector<5x2xf32>, vector<2x64xf32>, vector<5x64xf32> -> vector<5x64xf32>
    %cst_204 = arith.constant dense<0.000000e+00> : vector<5x2xf32>
    %356 = tpu.matmul %354, %320, %cst_204 {dimension_numbers = #tpu.dot_dimension_numbers<[1], [0], [0], [1], [0, 0, 1, 1], [], []>} : vector<5x2xf32>, vector<2x2xf32>, vector<5x2xf32> -> vector<5x2xf32>
    %cst_205 = arith.constant dense<0.000000e+00> : vector<5x5xf32>
    %357 = tpu.matmul %356, %353, %cst_205 {dimension_numbers = #tpu.dot_dimension_numbers<[1], [0], [0], [1], [0, 0, 1, 1], [], []>} : vector<5x2xf32>, vector<2x5xf32>, vector<5x5xf32> -> vector<5x5xf32>
    %cst_206 = arith.constant dense<0.000000e+00> : vector<5x64xf32>
    %358 = tpu.matmul %357, %355, %cst_206 {dimension_numbers = #tpu.dot_dimension_numbers<[1], [0], [0], [1], [0, 0, 1, 1], [], []>} : vector<5x5xf32>, vector<5x64xf32>, vector<5x64xf32> -> vector<5x64xf32>
    %cst_207 = arith.constant dense<0.000000e+00> : vector<5x64xf32>
    %359 = tpu.matmul %358, %279, %cst_207 {dimension_numbers = #tpu.dot_dimension_numbers<[1], [0], [0], [1], [0, 0, 1, 1], [], []>} : vector<5x64xf32>, vector<64x64xf32>, vector<5x64xf32> -> vector<5x64xf32>
    %360 = vector.broadcast %280 : vector<1x64xf32> to vector<5x64xf32>
    %361 = arith.addf %359, %360 : vector<5x64xf32>
    %cst_208 = arith.constant 0.000000e+00 : f32
    %362 = vector.broadcast %cst_208 : f32 to vector<5x64xf32>
    %363 = arith.maximumf %361, %362 : vector<5x64xf32>
    %cst_209 = arith.constant dense<0.000000e+00> : vector<5x64xf32>
    %364 = tpu.matmul %357, %363, %cst_209 {dimension_numbers = #tpu.dot_dimension_numbers<[1], [0], [0], [1], [0, 0, 1, 1], [], []>} : vector<5x5xf32>, vector<5x64xf32>, vector<5x64xf32> -> vector<5x64xf32>
    %cst_210 = arith.constant dense<0.000000e+00> : vector<5x512xf32>
    %365 = tpu.matmul %364, %285, %cst_210 {dimension_numbers = #tpu.dot_dimension_numbers<[1], [0], [0], [1], [0, 0, 1, 1], [], []>} : vector<5x64xf32>, vector<64x512xf32>, vector<5x512xf32> -> vector<5x512xf32>
    %366 = vector.broadcast %286 : vector<1x512xf32> to vector<5x512xf32>
    %367 = arith.addf %365, %366 : vector<5x512xf32>
    %cst_211 = arith.constant 0.000000e+00 : f32
    %368 = vector.broadcast %cst_211 : f32 to vector<5x512xf32>
    %369 = arith.maximumf %367, %368 : vector<5x512xf32>
    %cst_212 = arith.constant dense<0.000000e+00> : vector<5x64xf32>
    %370 = tpu.matmul %357, %355, %cst_212 {dimension_numbers = #tpu.dot_dimension_numbers<[1], [0], [0], [1], [0, 0, 1, 1], [], []>} : vector<5x5xf32>, vector<5x64xf32>, vector<5x64xf32> -> vector<5x64xf32>
    %cst_213 = arith.constant dense<0.000000e+00> : vector<5x64xf32>
    %371 = tpu.matmul %370, %281, %cst_213 {dimension_numbers = #tpu.dot_dimension_numbers<[1], [0], [0], [1], [0, 0, 1, 1], [], []>} : vector<5x64xf32>, vector<64x64xf32>, vector<5x64xf32> -> vector<5x64xf32>
    %372 = vector.broadcast %282 : vector<1x64xf32> to vector<5x64xf32>
    %373 = arith.addf %371, %372 : vector<5x64xf32>
    %cst_214 = arith.constant 0.000000e+00 : f32
    %374 = vector.broadcast %cst_214 : f32 to vector<5x64xf32>
    %375 = arith.maximumf %373, %374 : vector<5x64xf32>
    %cst_215 = arith.constant dense<0.000000e+00> : vector<5x64xf32>
    %376 = tpu.matmul %357, %375, %cst_215 {dimension_numbers = #tpu.dot_dimension_numbers<[1], [0], [0], [1], [0, 0, 1, 1], [], []>} : vector<5x5xf32>, vector<5x64xf32>, vector<5x64xf32> -> vector<5x64xf32>
    %cst_216 = arith.constant dense<0.000000e+00> : vector<5x128xf32>
    %377 = tpu.matmul %376, %283, %cst_216 {dimension_numbers = #tpu.dot_dimension_numbers<[1], [0], [0], [1], [0, 0, 1, 1], [], []>} : vector<5x64xf32>, vector<64x128xf32>, vector<5x128xf32> -> vector<5x128xf32>
    %378 = vector.broadcast %284 : vector<1x128xf32> to vector<5x128xf32>
    %379 = arith.addf %377, %378 : vector<5x128xf32>
    %cst_217 = arith.constant 0.000000e+00 : f32
    %380 = vector.broadcast %cst_217 : f32 to vector<5x128xf32>
    %381 = arith.maximumf %379, %380 : vector<5x128xf32>
    %382 = tpu.iota {dimensions = array<i32: 1>} : vector<5x512xi32>
    %c500_i32 = arith.constant 500 : i32
    %383 = vector.broadcast %c500_i32 : i32 to vector<5x512xi32>
    %384 = arith.cmpi slt, %382, %383 : vector<5x512xi32>
    %cst_218 = arith.constant -1.000000e+30 : f32
    %385 = vector.broadcast %cst_218 : f32 to vector<5x512xf32>
    %386 = arith.select %384, %369, %385 : vector<5x512xi1>, vector<5x512xf32>
    %cst_219 = arith.constant dense<0xFF800000> : vector<5xf32>
    %387 = vector.multi_reduction <maximumf>, %386, %cst_219 [1] : vector<5x512xf32> to vector<5xf32>
    %388 = vector.shape_cast %387 : vector<5xf32> to vector<5x1xf32>
    %389 = vector.broadcast %388 : vector<5x1xf32> to vector<5x512xf32>
    %390 = arith.subf %386, %389 : vector<5x512xf32>
    %391 = math.exp %390 : vector<5x512xf32>
    %cst_220 = arith.constant dense<0.000000e+00> : vector<5xf32>
    %392 = vector.multi_reduction <add>, %391, %cst_220 [1] : vector<5x512xf32> to vector<5xf32>
    %393 = vector.shape_cast %392 : vector<5xf32> to vector<5x1xf32>
    %394 = vector.broadcast %393 : vector<5x1xf32> to vector<5x512xf32>
    %395 = arith.divf %391, %394 : vector<5x512xf32>
    %396 = tpu.transpose %395, [1, 0] : vector<5x512xf32> -> vector<512x5xf32>
    %cst_221 = arith.constant dense<0.000000e+00> : vector<512x128xf32>
    %397 = tpu.matmul %396, %381, %cst_221 {dimension_numbers = #tpu.dot_dimension_numbers<[1], [0], [0], [1], [0, 0, 1, 1], [], []>} : vector<512x5xf32>, vector<5x128xf32>, vector<512x128xf32> -> vector<512x128xf32>
    %cst_222 = arith.constant dense<0.000000e+00> : vector<512x5xf32>
    %398 = tpu.matmul %396, %357, %cst_222 {dimension_numbers = #tpu.dot_dimension_numbers<[1], [0], [0], [1], [0, 0, 1, 1], [], []>} : vector<512x5xf32>, vector<5x5xf32>, vector<512x5xf32> -> vector<512x5xf32>
    %cst_223 = arith.constant dense<0.000000e+00> : vector<512x512xf32>
    %399 = tpu.matmul %398, %395, %cst_223 {dimension_numbers = #tpu.dot_dimension_numbers<[1], [0], [0], [1], [0, 0, 1, 1], [], []>} : vector<512x5xf32>, vector<5x512xf32>, vector<512x512xf32> -> vector<512x512xf32>
    %c0_224 = arith.constant 0 : index
    %c0_225 = arith.constant 0 : index
    %c0_226 = arith.constant 0 : index
    %400 = vector.load %arg7[%c0_224, %c0_225, %c0_226] : memref<1x512x128xf32, #tpu.memory_space<vmem>>, vector<1x512x128xf32>
    %401 = vector.shape_cast %400 : vector<1x512x128xf32> to vector<512x128xf32>
    %402 = vector.shape_cast %397 : vector<512x128xf32> to vector<1x512x128xf32>
    tpu.vector_store %arg7[%c0_224, %c0_225, %c0_226], %402 {strides = array<i32>} : memref<1x512x128xf32, #tpu.memory_space<vmem>>, vector<1x512x128xf32>,
    %c0_227 = arith.constant 0 : index
    %c0_228 = arith.constant 0 : index
    %c0_229 = arith.constant 0 : index
    %403 = vector.load %arg8[%c0_227, %c0_228, %c0_229] : memref<1x512x512xf32, #tpu.memory_space<vmem>>, vector<1x512x512xf32>
    %404 = vector.shape_cast %403 : vector<1x512x512xf32> to vector<512x512xf32>
    %405 = vector.shape_cast %399 : vector<512x512xf32> to vector<1x512x512xf32>
    tpu.vector_store %arg8[%c0_227, %c0_228, %c0_229], %405 {strides = array<i32>} : memref<1x512x512xf32, #tpu.memory_space<vmem>>, vector<1x512x512xf32>,
    return
  }
}

</mosaic_0001>

<bundles_post_ra>
// kernel: forward.1
= control target key start
LH: loop header
LB: loop body
LE: loop exit
PB: predicated region body
PF: predicated region fallthrough
CT: control target
= control target key end

     0   :  { %14 = vsyncpa [#allocation3], 0  ;;  %s13175_s0 = inlined_call_operand.hbm [shape: f32[2,8,20], index: 0, kind: input, shape index: {}]   ;;  %s13176_s1 = inlined_call_operand.hbm [shape: f32[2,8,8], index: 1, kind: input, shape index: {}]   ;;  %s13177_s2 = inlined_call_operand.vmem [shape: f32[1,1,64], index: 2, kind: input, shape index: {}]   ;;  %s13178_s3 = inlined_call_operand.hbm [shape: f32[784,128], index: 3, kind: input, shape index: {}]   ;;  %s13179_s4 = inlined_call_operand.hbm [shape: f32[792,128], index: 4, kind: input, shape index: {}]   ;;  %s13180_s5 = inlined_call_operand.hbm [shape: f32[72,512], index: 5, kind: input, shape index: {}]   ;;  %s13181_s6 = inlined_call_operand.hbm [shape: f32[2,2], index: 6, kind: output, shape index: {0}]   ;;  %s13182_s7 = inlined_call_operand.hbm [shape: f32[1,512,128], index: 7, kind: output, shape index: {1}]   ;;  %s13183_s8 = inlined_call_operand.hbm [shape: f32[1,512,512], index: 8, kind: output, shape index: {2}]  }
   0x1   :  { %15 = vsyncpa [#allocation6], 0 }
   0x2   :  { %16 = vsyncpa [#allocation9], 0 }
   0x3   :  { %17 = vsyncpa [#allocation4], 0 }
   0x4   :  { %18 = vsyncpa [#allocation13], 0  ;;  %s11426_s27 = smov [#allocation5]   ;;  %s11427_s29 = smov [#allocation8]  }
   0x5   :  { %s36_s28 = sshll.u32 %s11426_s27, 4  ;;  %s62_s30 = sshll.u32 %s11427_s29, 4  ;;  %s37_s28 = int_to_ptr.vmem [resolvable:$true] %s36_s28  ;;  %s63_s30 = int_to_ptr.vmem [resolvable:$true] %s62_s30 }
   0x6   :  { %s11264_s9 = scalar_lea.vmem %s37_s28, 256  ;;  %p11269_p1 = scmp.lt.s32.totalorder %s37_s28, %s37_s28 }
   0x7   :  { %p11265_p0 = scmp.ne.s32.totalorder %s37_s28, %s11264_s9  ;;  %p11270_p2 = scmp.lt.s32.totalorder %s11264_s9, %s11264_s9 }
   0x9   :  { %p11271_p3 = por %p11270_p2, %p11269_p1 }
   0xb   :  { %p11272_p4 = pnand %p11271_p3, %p11265_p0 }
   0xd   :  { %11275 = shalt.err (!%p11272_p4)
}
   0xe   :  { %s11428_s10 = smov 128   ;;  %s11429_s11 = smov 8  }
   0xf   :  { %42 = dma.hbm_to_vmem [thread:$0]  %s13176_s1, 256, %s37_s28, [#allocation6], %s11428_s10, %s11428_s10, %s11429_s11  }
  0x10   :  { %s11284_s14 = scalar_lea.vmem %s63_s30, 12672  ;;  %p11289_p6 = scmp.lt.s32.totalorder %s63_s30, %s63_s30 }
  0x11   :  { %p11285_p5 = scmp.ne.s32.totalorder %s63_s30, %s11284_s14  ;;  %p11290_p7 = scmp.lt.s32.totalorder %s11284_s14, %s11284_s14 }
  0x13   :  { %p11291_p8 = por %p11290_p7, %p11289_p6 }
  0x15   :  { %p11292_p9 = pnand %p11291_p8, %p11285_p5 }
  0x17   :  { %11295 = shalt.err (!%p11292_p9)
}
  0x18   :  { %68 = dma.hbm_to_vmem [thread:$0]  %s13179_s4, 12672, %s63_s30, [#allocation9], %s11428_s10, %s11428_s10, %s11429_s11  }
  0x19   :  { %s11430_s17 = smov [#allocation2]   ;;  %s11431_s19 = smov [#allocation7]  }
  0x1a   :  { %s24_s18 = sshll.u32 %s11430_s17, 4  ;;  %s50_s20 = sshll.u32 %s11431_s19, 4  ;;  %s25_s18 = int_to_ptr.vmem [resolvable:$true] %s24_s18  ;;  %s51_s20 = int_to_ptr.vmem [resolvable:$true] %s50_s20 }
  0x1b   :  { %s11304_s1 = scalar_lea.vmem %s25_s18, 256  ;;  %p11309_p11 = scmp.lt.s32.totalorder %s25_s18, %s25_s18 }
  0x1c   :  { %p11305_p10 = scmp.ne.s32.totalorder %s25_s18, %s11304_s1  ;;  %p11310_p12 = scmp.lt.s32.totalorder %s11304_s1, %s11304_s1 }
  0x1e   :  { %p11311_p13 = por %p11310_p12, %p11309_p11 }
  0x20   :  { %p11312_p0 = pnand %p11311_p13, %p11305_p10 }
  0x22   :  { %11315 = shalt.err (!%p11312_p0)
}
  0x23   :  { %30 = dma.hbm_to_vmem [thread:$0]  %s13175_s0, 256, %s25_s18, [#allocation3], %s11428_s10, %s11428_s10, %s11429_s11  }
  0x24   :  { %s11324_s4 = scalar_lea.vmem %s51_s20, 12544  ;;  %p11329_p2 = scmp.lt.s32.totalorder %s51_s20, %s51_s20 }
  0x25   :  { %p11325_p1 = scmp.ne.s32.totalorder %s51_s20, %s11324_s4  ;;  %p11330_p3 = scmp.lt.s32.totalorder %s11324_s4, %s11324_s4 }
  0x27   :  { %p11331_p4 = por %p11330_p3, %p11329_p2 }
  0x29   :  { %p11332_p5 = pnand %p11331_p4, %p11325_p1 }
  0x2b   :  { %11335 = shalt.err (!%p11332_p5)
}
  0x2c   :  { %56 = dma.hbm_to_vmem [thread:$0]  %s13178_s3, 12544, %s51_s20, [#allocation6], %s11428_s10, %s11428_s10, %s11429_s11  }
  0x2d   :  { %s11432_s25 = smov [#allocation10]  }
  0x2e   :  { %s74_s26 = sshll.u32 %s11432_s25, 4  ;;  %s75_s26 = int_to_ptr.vmem [resolvable:$true] %s74_s26 }
  0x2f   :  { %s11344_s27 = scalar_lea.vmem %s75_s26, 4608  ;;  %p11349_p7 = scmp.lt.s32.totalorder %s75_s26, %s75_s26 }
  0x30   :  { %p11345_p6 = scmp.ne.s32.totalorder %s75_s26, %s11344_s27  ;;  %p11350_p8 = scmp.lt.s32.totalorder %s11344_s27, %s11344_s27 }
  0x32   :  { %p11351_p9 = por %p11350_p8, %p11349_p7 }
  0x34   :  { %p11352_p10 = pnand %p11351_p9, %p11345_p6 }
  0x36   :  { %11355 = shalt.err (!%p11352_p10)
}
  0x37   :  { %s11433_s0 = smov 512   ;;  %s11434_s28 = smov 32  }
  0x38   :  { %80 = dma.hbm_to_vmem [thread:$0]  %s13180_s5, 4608, %s75_s26, [#allocation9], %s11433_s0, %s11433_s0, %s11434_s28  }
  0x39   :  { %11416 = dma.done.wait [#allocation3], 256  }
  0x3a   :  { %11417 = vsyncadd [#allocation3], 4294967040 }
  0x3b   :  { %11418 = dma.done.wait [#allocation6], 12800  }
  0x3c   :  { %11419 = vsyncadd [#allocation6], 4294954496 }
  0x3d   :  { %11420 = dma.done.wait [#allocation9], 17280  }
  0x3e   :  { %11421 = vsyncadd [#allocation9], 4294950016  ;;  %v11435_v0 = vmov 0.0   ;;  %vm11436_vm0 = vmmov 0   ;;  %vm278_vm1 = vcmask 1043456   ;;  %vm196_vm2 = vcmask 64512  }
  0x3f   :  { %10155 = vmatprep.subr.mxu0 %v11435_v0  ;;  %10157 = vmatprep.mubr.msk.f32.mxu0 %vm11436_vm0, %v11435_v0  ;;  %v194_v1 = vld [vmem:[#allocation2] sm:$0xff]  ;;  %v11524_v2 = vld [vmem:[#allocation5] sm:$0xff]  ;;  %v11530_v4 = vld [vmem:[#allocation7 + $0x8] sm:$0xff]  ;;  %vm274_vm3 = vcmask 162816   ;;  %vm427_vm4 = vcmask 523264   ;;  %vm728_vm5 = vcmask 39936  }
  0x40   :  { %10160 = vmatprep.subr.mxu1 %v11435_v0  ;;  %10166 = vmatprep.mubr.msk.f32.mxu1 %vm11436_vm0, %v11435_v0  ;;  %v11526_v3 = vld [vmem:[#allocation7 + $0x10] sm:$0xf]  ;;  %v11535_v5 = vld [vmem:[#allocation7] sm:$0xff]  ;;  %v11544_v6 = vld [vmem:[#allocation7 + $0x78] sm:$0xf]  ;;  %vm991_vm6 = vcmask 1044480  }
  0x41   :  { %10156 = vmatpush3.msra.mxu0 %v194_v1  ;;  %10161 = vmatpush3.msk.msra.mxu1 %vm278_vm1, %v11526_v3  ;;  %v11547_v8 = vld [vmem:[#allocation7 + $0x70] sm:$0xff]  ;;  %v11554_v10 = vld [vmem:[#allocation7 + $0x68] sm:$0xff]  ;;  %v11563_v11 = vld [vmem:[#allocation7 + $0x18] ss:$0 sm:$0xff]  ;;  %vm1520_vm7 = vcmask 12288   ;;  %vm1792_vm8 = vcmask 1041408  }
  0x42   :  { %10158 = vmatmul.mubr.msk.f32.vlgmr.msra.gmra.mxu0 %vm196_vm2, %v11524_v2  ;;  %10162 = vmatprep.subr.mxu1 %v11435_v0  ;;  %v11566_v16 = vld [vmem:[#allocation7 + $0x80] ss:$0 sm:$0xff]  ;;  %v11568_v17 = vld [vmem:[#allocation7 + $0x58] sm:$0xff]  ;;  %v11573_v19 = vld [vmem:[#allocation7 + $0x50] sm:$0xff]  ;;  %vm1788_vm9 = vcmask 15360   ;;  %vm2095_vm10 = vcmask 517120  }
  0x43   :  { %10163 = vmatpush3.msra.mxu1 %v11530_v4  ;;  %10169 = vmatprep.subr.mxu0 %v11435_v0  ;;  %v11580_v22 = vld [vmem:[#allocation7 + $0x48] sm:$0xff]  ;;  %v11584_v24 = vld [vmem:[#allocation7 + $0x40] sm:$0xff]  ;;  %v11588_v25 = vld [vmem:[#allocation7 + $0x38] sm:$0xff]  ;;  %vm2252_vm11 = vcmask 8192   ;;  %vm4435_vm12 = vcmask 1040384   ;;  %vm4431_vm13 = vcmask 7168  }
  0x44   :  { %10164 = vmatprep.subr.mxu1 %v11435_v0  ;;  %10171 = vmatprep.mubr.msk.f32.mxu0 %vm11436_vm0, %v11435_v0  ;;  %v11595_v26 = vld [vmem:[#allocation7 + $0x30] sm:$0xff]  ;;  %v11601_v27 = vld [vmem:[#allocation7 + $0x28] sm:$0xff]  ;;  %v11607_v28 = vld [vmem:[#allocation7 + $0x20] sm:$0xff]  ;;  %vm5746_vm14 = vcmask 33792   ;;  %s11441_s12 = smov [#allocation11]  }
  0x45   :  { %10165 = vmatpush3.msra.mxu1 %v11535_v5  ;;  %v11614_v31 = vld [vmem:[#allocation7 + $0x60] ss:$0 sm:$0xff]  ;;  %v11620_v38 = vld [vmem:[#allocation7 + $0xb8] sm:$0xff]  ;;  %v11624_v40 = vld [vmem:[#allocation7 + $0xb0] sm:$0xff]  ;;  %s9208_s13 = sshll.u32 %s11441_s12, 4  ;;  %s9209_s13 = int_to_ptr.vmem [resolvable:$true] %s9208_s13 }
  0x46   :  { %10193 = vmatprep.subr.mxu1 %v11435_v0  ;;  %v11618_v37 = vld [vmem:[#allocation7 + $0xc0] sm:$0xff]  ;;  %v11628_v42 = vld [vmem:[#allocation7 + $0xa8] sm:$0xff]  ;;  %v11636_v44 = vld [vmem:[#allocation7 + $0x98] sm:$0xff] }
  0x47   :  { %v11632_v43 = vld [vmem:[#allocation7 + $0xa0] sm:$0xff]  ;;  %v11640_v45 = vld [vmem:[#allocation7 + $0x90] sm:$0xff]  ;;  %v11644_v46 = vld [vmem:[#allocation7 + $0x88] sm:$0xff] }
  0x48   :  { %v11654_v52 = vld [vmem:[#allocation7 + $0xc8] ss:$0 sm:$0xff] }
 0x102   :  { %v266_v7 = vpop.f32.mrf.mxu0 }
 0x103   :  { %10167 = vmatmul.mubr.msk.f32.vlgmr.msra.gmra.mxu1 %vm274_vm3, %v266_v7 }
 0x104   :  { %10194 = vmatpush3.msk.msra.mxu1 %vm278_vm1, %v11544_v6  ;;  %v10159_v9 = vpop.f32.mrf.mxu0  ;;  %10199 = vmatprep.mubr.msk.f32.mxu1 %vm11436_vm0, %v11435_v0 }
 0x105   :  { %10195 = vmatprep.subr.mxu1 %v11435_v0  ;;  %v11678_v9 = vld [vmem:[#allocation7 + $0xf8] sm:$0xff] }
 0x106   :  { %10196 = vmatpush3.msra.mxu1 %v11547_v8 }
 0x107   :  { %10197 = vmatprep.subr.mxu1 %v11435_v0 }
 0x108   :  { %10198 = vmatpush3.msra.mxu1 %v11554_v10 }
 0x109   :  { %10200 = vmatmul.mubr.msk.f32.vlgmr.msra.gmra.mxu1 %vm274_vm3, %v266_v7  ;;  %10202 = vmatprep.subr.mxu1 %v11435_v0  ;;  %v11674_v7 = vld [vmem:[#allocation7 + $0x100] sm:$0xff] }
 0x10a   :  { %10204 = vmatprep.mubr.msk.f32.mxu1 %vm11436_vm0, %v11435_v0 }
 0x1c3   :  { %v348_v12 = vpop.f32.mrf.mxu1 }
 0x1c4   :  { %v349_v13 = vadd.f32 %v11563_v11, %v348_v12  ;;  %v11682_v12 = vld [vmem:[#allocation7 + $0xf0] sm:$0xff] }
 0x1c5   :  { %v10168_v14 = vpop.f32.mrf.mxu1 }
 0x1c6   :  { %v352_v15 = vmax.f32 %v349_v13, 0.0  ;;  %v11686_v13 = vld [vmem:[#allocation7 + $0xe8] sm:$0xff]  ;;  %v11690_v14 = vld [vmem:[#allocation7 + $0xe0] sm:$0xff] }
 0x1c8   :  { %10170 = vmatpush3.msra.mxu0 %v352_v15  ;;  %v11694_v15 = vld [vmem:[#allocation7 + $0xd8] sm:$0xff] }
 0x1c9   :  { %v575_v18 = vpop.f32.mrf.mxu1  ;;  %10172 = vmatmul.mubr.msk.f32.vlgmr.msra.gmra.mxu0 %vm196_vm2, %v11524_v2  ;;  %10174 = vmatprep.subr.mxu0 %v11435_v0 }
 0x1ca   :  { %v576_v20 = vadd.f32 %v11566_v16, %v575_v18  ;;  %10175 = vmatpush3.msra.mxu0 %v11568_v17  ;;  %10190 = vmatprep.mubr.msk.f32.mxu0 %vm11436_vm0, %v11435_v0  ;;  %v11698_v18 = vld [vmem:[#allocation7 + $0xd0] sm:$0xff] }
 0x1cb   :  { %v10201_v21 = vpop.f32.mrf.mxu1  ;;  %10176 = vmatprep.subr.mxu0 %v11435_v0 }
 0x1cc   :  { %v579_v23 = vmax.f32 %v576_v20, 0.0  ;;  %10177 = vmatpush3.msra.mxu0 %v11573_v19 }
 0x1cd   :  { %10178 = vmatprep.subr.mxu0 %v11435_v0 }
 0x1ce   :  { %10203 = vmatpush3.msra.mxu1 %v579_v23  ;;  %10179 = vmatpush3.msra.mxu0 %v11580_v22  ;;  %v11710_v23 = vld [vmem:[#allocation7 + $0x198] sm:$0xff] }
 0x1cf   :  { %10180 = vmatprep.subr.mxu0 %v11435_v0  ;;  %10205 = vmatmul.mubr.msk.f32.vlgmr.msra.gmra.mxu1 %vm196_vm2, %v11524_v2 }
 0x1d0   :  { %10181 = vmatpush3.msra.mxu0 %v11584_v24  ;;  %10207 = vmatprep.subr.mxu1 %v11435_v0 }
 0x1d1   :  { %10182 = vmatprep.subr.mxu0 %v11435_v0  ;;  %10223 = vmatprep.mubr.msk.f32.mxu1 %vm11436_vm0, %v11435_v0 }
 0x1d2   :  { %10183 = vmatpush3.msra.mxu0 %v11588_v25  ;;  %10208 = vmatpush3.msra.mxu1 %v11618_v37 }
 0x1d3   :  { %10184 = vmatprep.subr.mxu0 %v11435_v0  ;;  %10209 = vmatprep.subr.mxu1 %v11435_v0 }
 0x1d4   :  { %10185 = vmatpush3.msra.mxu0 %v11595_v26  ;;  %10210 = vmatpush3.msra.mxu1 %v11620_v38 }
 0x1d5   :  { %10186 = vmatprep.subr.mxu0 %v11435_v0  ;;  %10211 = vmatprep.subr.mxu1 %v11435_v0 }
 0x1d6   :  { %10187 = vmatpush3.msra.mxu0 %v11601_v27  ;;  %10212 = vmatpush3.msra.mxu1 %v11624_v40 }
 0x1d7   :  { %10188 = vmatprep.subr.mxu0 %v11435_v0  ;;  %10213 = vmatprep.subr.mxu1 %v11435_v0 }
 0x1d8   :  { %10189 = vmatpush3.msra.mxu0 %v11607_v28  ;;  %10214 = vmatpush3.msra.mxu1 %v11628_v42 }
 0x1d9   :  { %10226 = vmatprep.subr.mxu0 %v11435_v0  ;;  %10215 = vmatprep.subr.mxu1 %v11435_v0 }
 0x1da   :  { %10216 = vmatpush3.msra.mxu1 %v11632_v43 }
 0x1db   :  { %10217 = vmatprep.subr.mxu1 %v11435_v0 }
 0x1dc   :  { %10218 = vmatpush3.msra.mxu1 %v11636_v44 }
 0x1dd   :  { %10219 = vmatprep.subr.mxu1 %v11435_v0 }
 0x1de   :  { %10220 = vmatpush3.msra.mxu1 %v11640_v45 }
 0x1df   :  { %10221 = vmatprep.subr.mxu1 %v11435_v0 }
 0x1e0   :  { %10222 = vmatpush3.msra.mxu1 %v11644_v46 }
 0x1e1   :  { %10241 = vmatprep.subr.mxu1 %v11435_v0 }
 0x289   :  { %v419_v29 = vpop.f32.mrf.mxu0 }
 0x28a   :  { %10191 = vmatmul.mubr.msk.f32.vlgmr.msra.gmra.mxu0 %vm427_vm4, %v419_v29 }
 0x28b   :  { %v10173_v30 = vpop.f32.mrf.mxu0  ;;  %10228 = vmatprep.mubr.msk.f32.mxu0 %vm11436_vm0, %v11435_v0 }
 0x28c   :  { %v11713_v30 = vld [vmem:[#allocation7 + $0x190] sm:$0xff] }
 0x28f   :  { %v646_v39 = vpop.f32.mrf.mxu1 }
 0x290   :  { %10224 = vmatmul.mubr.msk.f32.vlgmr.msra.gmra.mxu1 %vm427_vm4, %v646_v39  ;;  %v11735_v39 = vld [vmem:[#allocation7 + $0x168] sm:$0xff] }
 0x291   :  { %v10206_v41 = vpop.f32.mrf.mxu1  ;;  %10243 = vmatprep.mubr.msk.f32.mxu1 %vm11436_vm0, %v11435_v0 }
 0x292   :  { %v11739_v41 = vld [vmem:[#allocation7 + $0x160] sm:$0xff] }
 0x34a   :  { %v497_v32 = vpop.f32.mrf.mxu0 }
 0x34b   :  { %v498_v33 = vadd.f32 %v11614_v31, %v497_v32 }
 0x34c   :  { %v10192_v34 = vpop.f32.mrf.mxu0 }
 0x34d   :  { %v501_v35 = vmax.f32 %v498_v33, 0.0  ;;  %v11719_v33 = vld [vmem:[#allocation7 + $0x188] sm:$0xff]  ;;  %v11723_v34 = vld [vmem:[#allocation7 + $0x180] sm:$0xff] }
 0x34f   :  { %v729_v36 = vsel %vm728_vm5, %v501_v35, -inf }
 0x350   :  { %730 = vmax.xlane.f32.xlu0 %v729_v36  ;;  %v723_v53 = vpop.f32.mrf.mxu1  ;;  %v11731_v36 = vld [vmem:[#allocation7 + $0x170] sm:$0xff] }
 0x351   :  { %v724_v54 = vadd.f32 %v11654_v52, %v723_v53  ;;  %v11751_v53 = vld [vmem:[#allocation7 + $0x150] sm:$0xff] }
 0x352   :  { %v10225_v55 = vpop.f32.mrf.mxu1 }
 0x353   :  { %v727_v56 = vmax.f32 %v724_v54, 0.0  ;;  %v11757_v54 = vld [vmem:[#allocation7 + $0x148] sm:$0xff]  ;;  %v11763_v55 = vld [vmem:[#allocation7 + $0x140] sm:$0xff] }
 0x355   :  { %10227 = vmatpush3.msra.mxu0 %v727_v56  ;;  %v11767_v56 = vld [vmem:[#allocation7 + $0x138] sm:$0xff] }
 0x356   :  { %10231 = vmatprep.subr.mxu0 %v11435_v0 }
 0x3d9   :  { %v731_v47 = vpop.xlane.xlu0 %730 }
 0x3da   :  { %v732_v48 = vsub.f32 %v501_v35, %v731_v47  ;;  %v11727_v35 = vld [vmem:[#allocation7 + $0x178] sm:$0xff]  ;;  %v11748_v47 = vld [vmem:[#allocation7 + $0x110] ss:$0 sm:$0xff] }
 0x3dc   :  { %v733_v49 = vmul.f32 1.442695, %v732_v48 }
 0x3de   :  { %11211 = vpow2.f32 %v733_v49 }
 0x3eb   :  { %v11212_v50 = vpop.eup %11211 }
 0x3ec   :  { %v735_v51 = vsel %vm728_vm5, %v11212_v50, 0.0 }
 0x3ed   :  { %736 = vadd.xlane.f32.xlu0 %v735_v51 }
 0x476   :  { %v737_v57 = vpop.xlane.xlu0 %736 }
 0x477   :  { %11213 = vrcp.f32 %v737_v57  ;;  %v11771_v57 = vld [vmem:[#allocation7 + $0x130] sm:$0xff] }
 0x484   :  { %v11214_v58 = vpop.eup %11213 }
 0x485   :  { %v739_v59 = vmul.f32 %v11214_v58, %v11212_v50  ;;  %v11775_v58 = vld [vmem:[#allocation7 + $0x128] sm:$0xff] }
 0x487   :  { %740 = vxpose.xlu1.b32.start.end [1/1] (short) (narrow) %v739_v59, 8 }
 0x503   :  { %v756_v60 = vpop.trf.xlu1 }
 0x504   :  { %10229 = vmatmul.mubr.msk.f32.vlgmr.msra.gmra.mxu0 %vm196_vm2, %v756_v60 }
 0x505   :  { %10232 = vmatpush3.msra.mxu0 %v11524_v2  ;;  %10233 = vmatprep.mubr.msk.f32.mxu0 %vm11436_vm0, %v11435_v0  ;;  %v11672_v2 = vld [vmem:[#allocation7 + $0x108] sm:$0xff] }
 0x506   :  { %10236 = vmatprep.subr.mxu0 %v11435_v0 }
 0x508   :  { %10234 = vmatmul.mubr.msk.f32.vlgmr.msra.gmra.mxu0 %vm196_vm2, %v756_v60  ;;  %v11779_v60 = vld [vmem:[#allocation7 + $0x120] sm:$0xff] }
 0x509   :  { %10237 = vmatpush3.msra.mxu0 %v739_v59  ;;  %10238 = vmatprep.mubr.msk.f32.mxu0 %vm11436_vm0, %v11435_v0  ;;  %13228 = vst [vmem:[#allocation20_spill] sm:$0xff] %v11779_v60 }
 0x50a   :  { %10246 = vmatprep.subr.mxu0 %v11435_v0 }
 0x5c4   :  { %v841_v61 = vpop.f32.mrf.mxu0 }
 0x5c5   :  { %10242 = vmatpush3.msk.msra.mxu1 %vm991_vm6, %v841_v61 }
 0x5c6   :  { %v10230_v62 = vpop.f32.mrf.mxu0  ;;  %10265 = vmatprep.subr.mxu1 %v11435_v0 }
 0x5c7   :  { %v11783_v62 = vld [vmem:[#allocation7 + $0x118] sm:$0xff] }
 0x5c8   :  { %v911_v63 = vpop.f32.mrf.mxu0  ;;  %13229 = vst [vmem:[#allocation21_spill] sm:$0xff] %v11783_v62 }
 0x5c9   :  { %10239 = vmatmul.mubr.msk.f32.vlgmr.msra.gmra.mxu0 %vm196_vm2, %v911_v63  ;;  %v11789_v63 = vld [vmem:[#allocation7 + $0x1a0] ss:$0 sm:$0xff] }
 0x5ca   :  { %v10235_v1 = vpop.f32.mrf.mxu0  ;;  %10262 = vmatprep.mubr.msk.f32.mxu0 %vm11436_vm0, %v11435_v0  ;;  %10247 = vmatpush3.msra.mxu0 %v11672_v2  ;;  %13230 = vst [vmem:[#allocation22_spill] sm:$0xff] %v11789_v63 }
 0x5cb   :  { %10248 = vmatprep.subr.mxu0 %v11435_v0 }
 0x5cc   :  { %10249 = vmatpush3.msra.mxu0 %v11674_v7 }
 0x5cd   :  { %10250 = vmatprep.subr.mxu0 %v11435_v0 }
 0x5ce   :  { %10251 = vmatpush3.msra.mxu0 %v11678_v9 }
 0x5cf   :  { %10252 = vmatprep.subr.mxu0 %v11435_v0 }
 0x5d0   :  { %10253 = vmatpush3.msra.mxu0 %v11682_v12 }
 0x5d1   :  { %10254 = vmatprep.subr.mxu0 %v11435_v0 }
 0x5d2   :  { %10255 = vmatpush3.msra.mxu0 %v11686_v13 }
 0x5d3   :  { %10256 = vmatprep.subr.mxu0 %v11435_v0 }
 0x5d4   :  { %10257 = vmatpush3.msra.mxu0 %v11690_v14 }
 0x5d5   :  { %10258 = vmatprep.subr.mxu0 %v11435_v0 }
 0x5d6   :  { %10259 = vmatpush3.msra.mxu0 %v11694_v15 }
 0x5d7   :  { %10260 = vmatprep.subr.mxu0 %v11435_v0 }
 0x5d8   :  { %10261 = vmatpush3.msra.mxu0 %v11698_v18 }
 0x5d9   :  { %10289 = vmatprep.subr.mxu0 %v11435_v0 }
 0x689   :  { %v11704_v20 = vpop.f32.mrf.mxu0 }
 0x68a   :  { %10244 = vmatmul.mubr.msk.f32.vlgmr.msra.gmra.mxu1 %vm728_vm5, %v11704_v20 }
 0x68b   :  { %v10240_v21 = vpop.f32.mrf.mxu0  ;;  %10267 = vmatprep.mubr.msk.f32.mxu1 %vm11436_vm0, %v11435_v0 }
 0x74a   :  { %v1061_v29 = vpop.f32.mrf.mxu1 }
 0x74b   :  { %10263 = vmatmul.mubr.msk.f32.vlgmr.msra.gmra.mxu0 %vm427_vm4, %v1061_v29 }
 0x74c   :  { %10290 = vmatpush3.msra.mxu0 %v11710_v23  ;;  %v10245_v32 = vpop.f32.mrf.mxu1  ;;  %10305 = vmatprep.mubr.msk.f32.mxu0 %vm11436_vm0, %v11435_v0 }
 0x74d   :  { %10291 = vmatprep.subr.mxu0 %v11435_v0 }
 0x74e   :  { %10292 = vmatpush3.msra.mxu0 %v11713_v30 }
 0x74f   :  { %10293 = vmatprep.subr.mxu0 %v11435_v0 }
 0x750   :  { %10294 = vmatpush3.msra.mxu0 %v11719_v33 }
 0x751   :  { %10295 = vmatprep.subr.mxu0 %v11435_v0 }
 0x752   :  { %10296 = vmatpush3.msra.mxu0 %v11723_v34 }
 0x753   :  { %10297 = vmatprep.subr.mxu0 %v11435_v0 }
 0x754   :  { %10298 = vmatpush3.msra.mxu0 %v11727_v35 }
 0x755   :  { %10299 = vmatprep.subr.mxu0 %v11435_v0 }
 0x756   :  { %10300 = vmatpush3.msra.mxu0 %v11731_v36 }
 0x757   :  { %10301 = vmatprep.subr.mxu0 %v11435_v0 }
 0x758   :  { %10302 = vmatpush3.msra.mxu0 %v11735_v39 }
 0x759   :  { %10303 = vmatprep.subr.mxu0 %v11435_v0 }
 0x75a   :  { %10304 = vmatpush3.msra.mxu0 %v11739_v41 }
 0x75b   :  { %10306 = vmatmul.mubr.msk.f32.vlgmr.msra.gmra.mxu0 %vm427_vm4, %v1061_v29  ;;  %10332 = vmatprep.subr.mxu0 %v11435_v0 }
 0x75c   :  { %10334 = vmatprep.mubr.msk.f32.mxu0 %vm11436_vm0, %v11435_v0 }
 0x80b   :  { %v1138_v48 = vpop.f32.mrf.mxu0 }
 0x80c   :  { %v1139_v49 = vadd.f32 %v11748_v47, %v1138_v48  ;;  %v11797_v48 = vld [vmem:[#allocation7 + $0x1e0] sm:$0xff] }
 0x80d   :  { %v10264_v50 = vpop.f32.mrf.mxu0  ;;  %13231 = vst [vmem:[#allocation23_spill] sm:$0xff] %v11797_v48 }
 0x80e   :  { %v1142_v51 = vmax.f32 %v1139_v49, 0.0  ;;  %v11801_v49 = vld [vmem:[#allocation7 + $0x1d8] sm:$0xff]  ;;  %v11807_v50 = vld [vmem:[#allocation7 + $0x1d0] sm:$0xff] }
 0x80f   :  { %13232 = vst [vmem:[#allocation24_spill] sm:$0xff] %v11801_v49  ;;  %13233 = vst [vmem:[#allocation25_spill] sm:$0xff] %v11807_v50 }
 0x810   :  { %10266 = vmatpush3.msk.msra.mxu1 %vm991_vm6, %v1142_v51  ;;  %v11811_v51 = vld [vmem:[#allocation7 + $0x1c8] sm:$0xff] }
 0x811   :  { %10268 = vmatmul.mubr.msk.f32.vlgmr.msra.gmra.mxu1 %vm728_vm5, %v11704_v20  ;;  %10270 = vmatprep.subr.mxu1 %v11435_v0  ;;  %13234 = vst [vmem:[#allocation26_spill] sm:$0xff] %v11811_v51 }
 0x812   :  { %10271 = vmatpush3.msra.mxu1 %v11751_v53  ;;  %10286 = vmatprep.mubr.msk.f32.mxu1 %vm11436_vm0, %v11435_v0 }
 0x813   :  { %10272 = vmatprep.subr.mxu1 %v11435_v0 }
 0x814   :  { %10273 = vmatpush3.msra.mxu1 %v11757_v54 }
 0x815   :  { %10274 = vmatprep.subr.mxu1 %v11435_v0 }
 0x816   :  { %10275 = vmatpush3.msra.mxu1 %v11763_v55 }
 0x817   :  { %10276 = vmatprep.subr.mxu1 %v11435_v0 }
 0x818   :  { %10277 = vmatpush3.msra.mxu1 %v11767_v56 }
 0x819   :  { %10278 = vmatprep.subr.mxu1 %v11435_v0 }
 0x81a   :  { %10279 = vmatpush3.msra.mxu1 %v11771_v57 }
 0x81b   :  { %v1364_v59 = vpop.f32.mrf.mxu0  ;;  %10280 = vmatprep.subr.mxu1 %v11435_v0 }
 0x81c   :  { %10281 = vmatpush3.msra.mxu1 %v11775_v58  ;;  %v1365_v1 = vadd.f32 %v11789_v63, %v1364_v59  ;;  %v11815_v59 = vld [vmem:[#allocation7 + $0x1c0] sm:$0xff] }
 0x81d   :  { %v10307_v61 = vpop.f32.mrf.mxu0  ;;  %10282 = vmatprep.subr.mxu1 %v11435_v0  ;;  %13235 = vst [vmem:[#allocation27_spill] sm:$0xff] %v11815_v59 }
 0x81e   :  { %10283 = vmatpush3.msra.mxu1 %v11779_v60  ;;  %v1368_v21 = vmax.f32 %v1365_v1, 0.0  ;;  %v11821_v61 = vld [vmem:[#allocation7 + $0x1b8] sm:$0xff]  ;;  %v11825_v1 = vld [vmem:[#allocation7 + $0x1b0] sm:$0xff] }
 0x81f   :  { %10284 = vmatprep.subr.mxu1 %v11435_v0  ;;  %13236 = vst [vmem:[#allocation28_spill] sm:$0xff] %v11821_v61  ;;  %13237 = vst [vmem:[#allocation29_spill] sm:$0xff] %v11825_v1 }
 0x820   :  { %10285 = vmatpush3.msra.mxu1 %v11783_v62 }
 0x821   :  { %10308 = vmatprep.subr.mxu1 %v11435_v0 }
 0x8d1   :  { %v1212_v29 = vpop.f32.mrf.mxu1 }
 0x8d2   :  { %10287 = vmatmul.mubr.msk.f32.vlgmr.msra.gmra.mxu1 %vm427_vm4, %v1212_v29  ;;  %v11833_v29 = vld [vmem:[#allocation7 + $0x158] ss:$0 sm:$0xff] }
 0x8d3   :  { %10309 = vmatpush3.msk.msra.mxu1 %vm991_vm6, %v1368_v21  ;;  %v10269_v32 = vpop.f32.mrf.mxu1  ;;  %10310 = vmatprep.mubr.msk.f32.mxu1 %vm11436_vm0, %v11435_v0  ;;  %v11829_v21 = vld [vmem:[#allocation7 + $0x1a8] sm:$0xff]  ;;  %13239 = vst [vmem:[#allocation31_spill] sm:$0xff] %v11833_v29 }
 0x8d4   :  { %10313 = vmatprep.subr.mxu1 %v11435_v0  ;;  %13238 = vst [vmem:[#allocation30_spill] sm:$0xff] %v11829_v21 }
 0x8d6   :  { %10311 = vmatmul.mubr.msk.f32.vlgmr.msra.gmra.mxu1 %vm728_vm5, %v11704_v20 }
 0x8d7   :  { %10314 = vmatpush3.msra.mxu1 %v11797_v48  ;;  %10329 = vmatprep.mubr.msk.f32.mxu1 %vm11436_vm0, %v11435_v0 }
 0x8d8   :  { %10315 = vmatprep.subr.mxu1 %v11435_v0 }
 0x8d9   :  { %10316 = vmatpush3.msra.mxu1 %v11801_v49 }
 0x8da   :  { %10317 = vmatprep.subr.mxu1 %v11435_v0 }
 0x8db   :  { %10318 = vmatpush3.msra.mxu1 %v11807_v50 }
 0x8dc   :  { %10319 = vmatprep.subr.mxu1 %v11435_v0 }
 0x8dd   :  { %10320 = vmatpush3.msra.mxu1 %v11811_v51 }
 0x8de   :  { %10321 = vmatprep.subr.mxu1 %v11435_v0 }
 0x8df   :  { %10322 = vmatpush3.msra.mxu1 %v11815_v59 }
 0x8e0   :  { %10323 = vmatprep.subr.mxu1 %v11435_v0 }
 0x8e1   :  { %10324 = vmatpush3.msra.mxu1 %v11821_v61 }
 0x8e2   :  { %10325 = vmatprep.subr.mxu1 %v11435_v0 }
 0x8e3   :  { %10326 = vmatpush3.msra.mxu1 %v11825_v1 }
 0x8e4   :  { %10327 = vmatprep.subr.mxu1 %v11435_v0 }
 0x8e5   :  { %10328 = vmatpush3.msra.mxu1 %v11829_v21 }
 0x8e6   :  { %10347 = vmatprep.subr.mxu1 %v11435_v0 }
 0x992   :  { %v1289_v32 = vpop.f32.mrf.mxu1 }
 0x993   :  { %v1290_v59 = vadd.f32 %v11833_v29, %v1289_v32 }
 0x994   :  { %v10288_v61 = vpop.f32.mrf.mxu1 }
 0x995   :  { %v1293_v51 = vmax.f32 %v1290_v59, 0.0  ;;  %v11841_v61 = vld [vmem:[#allocation7 + $0x1e8] ss:$0 sm:$0xff] }
 0x996   :  { %v1438_v50 = vpop.f32.mrf.mxu1  ;;  %13240 = vst [vmem:[#allocation32_spill] sm:$0xff] %v11841_v61 }
 0x997   :  { %10330 = vmatmul.mubr.msk.f32.vlgmr.msra.gmra.mxu1 %vm427_vm4, %v1438_v50  ;;  %v1521_v1 = vsel %vm1520_vm7, %v1293_v51, -inf }
 0x998   :  { %1522 = vmax.xlane.f32.xlu1 %v1521_v1  ;;  %v10312_v49 = vpop.f32.mrf.mxu1  ;;  %10349 = vmatprep.mubr.msk.f32.mxu1 %vm11436_vm0, %v11435_v0 }
 0xa21   :  { %v1523_v21 = vpop.xlane.xlu1 %1522 }
 0xa22   :  { %v1524_v48 = vsub.f32 %v1293_v51, %v1523_v21  ;;  %v11862_v21 = vld [vmem:[#allocation7 + $0x228] sm:$0xff] }
 0xa23   :  { %13241 = vst [vmem:[#allocation33_spill] sm:$0xff] %v11862_v21 }
 0xa24   :  { %v1525_v63 = vmul.f32 1.442695, %v1524_v48 }
 0xa26   :  { %11215 = vpow2.f32 %v1525_v63 }
 0xa33   :  { %v11216_v62 = vpop.eup %11215 }
 0xa34   :  { %v1527_v32 = vsel %vm1520_vm7, %v11216_v62, 0.0 }
 0xa35   :  { %1528 = vadd.xlane.f32.xlu0 %v1527_v32  ;;  %v11868_v32 = vld [vmem:[#allocation7 + $0x218] sm:$0xff] }
 0xa36   :  { %13243 = vst [vmem:[#allocation35_spill] sm:$0xff] %v11868_v32 }
 0xa57   :  { %v1515_v59 = vpop.f32.mrf.mxu1 }
 0xa58   :  { %v1516_v50 = vadd.f32 %v11841_v61, %v1515_v59  ;;  %v11872_v59 = vld [vmem:[#allocation7 + $0x210] sm:$0xff] }
 0xa59   :  { %v10331_v29 = vpop.f32.mrf.mxu1  ;;  %13244 = vst [vmem:[#allocation36_spill] sm:$0xff] %v11872_v59 }
 0xa5a   :  { %v1519_v60 = vmax.f32 %v1516_v50, 0.0  ;;  %v11864_v29 = vld [vmem:[#allocation7 + $0x220] sm:$0xff]  ;;  %v11876_v50 = vld [vmem:[#allocation7 + $0x208] sm:$0xff] }
 0xa5b   :  { %13242 = vst [vmem:[#allocation34_spill] sm:$0xff] %v11864_v29  ;;  %13245 = vst [vmem:[#allocation37_spill] sm:$0xff] %v11876_v50 }
 0xa5c   :  { %10333 = vmatpush3.msk.msra.mxu0 %vm991_vm6, %v1519_v60 }
 0xa5d   :  { %10337 = vmatprep.subr.mxu0 %v11435_v0 }
 0xabe   :  { %v1529_v49 = vpop.xlane.xlu0 %1528 }
 0xabf   :  { %11217 = vrcp.f32 %v1529_v49  ;;  %v11880_v49 = vld [vmem:[#allocation7 + $0x200] sm:$0xff] }
 0xac0   :  { %13246 = vst [vmem:[#allocation38_spill] sm:$0xff] %v11880_v49 }
 0xacc   :  { %v11218_v51 = vpop.eup %11217 }
 0xacd   :  { %v1531_v48 = vmul.f32 %v11218_v51, %v11216_v62  ;;  %v11884_v51 = vld [vmem:[#allocation7 + $0x1f8] sm:$0xff] }
 0xace   :  { %13247 = vst [vmem:[#allocation39_spill] sm:$0xff] %v11884_v51 }
 0xacf   :  { %1532 = vxpose.xlu0.b32.start.end [1/1] (short) (narrow) %v1531_v48, 8 }
 0xb4b   :  { %v1548_v63 = vpop.trf.xlu0 }
 0xb4c   :  { %10335 = vmatmul.mubr.msk.f32.vlgmr.msra.gmra.mxu0 %vm728_vm5, %v1548_v63 }
 0xb4d   :  { %10338 = vmatpush3.msk.msra.mxu0 %vm991_vm6, %v11704_v20  ;;  %10339 = vmatprep.mubr.msk.f32.mxu0 %vm11436_vm0, %v11435_v0 }
 0xb4e   :  { %10342 = vmatprep.subr.mxu0 %v11435_v0 }
 0xb50   :  { %10340 = vmatmul.mubr.msk.f32.vlgmr.msra.gmra.mxu0 %vm728_vm5, %v1548_v63 }
 0xb51   :  { %10343 = vmatpush3.msk.msra.mxu0 %vm991_vm6, %v1531_v48  ;;  %10344 = vmatprep.mubr.msk.f32.mxu0 %vm11436_vm0, %v11435_v0 }
 0xb52   :  { %10352 = vmatprep.subr.mxu0 %v11435_v0 }
 0xc0c   :  { %v1636_v60 = vpop.f32.mrf.mxu0 }
 0xc0d   :  { %10348 = vmatpush3.msk.msra.mxu1 %vm1792_vm8, %v1636_v60  ;;  %v11893_v60 = vld [vmem:[#allocation7 + $0x1f0] sm:$0xff] }
 0xc0e   :  { %v10336_v62 = vpop.f32.mrf.mxu0  ;;  %10371 = vmatprep.subr.mxu1 %v11435_v0  ;;  %13248 = vst [vmem:[#allocation40_spill] sm:$0xff] %v11893_v60 }
 0xc10   :  { %v1708_v20 = vpop.f32.mrf.mxu0 }
 0xc11   :  { %10345 = vmatmul.mubr.msk.f32.vlgmr.msra.gmra.mxu0 %vm728_vm5, %v1708_v20 }
 0xc12   :  { %v10341_v1 = vpop.f32.mrf.mxu0  ;;  %10368 = vmatprep.mubr.msk.f32.mxu0 %vm11436_vm0, %v11435_v0  ;;  %10353 = vmatpush3.msra.mxu0 %v11862_v21 }
 0xc13   :  { %10354 = vmatprep.subr.mxu0 %v11435_v0  ;;  %v11900_v1 = vld [vmem:[#allocation7 + $0x230] ss:$0 sm:$0xff] }
 0xc14   :  { %10355 = vmatpush3.msra.mxu0 %v11864_v29  ;;  %13249 = vst [vmem:[#allocation41_spill] sm:$0xff] %v11900_v1 }
 0xc15   :  { %10356 = vmatprep.subr.mxu0 %v11435_v0 }
 0xc16   :  { %10357 = vmatpush3.msra.mxu0 %v11868_v32 }
 0xc17   :  { %10358 = vmatprep.subr.mxu0 %v11435_v0 }
 0xc18   :  { %10359 = vmatpush3.msra.mxu0 %v11872_v59  ;;  %v11903_v59 = vld [vmem:[#allocation7 + $0x270] sm:$0xff] }
 0xc19   :  { %10360 = vmatprep.subr.mxu0 %v11435_v0  ;;  %13250 = vst [vmem:[#allocation42_spill] sm:$0xff] %v11903_v59 }
 0xc1a   :  { %10361 = vmatpush3.msra.mxu0 %v11876_v50 }
 0xc1b   :  { %10362 = vmatprep.subr.mxu0 %v11435_v0 }
 0xc1c   :  { %10363 = vmatpush3.msra.mxu0 %v11880_v49 }
 0xc1d   :  { %10364 = vmatprep.subr.mxu0 %v11435_v0 }
 0xc1e   :  { %10365 = vmatpush3.msra.mxu0 %v11884_v51 }
 0xc1f   :  { %10366 = vmatprep.subr.mxu0 %v11435_v0 }
 0xc20   :  { %10367 = vmatpush3.msra.mxu0 %v11893_v60 }
 0xc21   :  { %10395 = vmatprep.subr.mxu0 %v11435_v0 }
 0xcd1   :  { %v1784_v48 = vpop.f32.mrf.mxu0 }
 0xcd2   :  { %10350 = vmatmul.mubr.msk.f32.vlgmr.msra.gmra.mxu1 %vm1788_vm9, %v1784_v48 }
 0xcd3   :  { %v10346_v63 = vpop.f32.mrf.mxu0  ;;  %10373 = vmatprep.mubr.msk.f32.mxu1 %vm11436_vm0, %v11435_v0 }
 0xd92   :  { %v1862_v62 = vpop.f32.mrf.mxu1 }
 0xd93   :  { %10369 = vmatmul.mubr.msk.f32.vlgmr.msra.gmra.mxu0 %vm427_vm4, %v1862_v62  ;;  %v11908_v62 = vld [vmem:[#allocation7 + $0x268] sm:$0xff] }
 0xd94   :  { %v10351_v20 = vpop.f32.mrf.mxu1  ;;  %10411 = vmatprep.mubr.msk.f32.mxu0 %vm11436_vm0, %v11435_v0  ;;  %13251 = vst [vmem:[#allocation43_spill] sm:$0xff] %v11908_v62 }
 0xd95   :  { %v11930_v20 = vld [vmem:[#allocation7 + $0x240] sm:$0xff] }
 0xd96   :  { %13256 = vst [vmem:[#allocation48_spill] sm:$0xff] %v11930_v20 }
 0xe53   :  { %v1939_v51 = vpop.f32.mrf.mxu0 }
 0xe54   :  { %v1940_v63 = vadd.f32 %v11900_v1, %v1939_v51  ;;  %v11914_v51 = vld [vmem:[#allocation7 + $0x260] sm:$0xff] }
 0xe55   :  { %v10370_v49 = vpop.f32.mrf.mxu0  ;;  %13252 = vst [vmem:[#allocation44_spill] sm:$0xff] %v11914_v51  ;;  %v11975_v1 = vld [vmem:[#allocation7 + $0x300] sm:$0xff] }
 0xe56   :  { %v1943_v50 = vmax.f32 %v1940_v63, 0.0  ;;  %v11922_v49 = vld [vmem:[#allocation7 + $0x250] sm:$0xff]  ;;  %v11936_v63 = vld [vmem:[#allocation7 + $0x238] sm:$0xff]  ;;  %13266 = vst [vmem:[#allocation58_spill] sm:$0xff] %v11975_v1 }
 0xe57   :  { %13254 = vst [vmem:[#allocation46_spill] sm:$0xff] %v11922_v49  ;;  %13257 = vst [vmem:[#allocation49_spill] sm:$0xff] %v11936_v63 }
 0xe58   :  { %10372 = vmatpush3.msk.msra.mxu1 %vm1792_vm8, %v1943_v50  ;;  %v11918_v50 = vld [vmem:[#allocation7 + $0x258] sm:$0xff] }
 0xe59   :  { %10374 = vmatmul.mubr.msk.f32.vlgmr.msra.gmra.mxu1 %vm1788_vm9, %v1784_v48  ;;  %10376 = vmatprep.subr.mxu1 %v11435_v0  ;;  %13253 = vst [vmem:[#allocation45_spill] sm:$0xff] %v11918_v50  ;;  %v11926_v48 = vld [vmem:[#allocation7 + $0x248] sm:$0xff] }
 0xe5a   :  { %10377 = vmatpush3.msra.mxu1 %v11903_v59  ;;  %10392 = vmatprep.mubr.msk.f32.mxu1 %vm11436_vm0, %v11435_v0  ;;  %13255 = vst [vmem:[#allocation47_spill] sm:$0xff] %v11926_v48  ;;  %v11970_v59 = vld [vmem:[#allocation7 + $0x280] sm:$0xff] }
 0xe5b   :  { %10378 = vmatprep.subr.mxu1 %v11435_v0  ;;  %13265 = vst [vmem:[#allocation57_spill] sm:$0xff] %v11970_v59 }
 0xe5c   :  { %10379 = vmatpush3.msra.mxu1 %v11908_v62  ;;  %v11967_v62 = vld [vmem:[#allocation7 + $0x288] sm:$0xff] }
 0xe5d   :  { %10380 = vmatprep.subr.mxu1 %v11435_v0  ;;  %13264 = vst [vmem:[#allocation56_spill] sm:$0xff] %v11967_v62 }
 0xe5e   :  { %10381 = vmatpush3.msra.mxu1 %v11914_v51  ;;  %v11963_v51 = vld [vmem:[#allocation7 + $0x290] sm:$0xff] }
 0xe5f   :  { %10382 = vmatprep.subr.mxu1 %v11435_v0  ;;  %13263 = vst [vmem:[#allocation55_spill] sm:$0xff] %v11963_v51 }
 0xe60   :  { %10383 = vmatpush3.msra.mxu1 %v11918_v50 }
 0xe61   :  { %10384 = vmatprep.subr.mxu1 %v11435_v0 }
 0xe62   :  { %10385 = vmatpush3.msra.mxu1 %v11922_v49 }
 0xe63   :  { %10386 = vmatprep.subr.mxu1 %v11435_v0 }
 0xe64   :  { %10387 = vmatpush3.msra.mxu1 %v11926_v48  ;;  %v11943_v48 = vld [vmem:[#allocation7 + $0x2b8] sm:$0xff] }
 0xe65   :  { %10388 = vmatprep.subr.mxu1 %v11435_v0  ;;  %13258 = vst [vmem:[#allocation50_spill] sm:$0xff] %v11943_v48  ;;  %10396 = vmatpush3.msra.mxu0 %v11943_v48 }
 0xe66   :  { %10389 = vmatpush3.msra.mxu1 %v11930_v20  ;;  %10397 = vmatprep.subr.mxu0 %v11435_v0  ;;  %v11947_v20 = vld [vmem:[#allocation7 + $0x2b0] sm:$0xff] }
 0xe67   :  { %10390 = vmatprep.subr.mxu1 %v11435_v0  ;;  %13259 = vst [vmem:[#allocation51_spill] sm:$0xff] %v11947_v20  ;;  %10398 = vmatpush3.msra.mxu0 %v11947_v20 }
 0xe68   :  { %10391 = vmatpush3.msra.mxu1 %v11936_v63  ;;  %10399 = vmatprep.subr.mxu0 %v11435_v0  ;;  %v11951_v63 = vld [vmem:[#allocation7 + $0x2a8] sm:$0xff] }
 0xe69   :  { %10414 = vmatprep.subr.mxu1 %v11435_v0  ;;  %13260 = vst [vmem:[#allocation52_spill] sm:$0xff] %v11951_v63  ;;  %10400 = vmatpush3.msra.mxu0 %v11951_v63 }
 0xe6a   :  { %10401 = vmatprep.subr.mxu0 %v11435_v0 }
 0xf19   :  { %v2013_v50 = vpop.f32.mrf.mxu1 }
 0xf1a   :  { %10393 = vmatmul.mubr.msk.f32.vlgmr.msra.gmra.mxu1 %vm427_vm4, %v2013_v50  ;;  %v11955_v50 = vld [vmem:[#allocation7 + $0x2a0] sm:$0xff] }
 0xf1b   :  { %v10375_v49 = vpop.f32.mrf.mxu1  ;;  %10430 = vmatprep.mubr.msk.f32.mxu1 %vm11436_vm0, %v11435_v0  ;;  %13261 = vst [vmem:[#allocation53_spill] sm:$0xff] %v11955_v50  ;;  %10402 = vmatpush3.msra.mxu0 %v11955_v50 }
 0xf1c   :  { %10403 = vmatprep.subr.mxu0 %v11435_v0  ;;  %v11959_v49 = vld [vmem:[#allocation7 + $0x298] sm:$0xff]  ;;  %10415 = vmatpush3.msra.mxu1 %v11975_v1 }
 0xf1d   :  { %13262 = vst [vmem:[#allocation54_spill] sm:$0xff] %v11959_v49  ;;  %10404 = vmatpush3.msra.mxu0 %v11959_v49  ;;  %v11977_v49 = vld [vmem:[#allocation7 + $0x2f8] sm:$0xff]  ;;  %10416 = vmatprep.subr.mxu1 %v11435_v0 }
 0xf1e   :  { %10405 = vmatprep.subr.mxu0 %v11435_v0  ;;  %13267 = vst [vmem:[#allocation59_spill] sm:$0xff] %v11977_v49  ;;  %10417 = vmatpush3.msra.mxu1 %v11977_v49  ;;  %v11993_v1 = vld [vmem:[#allocation7 + $0x2d8] sm:$0xff] }
 0xf1f   :  { %10406 = vmatpush3.msra.mxu0 %v11963_v51  ;;  %v11981_v51 = vld [vmem:[#allocation7 + $0x2f0] sm:$0xff]  ;;  %10418 = vmatprep.subr.mxu1 %v11435_v0  ;;  %13271 = vst [vmem:[#allocation63_spill] sm:$0xff] %v11993_v1  ;;  %v11999_v49 = vld [vmem:[#allocation7 + $0x278] ss:$0 sm:$0xff] }
 0xf20   :  { %10407 = vmatprep.subr.mxu0 %v11435_v0  ;;  %13268 = vst [vmem:[#allocation60_spill] sm:$0xff] %v11981_v51  ;;  %10419 = vmatpush3.msra.mxu1 %v11981_v51 }
 0xf21   :  { %10408 = vmatpush3.msra.mxu0 %v11967_v62  ;;  %v11985_v62 = vld [vmem:[#allocation7 + $0x2e8] sm:$0xff]  ;;  %10420 = vmatprep.subr.mxu1 %v11435_v0 }
 0xf22   :  { %10409 = vmatprep.subr.mxu0 %v11435_v0  ;;  %13269 = vst [vmem:[#allocation61_spill] sm:$0xff] %v11985_v62  ;;  %10421 = vmatpush3.msra.mxu1 %v11985_v62 }
 0xf23   :  { %10410 = vmatpush3.msra.mxu0 %v11970_v59  ;;  %v11989_v59 = vld [vmem:[#allocation7 + $0x2e0] sm:$0xff]  ;;  %10422 = vmatprep.subr.mxu1 %v11435_v0 }
 0xf24   :  { %10433 = vmatprep.subr.mxu0 %v11435_v0  ;;  %13270 = vst [vmem:[#allocation62_spill] sm:$0xff] %v11989_v59  ;;  %10423 = vmatpush3.msra.mxu1 %v11989_v59 }
 0xf25   :  { %10424 = vmatprep.subr.mxu1 %v11435_v0 }
 0xf26   :  { %10425 = vmatpush3.msra.mxu1 %v11993_v1  ;;  %v2267_v1 = vld [vmem:[#allocation2 + $0x8] sm:$0xff] }
 0xf27   :  { %10426 = vmatprep.subr.mxu1 %v11435_v0 }
 0xfda   :  { %v2090_v51 = vpop.f32.mrf.mxu1 }
 0xfdb   :  { %v2091_v50 = vadd.f32 %v11999_v49, %v2090_v51  ;;  %v12006_v51 = vld [vmem:[#allocation5 + $0x8] sm:$0xff] }
 0xfdc   :  { %v10394_v63 = vpop.f32.mrf.mxu1 }
 0xfdd   :  { %v2094_v62 = vmax.f32 %v2091_v50, 0.0 }
 0xfdf   :  { %v2096_v20 = vsel %vm2095_vm10, %v2094_v62, 0.0 }
 0xfe0   :  { %v2097_v48 = vrot.slane %v2096_v20, 4 }
 0xfe2   :  { %v2098_v60 = vadd.f32 %v2097_v48, %v2096_v20 }
 0xfe4   :  { %v2099_v32 = vrot.slane %v2098_v60, 2 }
 0xfe6   :  { %v2100_v59 = vadd.f32 %v2099_v32, %v2098_v60 }
 0xfe8   :  { %v2101_v29 = vrot.slane %v2100_v59, 1 }
 0xfea   :  { %v2102_v21 = vadd.f32 %v2101_v29, %v2100_v59 }
 0xfec   :  { %v2104_v61 = vmul.f32 0.5, %v2102_v21 }
 0xfee   :  { %10412 = vmatmul.mubr.msk.f32.vlgmr.msra.gmra.mxu0 %vm427_vm4, %v2104_v61 }
 0xfef   :  { %10434 = vmatpush3.msra.mxu0 %v2267_v1  ;;  %10435 = vmatprep.mubr.msk.f32.mxu0 %vm11436_vm0, %v11435_v0 }
 0xff0   :  { %10452 = vmatprep.subr.mxu0 %v11435_v0 }
 0xff2   :  { %10436 = vmatmul.mubr.msk.f32.vlgmr.msra.gmra.mxu0 %vm196_vm2, %v12006_v51 }
 0xff3   :  { %10453 = vmatpush3.msra.mxu0 %v11568_v17  ;;  %10468 = vmatprep.mubr.msk.f32.mxu0 %vm11436_vm0, %v11435_v0  ;;  %v12029_v17 = vld [vmem:[#allocation7 + $0x2d0] sm:$0xff] }
 0xff4   :  { %10454 = vmatprep.subr.mxu0 %v11435_v0  ;;  %10427 = vmatpush3.msra.mxu1 %v12029_v17 }
 0xff5   :  { %10455 = vmatpush3.msra.mxu0 %v11573_v19  ;;  %10428 = vmatprep.subr.mxu1 %v11435_v0  ;;  %v12033_v19 = vld [vmem:[#allocation7 + $0x2c8] sm:$0xff] }
 0xff6   :  { %10456 = vmatprep.subr.mxu0 %v11435_v0  ;;  %10429 = vmatpush3.msra.mxu1 %v12033_v19 }
 0xff7   :  { %10457 = vmatpush3.msra.mxu0 %v11580_v22  ;;  %10438 = vmatprep.subr.mxu1 %v11435_v0  ;;  %v12037_v22 = vld [vmem:[#allocation7 + $0x2c0] sm:$0x1] }
 0xff8   :  { %10458 = vmatprep.subr.mxu0 %v11435_v0 }
 0xff9   :  { %10459 = vmatpush3.msra.mxu0 %v11584_v24 }
 0xffa   :  { %10460 = vmatprep.subr.mxu0 %v11435_v0 }
 0xffb   :  { %10461 = vmatpush3.msra.mxu0 %v11588_v25 }
 0xffc   :  { %10462 = vmatprep.subr.mxu0 %v11435_v0 }
 0xffd   :  { %10463 = vmatpush3.msra.mxu0 %v11595_v26 }
 0xffe   :  { %10464 = vmatprep.subr.mxu0 %v11435_v0 }
 0xfff   :  { %10465 = vmatpush3.msra.mxu0 %v11601_v27 }
0x1000   :  { %10466 = vmatprep.subr.mxu0 %v11435_v0 }
0x1001   :  { %10467 = vmatpush3.msra.mxu0 %v11607_v28 }
0x1002   :  { %10504 = vmatprep.subr.mxu0 %v11435_v0 }
0x10ae   :  { %v2174_v24 = vpop.f32.mrf.mxu0 }
0x10af   :  { %v2175_v25 = vadd.f32 %v2174_v24, %v12037_v22 }
0x10b0   :  { %v10413_v26 = vpop.f32.mrf.mxu0 }
0x10b1   :  { %v2178_v27 = vmax.f32 %v2175_v25, 0.0 }
0x10b2   :  { %v2339_v28 = vpop.f32.mrf.mxu0 }
0x10b3   :  { %10431 = vmatmul.mubr.msk.f32.vlgmr.msra.gmra.mxu1 %vm427_vm4, %v2178_v27 }
0x10b4   :  { %10439 = vmatpush3.msk.msra.mxu1 %vm278_vm1, %v11526_v3  ;;  %v10437_v61 = vpop.f32.mrf.mxu0  ;;  %10444 = vmatprep.mubr.msk.f32.mxu1 %vm11436_vm0, %v11435_v0 }
0x10b5   :  { %10440 = vmatprep.subr.mxu1 %v11435_v0 }
0x10b6   :  { %10441 = vmatpush3.msra.mxu1 %v11530_v4 }
0x10b7   :  { %10442 = vmatprep.subr.mxu1 %v11435_v0 }
0x10b8   :  { %10443 = vmatpush3.msra.mxu1 %v11535_v5 }
0x10b9   :  { %10445 = vmatmul.mubr.msk.f32.vlgmr.msra.gmra.mxu1 %vm274_vm3, %v2339_v28  ;;  %10447 = vmatprep.subr.mxu1 %v11435_v0 }
0x10ba   :  { %10449 = vmatprep.mubr.msk.f32.mxu1 %vm11436_vm0, %v11435_v0 }
0x1173   :  { %v12053_v3 = vpop.f32.mrf.mxu1 }
0x1175   :  { %v10432_v21 = vpop.f32.mrf.mxu1 }
0x1176   :  { %v13281_v21 = vld [vmem:[#allocation29_spill] sm:$0xff] }
0x1179   :  { %v2412_v29 = vpop.f32.mrf.mxu1 }
0x117a   :  { %v2413_v32 = vadd.f32 %v11563_v11, %v2412_v29  ;;  %v13282_v29 = vld [vmem:[#allocation30_spill] sm:$0xff] }
0x117b   :  { %v10446_v59 = vpop.f32.mrf.mxu1 }
0x117c   :  { %v2416_v60 = vmax.f32 %v2413_v32, 0.0  ;;  %v13283_v59 = vld [vmem:[#allocation31_spill] sm:$0xff] }
0x117e   :  { %10448 = vmatpush3.msra.mxu1 %v2416_v60 }
0x117f   :  { %10450 = vmatmul.mubr.msk.f32.vlgmr.msra.gmra.mxu1 %vm196_vm2, %v12006_v51  ;;  %10471 = vmatprep.subr.mxu1 %v11435_v0 }
0x1180   :  { %10472 = vmatpush3.msk.msra.mxu1 %vm278_vm1, %v11544_v6  ;;  %10477 = vmatprep.mubr.msk.f32.mxu1 %vm11436_vm0, %v11435_v0 }
0x1181   :  { %10473 = vmatprep.subr.mxu1 %v11435_v0 }
0x1182   :  { %10474 = vmatpush3.msra.mxu1 %v11547_v8 }
0x1183   :  { %10475 = vmatprep.subr.mxu1 %v11435_v0 }
0x1184   :  { %10476 = vmatpush3.msra.mxu1 %v11554_v10 }
0x1185   :  { %10478 = vmatmul.mubr.msk.f32.vlgmr.msra.gmra.mxu1 %vm274_vm3, %v2339_v28  ;;  %10480 = vmatprep.subr.mxu1 %v11435_v0 }
0x1186   :  { %10482 = vmatprep.mubr.msk.f32.mxu1 %vm11436_vm0, %v11435_v0 }
0x123f   :  { %v2483_v4 = vpop.f32.mrf.mxu1 }
0x1240   :  { %10469 = vmatmul.mubr.msk.f32.vlgmr.msra.gmra.mxu0 %vm427_vm4, %v2483_v4 }
0x1241   :  { %v10451_v5 = vpop.f32.mrf.mxu1  ;;  %10506 = vmatprep.mubr.msk.f32.mxu0 %vm11436_vm0, %v11435_v0 }
0x1245   :  { %v2627_v6 = vpop.f32.mrf.mxu1 }
0x1246   :  { %v2628_v8 = vadd.f32 %v11566_v16, %v2627_v6 }
0x1247   :  { %v10479_v11 = vpop.f32.mrf.mxu1 }
0x1248   :  { %v2631_v1 = vmax.f32 %v2628_v8, 0.0 }
0x124a   :  { %10481 = vmatpush3.msra.mxu1 %v2631_v1 }
0x124b   :  { %10483 = vmatmul.mubr.msk.f32.vlgmr.msra.gmra.mxu1 %vm196_vm2, %v12006_v51  ;;  %10485 = vmatprep.subr.mxu1 %v11435_v0 }
0x124c   :  { %10486 = vmatpush3.msra.mxu1 %v11618_v37  ;;  %10501 = vmatprep.mubr.msk.f32.mxu1 %vm11436_vm0, %v11435_v0 }
0x124d   :  { %10487 = vmatprep.subr.mxu1 %v11435_v0 }
0x124e   :  { %10488 = vmatpush3.msra.mxu1 %v11620_v38 }
0x124f   :  { %10489 = vmatprep.subr.mxu1 %v11435_v0 }
0x1250   :  { %10490 = vmatpush3.msra.mxu1 %v11624_v40 }
0x1251   :  { %10491 = vmatprep.subr.mxu1 %v11435_v0 }
0x1252   :  { %10492 = vmatpush3.msra.mxu1 %v11628_v42 }
0x1253   :  { %10493 = vmatprep.subr.mxu1 %v11435_v0 }
0x1254   :  { %10494 = vmatpush3.msra.mxu1 %v11632_v43 }
0x1255   :  { %10495 = vmatprep.subr.mxu1 %v11435_v0 }
0x1256   :  { %10496 = vmatpush3.msra.mxu1 %v11636_v44 }
0x1257   :  { %10497 = vmatprep.subr.mxu1 %v11435_v0 }
0x1258   :  { %10498 = vmatpush3.msra.mxu1 %v11640_v45 }
0x1259   :  { %10499 = vmatprep.subr.mxu1 %v11435_v0 }
0x125a   :  { %10500 = vmatpush3.msra.mxu1 %v11644_v46 }
0x125b   :  { %10519 = vmatprep.subr.mxu1 %v11435_v0 }
0x1300   :  { %v2556_v10 = vpop.f32.mrf.mxu0 }
0x1301   :  { %v2557_v16 = vadd.f32 %v11614_v31, %v2556_v10 }
0x1302   :  { %v10470_v37 = vpop.f32.mrf.mxu0 }
0x1303   :  { %v2560_v38 = vmax.f32 %v2557_v16, 0.0  ;;  %v193_v37 = vld [vmem:[#allocation7 + $0x308] sm:$0x1] }
0x1305   :  { %v2776_v40 = vsel %vm728_vm5, %v2560_v38, -inf }
0x1306   :  { %2777 = vmax.xlane.f32.xlu1 %v2776_v40  ;;  %v2249_v40 = vadd.f32 %v12053_v3, %v193_v37  ;;  %v13305_v37 = vld [vmem:[#allocation45_spill] sm:$0xff] }
0x130b   :  { %v2698_v42 = vpop.f32.mrf.mxu1 }
0x130c   :  { %10502 = vmatmul.mubr.msk.f32.vlgmr.msra.gmra.mxu1 %vm427_vm4, %v2698_v42 }
0x130d   :  { %v10484_v43 = vpop.f32.mrf.mxu1  ;;  %10521 = vmatprep.mubr.msk.f32.mxu1 %vm11436_vm0, %v11435_v0 }
0x130e   :  { %v2253_v43 = vsel %vm2252_vm11, %v2249_v40, -inf }
0x138f   :  { %v2778_v44 = vpop.xlane.xlu1 %2777 }
0x1390   :  { %v2779_v45 = vsub.f32 %v2560_v38, %v2778_v44 }
0x1392   :  { %v2780_v46 = vmul.f32 1.442695, %v2779_v45  ;;  %v13284_v45 = vld [vmem:[#allocation32_spill] sm:$0xff] }
0x1394   :  { %11219 = vpow2.f32 %v2780_v46 }
0x13a1   :  { %v11220_v62 = vpop.eup %11219 }
0x13a2   :  { %v2782_v48 = vsel %vm728_vm5, %v11220_v62, 0.0 }
0x13a3   :  { %2783 = vadd.xlane.f32.xlu1 %v2782_v48 }
0x13cc   :  { %v2771_v31 = vpop.f32.mrf.mxu1 }
0x13cd   :  { %v2772_v20 = vadd.f32 %v11654_v52, %v2771_v31 }
0x13ce   :  { %v10503_v63 = vpop.f32.mrf.mxu1 }
0x13cf   :  { %v2775_v50 = vmax.f32 %v2772_v20, 0.0 }
0x13d1   :  { %10505 = vmatpush3.msra.mxu0 %v2775_v50 }
0x13d2   :  { %10509 = vmatprep.subr.mxu0 %v11435_v0 }
0x142c   :  { %v2784_v24 = vpop.xlane.xlu1 %2783 }
0x142d   :  { %11221 = vrcp.f32 %v2784_v24 }
0x143a   :  { %v11222_v25 = vpop.eup %11221 }
0x143b   :  { %v2786_v26 = vmul.f32 %v11222_v25, %v11220_v62 }
0x143d   :  { %2787 = vxpose.xlu1.b32.start.end [1/1] (short) (narrow) %v2786_v26, 8 }
0x14b9   :  { %v2803_v27 = vpop.trf.xlu1 }
0x14ba   :  { %10507 = vmatmul.mubr.msk.f32.vlgmr.msra.gmra.mxu0 %vm196_vm2, %v2803_v27 }
0x14bb   :  { %10510 = vmatpush3.msra.mxu0 %v12006_v51  ;;  %10511 = vmatprep.mubr.msk.f32.mxu0 %vm11436_vm0, %v11435_v0 }
0x14bc   :  { %10514 = vmatprep.subr.mxu0 %v11435_v0 }
0x14be   :  { %10512 = vmatmul.mubr.msk.f32.vlgmr.msra.gmra.mxu0 %vm196_vm2, %v2803_v27  ;;  %v11437_v27 = vmov 1  }
0x14bf   :  { %10515 = vmatpush3.msra.mxu0 %v2786_v26  ;;  %10516 = vmatprep.mubr.msk.f32.mxu0 %vm11436_vm0, %v11435_v0 }
0x14c0   :  { %10524 = vmatprep.subr.mxu0 %v11435_v0  ;;  %11208 = vset.pattern.permute.xlu0 %v11437_v27 }
0x157a   :  { %v2888_v52 = vpop.f32.mrf.mxu0 }
0x157b   :  { %10520 = vmatpush3.msk.msra.mxu1 %vm991_vm6, %v2888_v52  ;;  %v11438_v52 = vmov 0  }
0x157c   :  { %v10508_v28 = vpop.f32.mrf.mxu0  ;;  %10543 = vmatprep.subr.mxu1 %v11435_v0 }
0x157e   :  { %v2958_v51 = vpop.f32.mrf.mxu0 }
0x157f   :  { %10517 = vmatmul.mubr.msk.f32.vlgmr.msra.gmra.mxu0 %vm196_vm2, %v2958_v51 }
0x1580   :  { %v10513_v61 = vpop.f32.mrf.mxu0  ;;  %10525 = vmatpush3.msra.mxu0 %v11672_v2  ;;  %10540 = vmatprep.mubr.msk.f32.mxu0 %vm11436_vm0, %v11435_v0 }
0x1581   :  { %10526 = vmatprep.subr.mxu0 %v11435_v0 }
0x1582   :  { %10527 = vmatpush3.msra.mxu0 %v11674_v7 }
0x1583   :  { %10528 = vmatprep.subr.mxu0 %v11435_v0 }
0x1584   :  { %10529 = vmatpush3.msra.mxu0 %v11678_v9 }
0x1585   :  { %10530 = vmatprep.subr.mxu0 %v11435_v0 }
0x1586   :  { %10531 = vmatpush3.msra.mxu0 %v11682_v12 }
0x1587   :  { %10532 = vmatprep.subr.mxu0 %v11435_v0 }
0x1588   :  { %10533 = vmatpush3.msra.mxu0 %v11686_v13 }
0x1589   :  { %10534 = vmatprep.subr.mxu0 %v11435_v0 }
0x158a   :  { %10535 = vmatpush3.msra.mxu0 %v11690_v14 }
0x158b   :  { %10536 = vmatprep.subr.mxu0 %v11435_v0 }
0x158c   :  { %10537 = vmatpush3.msra.mxu0 %v11694_v15 }
0x158d   :  { %10538 = vmatprep.subr.mxu0 %v11435_v0 }
0x158e   :  { %10539 = vmatpush3.msra.mxu0 %v11698_v18 }
0x158f   :  { %10567 = vmatprep.subr.mxu0 %v11435_v0 }
0x163f   :  { %v12134_v2 = vpop.f32.mrf.mxu0 }
0x1640   :  { %10522 = vmatmul.mubr.msk.f32.vlgmr.msra.gmra.mxu1 %vm728_vm5, %v12134_v2 }
0x1641   :  { %v10518_v7 = vpop.f32.mrf.mxu0  ;;  %10545 = vmatprep.mubr.msk.f32.mxu1 %vm11436_vm0, %v11435_v0 }
0x1700   :  { %v3107_v9 = vpop.f32.mrf.mxu1 }
0x1701   :  { %10541 = vmatmul.mubr.msk.f32.vlgmr.msra.gmra.mxu0 %vm427_vm4, %v3107_v9 }
0x1702   :  { %10568 = vmatpush3.msra.mxu0 %v11710_v23  ;;  %v10523_v12 = vpop.f32.mrf.mxu1  ;;  %10583 = vmatprep.mubr.msk.f32.mxu0 %vm11436_vm0, %v11435_v0 }
0x1703   :  { %10569 = vmatprep.subr.mxu0 %v11435_v0 }
0x1704   :  { %10570 = vmatpush3.msra.mxu0 %v11713_v30 }
0x1705   :  { %10571 = vmatprep.subr.mxu0 %v11435_v0 }
0x1706   :  { %10572 = vmatpush3.msra.mxu0 %v11719_v33  ;;  %v13272_v33 = vld [vmem:[#allocation20_spill] sm:$0xff] }
0x1707   :  { %10573 = vmatprep.subr.mxu0 %v11435_v0 }
0x1708   :  { %10574 = vmatpush3.msra.mxu0 %v11723_v34  ;;  %v13273_v34 = vld [vmem:[#allocation21_spill] sm:$0xff] }
0x1709   :  { %10575 = vmatprep.subr.mxu0 %v11435_v0 }
0x170a   :  { %10576 = vmatpush3.msra.mxu0 %v11727_v35  ;;  %v13274_v35 = vld [vmem:[#allocation22_spill] sm:$0xff] }
0x170b   :  { %10577 = vmatprep.subr.mxu0 %v11435_v0 }
0x170c   :  { %10578 = vmatpush3.msra.mxu0 %v11731_v36 }
0x170d   :  { %10579 = vmatprep.subr.mxu0 %v11435_v0 }
0x170e   :  { %10580 = vmatpush3.msra.mxu0 %v11735_v39 }
0x170f   :  { %10581 = vmatprep.subr.mxu0 %v11435_v0 }
0x1710   :  { %10582 = vmatpush3.msra.mxu0 %v11739_v41 }
0x1711   :  { %10584 = vmatmul.mubr.msk.f32.vlgmr.msra.gmra.mxu0 %vm427_vm4, %v3107_v9  ;;  %10610 = vmatprep.subr.mxu0 %v11435_v0 }
0x1712   :  { %10612 = vmatprep.mubr.msk.f32.mxu0 %vm11436_vm0, %v11435_v0 }
0x17c1   :  { %v3180_v13 = vpop.f32.mrf.mxu0 }
0x17c2   :  { %v3181_v14 = vadd.f32 %v11748_v47, %v3180_v13 }
0x17c3   :  { %v10542_v15 = vpop.f32.mrf.mxu0 }
0x17c4   :  { %v3184_v18 = vmax.f32 %v3181_v14, 0.0 }
0x17c6   :  { %10544 = vmatpush3.msk.msra.mxu1 %vm991_vm6, %v3184_v18 }
0x17c7   :  { %10546 = vmatmul.mubr.msk.f32.vlgmr.msra.gmra.mxu1 %vm728_vm5, %v12134_v2  ;;  %10548 = vmatprep.subr.mxu1 %v11435_v0 }
0x17c8   :  { %10549 = vmatpush3.msra.mxu1 %v11751_v53  ;;  %10564 = vmatprep.mubr.msk.f32.mxu1 %vm11436_vm0, %v11435_v0  ;;  %v13275_v53 = vld [vmem:[#allocation23_spill] sm:$0xff] }
0x17c9   :  { %10550 = vmatprep.subr.mxu1 %v11435_v0 }
0x17ca   :  { %10551 = vmatpush3.msra.mxu1 %v11757_v54  ;;  %v13276_v54 = vld [vmem:[#allocation24_spill] sm:$0xff] }
0x17cb   :  { %10552 = vmatprep.subr.mxu1 %v11435_v0 }
0x17cc   :  { %10553 = vmatpush3.msra.mxu1 %v11763_v55  ;;  %v13277_v55 = vld [vmem:[#allocation25_spill] sm:$0xff] }
0x17cd   :  { %10554 = vmatprep.subr.mxu1 %v11435_v0 }
0x17ce   :  { %10555 = vmatpush3.msra.mxu1 %v11767_v56  ;;  %v13278_v56 = vld [vmem:[#allocation26_spill] sm:$0xff] }
0x17cf   :  { %10556 = vmatprep.subr.mxu1 %v11435_v0 }
0x17d0   :  { %10557 = vmatpush3.msra.mxu1 %v11771_v57  ;;  %v13279_v57 = vld [vmem:[#allocation27_spill] sm:$0xff] }
0x17d1   :  { %v3398_v23 = vpop.f32.mrf.mxu0  ;;  %10558 = vmatprep.subr.mxu1 %v11435_v0 }
0x17d2   :  { %10559 = vmatpush3.msra.mxu1 %v11775_v58  ;;  %v3399_v36 = vadd.f32 %v13274_v35, %v3398_v23  ;;  %v13280_v58 = vld [vmem:[#allocation28_spill] sm:$0xff]  ;;  %v13285_v23 = vld [vmem:[#allocation33_spill] sm:$0xff] }
0x17d3   :  { %v10585_v30 = vpop.f32.mrf.mxu0  ;;  %10560 = vmatprep.subr.mxu1 %v11435_v0  ;;  %v13289_v35 = vld [vmem:[#allocation37_spill] sm:$0xff] }
0x17d4   :  { %10561 = vmatpush3.msra.mxu1 %v13272_v33  ;;  %v3402_v39 = vmax.f32 %v3399_v36, 0.0  ;;  %v13286_v30 = vld [vmem:[#allocation34_spill] sm:$0xff]  ;;  %v13287_v33 = vld [vmem:[#allocation35_spill] sm:$0xff] }
0x17d5   :  { %10562 = vmatprep.subr.mxu1 %v11435_v0  ;;  %v13290_v36 = vld [vmem:[#allocation38_spill] sm:$0xff] }
0x17d6   :  { %10563 = vmatpush3.msra.mxu1 %v13273_v34  ;;  %v13288_v34 = vld [vmem:[#allocation36_spill] sm:$0xff] }
0x17d7   :  { %10586 = vmatprep.subr.mxu1 %v11435_v0 }
0x1887   :  { %v3254_v41 = vpop.f32.mrf.mxu1 }
0x1888   :  { %10565 = vmatmul.mubr.msk.f32.vlgmr.msra.gmra.mxu1 %vm427_vm4, %v3254_v41  ;;  %v13292_v41 = vld [vmem:[#allocation40_spill] sm:$0xff] }
0x1889   :  { %10587 = vmatpush3.msk.msra.mxu1 %vm991_vm6, %v3402_v39  ;;  %v10547_v47 = vpop.f32.mrf.mxu1  ;;  %10588 = vmatprep.mubr.msk.f32.mxu1 %vm11436_vm0, %v11435_v0  ;;  %v13291_v39 = vld [vmem:[#allocation39_spill] sm:$0xff] }
0x188a   :  { %10591 = vmatprep.subr.mxu1 %v11435_v0 }
0x188c   :  { %10589 = vmatmul.mubr.msk.f32.vlgmr.msra.gmra.mxu1 %vm728_vm5, %v12134_v2 }
0x188d   :  { %10592 = vmatpush3.msra.mxu1 %v13275_v53  ;;  %10607 = vmatprep.mubr.msk.f32.mxu1 %vm11436_vm0, %v11435_v0 }
0x188e   :  { %10593 = vmatprep.subr.mxu1 %v11435_v0 }
0x188f   :  { %10594 = vmatpush3.msra.mxu1 %v13276_v54 }
0x1890   :  { %10595 = vmatprep.subr.mxu1 %v11435_v0 }
0x1891   :  { %10596 = vmatpush3.msra.mxu1 %v13277_v55 }
0x1892   :  { %10597 = vmatprep.subr.mxu1 %v11435_v0 }
0x1893   :  { %10598 = vmatpush3.msra.mxu1 %v13278_v56  ;;  %v13293_v56 = vld [vmem:[#allocation50_spill] sm:$0xff] }
0x1894   :  { %10599 = vmatprep.subr.mxu1 %v11435_v0 }
0x1895   :  { %10600 = vmatpush3.msra.mxu1 %v13279_v57  ;;  %v13294_v57 = vld [vmem:[#allocation51_spill] sm:$0xff] }
0x1896   :  { %10601 = vmatprep.subr.mxu1 %v11435_v0 }
0x1897   :  { %10602 = vmatpush3.msra.mxu1 %v13280_v58  ;;  %v13295_v58 = vld [vmem:[#allocation52_spill] sm:$0xff] }
0x1898   :  { %10603 = vmatprep.subr.mxu1 %v11435_v0 }
0x1899   :  { %10604 = vmatpush3.msra.mxu1 %v13281_v21  ;;  %v13296_v21 = vld [vmem:[#allocation53_spill] sm:$0xff] }
0x189a   :  { %10605 = vmatprep.subr.mxu1 %v11435_v0 }
0x189b   :  { %10606 = vmatpush3.msra.mxu1 %v13282_v29  ;;  %v13297_v29 = vld [vmem:[#allocation54_spill] sm:$0xff] }
0x189c   :  { %10625 = vmatprep.subr.mxu1 %v11435_v0 }
0x1948   :  { %v3327_v32 = vpop.f32.mrf.mxu1 }
0x1949   :  { %v3328_v60 = vadd.f32 %v13283_v59, %v3327_v32  ;;  %v13298_v32 = vld [vmem:[#allocation55_spill] sm:$0xff]  ;;  %v13299_v59 = vld [vmem:[#allocation56_spill] sm:$0xff] }
0x194a   :  { %v10566_v4 = vpop.f32.mrf.mxu1 }
0x194b   :  { %v3331_v5 = vmax.f32 %v3328_v60, 0.0  ;;  %v13300_v60 = vld [vmem:[#allocation57_spill] sm:$0xff] }
0x194c   :  { %v3472_v6 = vpop.f32.mrf.mxu1 }
0x194d   :  { %10608 = vmatmul.mubr.msk.f32.vlgmr.msra.gmra.mxu1 %vm427_vm4, %v3472_v6  ;;  %v3550_v8 = vsel %vm1520_vm7, %v3331_v5, -inf }
0x194e   :  { %3551 = vmax.xlane.f32.xlu0 %v3550_v8  ;;  %v10590_v11 = vpop.f32.mrf.mxu1  ;;  %10627 = vmatprep.mubr.msk.f32.mxu1 %vm11436_vm0, %v11435_v0 }
0x19d7   :  { %v3552_v1 = vpop.xlane.xlu0 %3551 }
0x19d8   :  { %v3553_v10 = vsub.f32 %v3331_v5, %v3552_v1  ;;  %v13301_v5 = vld [vmem:[#allocation41_spill] sm:$0xff]  ;;  %v13302_v1 = vld [vmem:[#allocation42_spill] sm:$0xff] }
0x19da   :  { %v3554_v16 = vmul.f32 1.442695, %v3553_v10  ;;  %v13303_v10 = vld [vmem:[#allocation43_spill] sm:$0xff] }
0x19dc   :  { %11223 = vpow2.f32 %v3554_v16  ;;  %v13304_v16 = vld [vmem:[#allocation44_spill] sm:$0xff] }
0x19e9   :  { %v11224_v38 = vpop.eup %11223 }
0x19ea   :  { %v3556_v42 = vsel %vm1520_vm7, %v11224_v38, 0.0 }
0x19eb   :  { %3557 = vadd.xlane.f32.xlu0 %v3556_v42  ;;  %v13308_v42 = vld [vmem:[#allocation48_spill] sm:$0xff] }
0x19ef   :  { %2254 = vmax.xlane.f32.xlu0 %v2253_v43  ;;  %v13309_v43 = vld [vmem:[#allocation49_spill] sm:$0xff] }
0x1a0d   :  { %v3545_v44 = vpop.f32.mrf.mxu1 }
0x1a0e   :  { %v3546_v46 = vadd.f32 %v13284_v45, %v3545_v44 }
0x1a0f   :  { %v10609_v62 = vpop.f32.mrf.mxu1 }
0x1a10   :  { %v3549_v48 = vmax.f32 %v3546_v46, 0.0  ;;  %v13310_v46 = vld [vmem:[#allocation58_spill] sm:$0xff]  ;;  %v13311_v62 = vld [vmem:[#allocation59_spill] sm:$0xff] }
0x1a12   :  { %10611 = vmatpush3.msk.msra.mxu0 %vm991_vm6, %v3549_v48  ;;  %v13312_v48 = vld [vmem:[#allocation60_spill] sm:$0xff] }
0x1a13   :  { %10615 = vmatprep.subr.mxu0 %v11435_v0 }
0x1a74   :  { %v3558_v31 = vpop.xlane.xlu0 %3557 }
0x1a75   :  { %11225 = vrcp.f32 %v3558_v31  ;;  %v13313_v31 = vld [vmem:[#allocation61_spill] sm:$0xff] }
0x1a78   :  { %v2255_v63 = vpop.xlane.xlu0 %2254 }
0x1a79   :  { %v2256_v50 = vsub.f32 %v2249_v40, %v2255_v63  ;;  %v13307_v40 = vld [vmem:[#allocation47_spill] sm:$0xff] }
0x1a7b   :  { %v2257_v24 = vmul.f32 1.442695, %v2256_v50 }
0x1a7d   :  { %11227 = vpow2.f32 %v2257_v24 }
0x1a82   :  { %v11226_v20 = vpop.eup %11225 }
0x1a83   :  { %v3560_v3 = vmul.f32 %v11226_v20, %v11224_v38  ;;  %v13306_v38 = vld [vmem:[#allocation46_spill] sm:$0xff] }
0x1a84   :  { %v13314_v20 = vld [vmem:[#allocation62_spill] sm:$0xff] }
0x1a85   :  { %3561 = vxpose.xlu1.b32.start.end [1/1] (short) (narrow) %v3560_v3, 8 }
0x1a8a   :  { %v11228_v25 = vpop.eup %11227 }
0x1a8b   :  { %v2259_v26 = vsel %vm2252_vm11, %v11228_v25, 0.0 }
0x1aa3   :  { %11209 = vset.pattern.permute.xlu1 %v11438_v52 }
0x1aac   :  { %2260 = vadd.xlane.f32.xlu1 %v2259_v26  ;;  %v4284_v26 = vld [vmem:[%s13177_s2] sm:$0x1]  ;;  %s11440_s2 = smov [#allocation12]  }
0x1aad   :  { %s9217_s9 = sshll.u32 %s11440_s2, 4  ;;  %s9218_s9 = int_to_ptr.vmem [resolvable:$true] %s9217_s9 }
0x1aae   :  { %s11356_s14 = scalar_lea.vmem %s9218_s9, 8192  ;;  %p11361_p12 = scmp.lt.s32.totalorder %s9218_s9, %s9218_s9 }
0x1aaf   :  { %p11357_p11 = scmp.ne.s32.totalorder %s9218_s9, %s11356_s14  ;;  %p11362_p13 = scmp.lt.s32.totalorder %s11356_s14, %s11356_s14 }
0x1ab1   :  { %p11363_p0 = por %p11362_p13, %p11361_p12 }
0x1ab3   :  { %p11364_p1 = pnand %p11363_p0, %p11357_p11 }
0x1b01   :  { %v3577_v28 = vpop.trf.xlu1 }
0x1b02   :  { %10613 = vmatmul.mubr.msk.f32.vlgmr.msra.gmra.mxu0 %vm728_vm5, %v3577_v28 }
0x1b03   :  { %10616 = vmatpush3.msk.msra.mxu0 %vm991_vm6, %v12134_v2  ;;  %10617 = vmatprep.mubr.msk.f32.mxu0 %vm11436_vm0, %v11435_v0 }
0x1b04   :  { %10620 = vmatprep.subr.mxu0 %v11435_v0 }
0x1b06   :  { %10618 = vmatmul.mubr.msk.f32.vlgmr.msra.gmra.mxu0 %vm728_vm5, %v3577_v28 }
0x1b07   :  { %10621 = vmatpush3.msk.msra.mxu0 %vm991_vm6, %v3560_v3  ;;  %10622 = vmatprep.mubr.msk.f32.mxu0 %vm11436_vm0, %v11435_v0  ;;  %v13315_v3 = vld [vmem:[#allocation63_spill] sm:$0xff] }
0x1b08   :  { %10630 = vmatprep.subr.mxu0 %v11435_v0 }
0x1b35   :  { %v2261_v51 = vpop.xlane.xlu1 %2260 }
0x1b36   :  { %11229 = vlog2.f32 %v2261_v51 }
0x1b43   :  { %v11230_v61 = vpop.eup %11229 }
0x1b44   :  { %v2263_v7 = vmul.f32 0.6931472, %v11230_v61 }
0x1b46   :  { %v2264_v9 = vsub.f32 %v2256_v50, %v2263_v7 }
0x1b48   :  { %v4282_v2 = vmul.f32 1.442695, %v2264_v9  ;;  %2265 = vst.msk [vmem:[#allocation11] sm:$0x1] %vm2252_vm11, %v2264_v9 }
0x1b4a   :  { %11231 = vpow2.f32 %v4282_v2 }
0x1b57   :  { %v11232_v12 = vpop.eup %11231 }
0x1b58   :  { %4292 = vperm.xlu1 %11209, %v11232_v12   ;;  %4287 = vperm.xlu0 %11208, %v11232_v12  }
0x1bc2   :  { %v3665_v13 = vpop.f32.mrf.mxu0 }
0x1bc3   :  { %10626 = vmatpush3.msk.msra.mxu1 %vm1792_vm8, %v3665_v13 }
0x1bc4   :  { %v10614_v14 = vpop.f32.mrf.mxu0  ;;  %10649 = vmatprep.subr.mxu1 %v11435_v0 }
0x1bc6   :  { %v3737_v15 = vpop.f32.mrf.mxu0 }
0x1bc7   :  { %10623 = vmatmul.mubr.msk.f32.vlgmr.msra.gmra.mxu0 %vm728_vm5, %v3737_v15 }
0x1bc8   :  { %v10619_v18 = vpop.f32.mrf.mxu0  ;;  %10631 = vmatpush3.msra.mxu0 %v13285_v23  ;;  %10646 = vmatprep.mubr.msk.f32.mxu0 %vm11436_vm0, %v11435_v0  ;;  %v11439_v23 = vmov 1.0  }
0x1bc9   :  { %10632 = vmatprep.subr.mxu0 %v11435_v0  ;;  %v4305_v18 = vld [vmem:[#allocation8 + $0x38] sm:$0xff] }
0x1bca   :  { %10633 = vmatpush3.msra.mxu0 %v13286_v30  ;;  %v4304_v30 = vld [vmem:[#allocation8 + $0x30] sm:$0xff] }
0x1bcb   :  { %10634 = vmatprep.subr.mxu0 %v11435_v0 }
0x1bcc   :  { %10635 = vmatpush3.msra.mxu0 %v13287_v33  ;;  %v4303_v33 = vld [vmem:[#allocation8 + $0x28] sm:$0xff] }
0x1bcd   :  { %10636 = vmatprep.subr.mxu0 %v11435_v0 }
0x1bce   :  { %10637 = vmatpush3.msra.mxu0 %v13288_v34  ;;  %v4302_v34 = vld [vmem:[#allocation8 + $0x20] sm:$0xff] }
0x1bcf   :  { %10638 = vmatprep.subr.mxu0 %v11435_v0 }
0x1bd0   :  { %10639 = vmatpush3.msra.mxu0 %v13289_v35  ;;  %v4301_v35 = vld [vmem:[#allocation8 + $0x18] sm:$0xff] }
0x1bd1   :  { %10640 = vmatprep.subr.mxu0 %v11435_v0 }
0x1bd2   :  { %10641 = vmatpush3.msra.mxu0 %v13290_v36  ;;  %v4300_v36 = vld [vmem:[#allocation8 + $0x10] sm:$0xff] }
0x1bd3   :  { %10642 = vmatprep.subr.mxu0 %v11435_v0  ;;  %v4288_v27 = vpop.permute.xlu0 %4287  ;;  %v4293_v7 = vpop.permute.xlu1 %4292 }
0x1bd4   :  { %10643 = vmatpush3.msra.mxu0 %v13291_v39  ;;  %v4299_v39 = vld [vmem:[#allocation8 + $0x8] sm:$0xff] }
0x1bd5   :  { %10644 = vmatprep.subr.mxu0 %v11435_v0 }
0x1bd6   :  { %10645 = vmatpush3.msra.mxu0 %v13292_v41  ;;  %v4298_v41 = vld [vmem:[#allocation8] sm:$0xff] }
0x1bd7   :  { %10673 = vmatprep.subr.mxu0 %v11435_v0 }
0x1c87   :  { %v3813_v47 = vpop.f32.mrf.mxu0 }
0x1c88   :  { %10628 = vmatmul.mubr.msk.f32.vlgmr.msra.gmra.mxu1 %vm1788_vm9, %v3813_v47 }
0x1c89   :  { %v10624_v53 = vpop.f32.mrf.mxu0  ;;  %10651 = vmatprep.mubr.msk.f32.mxu1 %vm11436_vm0, %v11435_v0 }
0x1d48   :  { %v3889_v54 = vpop.f32.mrf.mxu1 }
0x1d49   :  { %10647 = vmatmul.mubr.msk.f32.vlgmr.msra.gmra.mxu0 %vm427_vm4, %v3889_v54 }
0x1d4a   :  { %v10629_v55 = vpop.f32.mrf.mxu1  ;;  %10674 = vmatpush3.msra.mxu0 %v13293_v56  ;;  %10689 = vmatprep.mubr.msk.f32.mxu0 %vm11436_vm0, %v11435_v0  ;;  %v4323_v56 = vld [vmem:[#allocation8 + $0xc8] sm:$0xff] }
0x1d4b   :  { %10675 = vmatprep.subr.mxu0 %v11435_v0 }
0x1d4c   :  { %10676 = vmatpush3.msra.mxu0 %v13294_v57 }
0x1d4d   :  { %10677 = vmatprep.subr.mxu0 %v11435_v0 }
0x1d4e   :  { %10678 = vmatpush3.msra.mxu0 %v13295_v58  ;;  %v4322_v58 = vld [vmem:[#allocation8 + $0xc0] sm:$0xff] }
0x1d4f   :  { %10679 = vmatprep.subr.mxu0 %v11435_v0 }
0x1d50   :  { %10680 = vmatpush3.msra.mxu0 %v13296_v21 }
0x1d51   :  { %10681 = vmatprep.subr.mxu0 %v11435_v0 }
0x1d52   :  { %10682 = vmatpush3.msra.mxu0 %v13297_v29  ;;  %v4321_v29 = vld [vmem:[#allocation8 + $0xb8] sm:$0xff] }
0x1d53   :  { %10683 = vmatprep.subr.mxu0 %v11435_v0 }
0x1d54   :  { %10684 = vmatpush3.msra.mxu0 %v13298_v32  ;;  %v4319_v32 = vld [vmem:[#allocation8 + $0xa8] sm:$0xff] }
0x1d55   :  { %10685 = vmatprep.subr.mxu0 %v11435_v0 }
0x1d56   :  { %10686 = vmatpush3.msra.mxu0 %v13299_v59  ;;  %v4318_v59 = vld [vmem:[#allocation8 + $0xa0] sm:$0xff] }
0x1d57   :  { %10687 = vmatprep.subr.mxu0 %v11435_v0 }
0x1d58   :  { %10688 = vmatpush3.msra.mxu0 %v13300_v60  ;;  %v4317_v60 = vld [vmem:[#allocation8 + $0x98] sm:$0xff] }
0x1d59   :  { %10711 = vmatprep.subr.mxu0 %v11435_v0 }
0x1e09   :  { %v3962_v4 = vpop.f32.mrf.mxu0 }
0x1e0a   :  { %v3963_v6 = vadd.f32 %v13301_v5, %v3962_v4  ;;  %v4316_v4 = vld [vmem:[#allocation8 + $0x90] sm:$0xff]  ;;  %v4306_v5 = vld [vmem:[#allocation8 + $0x40] sm:$0x1] }
0x1e0b   :  { %v10648_v8 = vpop.f32.mrf.mxu0 }
0x1e0c   :  { %v3966_v11 = vmax.f32 %v3963_v6, 0.0 }
0x1e0e   :  { %10650 = vmatpush3.msk.msra.mxu1 %vm1792_vm8, %v3966_v11 }
0x1e0f   :  { %10652 = vmatmul.mubr.msk.f32.vlgmr.msra.gmra.mxu1 %vm1788_vm9, %v3813_v47  ;;  %10654 = vmatprep.subr.mxu1 %v11435_v0 }
0x1e10   :  { %10655 = vmatpush3.msra.mxu1 %v13302_v1  ;;  %10670 = vmatprep.mubr.msk.f32.mxu1 %vm11436_vm0, %v11435_v0 }
0x1e11   :  { %10656 = vmatprep.subr.mxu1 %v11435_v0 }
0x1e12   :  { %10657 = vmatpush3.msra.mxu1 %v13303_v10 }
0x1e13   :  { %10658 = vmatprep.subr.mxu1 %v11435_v0 }
0x1e14   :  { %10659 = vmatpush3.msra.mxu1 %v13304_v16 }
0x1e15   :  { %10660 = vmatprep.subr.mxu1 %v11435_v0 }
0x1e16   :  { %10661 = vmatpush3.msra.mxu1 %v13305_v37  ;;  %v4314_v37 = vld [vmem:[#allocation8 + $0x80] sm:$0xff] }
0x1e17   :  { %10662 = vmatprep.subr.mxu1 %v11435_v0 }
0x1e18   :  { %10663 = vmatpush3.msra.mxu1 %v13306_v38  ;;  %v4313_v38 = vld [vmem:[#allocation8 + $0x78] sm:$0xff] }
0x1e19   :  { %10664 = vmatprep.subr.mxu1 %v11435_v0 }
0x1e1a   :  { %10665 = vmatpush3.msra.mxu1 %v13307_v40  ;;  %v4312_v40 = vld [vmem:[#allocation8 + $0x70] sm:$0xff] }
0x1e1b   :  { %10666 = vmatprep.subr.mxu1 %v11435_v0 }
0x1e1c   :  { %10667 = vmatpush3.msra.mxu1 %v13308_v42  ;;  %v4311_v42 = vld [vmem:[#allocation8 + $0x68] sm:$0xff] }
0x1e1d   :  { %10668 = vmatprep.subr.mxu1 %v11435_v0 }
0x1e1e   :  { %10669 = vmatpush3.msra.mxu1 %v13309_v43  ;;  %v4310_v43 = vld [vmem:[#allocation8 + $0x60] sm:$0xff] }
0x1e1f   :  { %10692 = vmatprep.subr.mxu1 %v11435_v0 }
0x1ecf   :  { %v4036_v44 = vpop.f32.mrf.mxu1 }
0x1ed0   :  { %10671 = vmatmul.mubr.msk.f32.vlgmr.msra.gmra.mxu1 %vm427_vm4, %v4036_v44  ;;  %v4309_v44 = vld [vmem:[#allocation8 + $0x58] sm:$0xff] }
0x1ed1   :  { %v10653_v45 = vpop.f32.mrf.mxu1  ;;  %10693 = vmatpush3.msra.mxu1 %v13310_v46  ;;  %10708 = vmatprep.mubr.msk.f32.mxu1 %vm11436_vm0, %v11435_v0  ;;  %v4308_v46 = vld [vmem:[#allocation8 + $0x50] sm:$0xff] }
0x1ed2   :  { %10694 = vmatprep.subr.mxu1 %v11435_v0 }
0x1ed3   :  { %10695 = vmatpush3.msra.mxu1 %v13311_v62 }
0x1ed4   :  { %10696 = vmatprep.subr.mxu1 %v11435_v0 }
0x1ed5   :  { %10697 = vmatpush3.msra.mxu1 %v13312_v48  ;;  %v4307_v48 = vld [vmem:[#allocation8 + $0x48] sm:$0xff] }
0x1ed6   :  { %10698 = vmatprep.subr.mxu1 %v11435_v0 }
0x1ed7   :  { %10699 = vmatpush3.msra.mxu1 %v13313_v31  ;;  %v4324_v31 = vld [vmem:[#allocation8 + $0xd0] sm:$0x1] }
0x1ed8   :  { %10700 = vmatprep.subr.mxu1 %v11435_v0 }
0x1ed9   :  { %10701 = vmatpush3.msra.mxu1 %v13314_v20 }
0x1eda   :  { %10702 = vmatprep.subr.mxu1 %v11435_v0 }
0x1edb   :  { %10703 = vmatpush3.msra.mxu1 %v13315_v3 }
0x1edc   :  { %10704 = vmatprep.subr.mxu1 %v11435_v0 }
0x1edd   :  { %10705 = vmatpush3.msra.mxu1 %v12029_v17  ;;  %v4290_v17 = vmul.f32 %v4288_v27, %v4284_v26 }
0x1ede   :  { %10706 = vmatprep.subr.mxu1 %v11435_v0 }
0x1edf   :  { %10707 = vmatpush3.msra.mxu1 %v12033_v19  ;;  %v4295_v19 = vadd.f32 %v4293_v7, %v4290_v17  ;;  %v4332_v17 = vld [vmem:[#allocation8 + $0x110] sm:$0xff] }
0x1ee0   :  { %10735 = vmatprep.subr.mxu1 %v11435_v0 }
0x1ee1   :  { %v4296_v13 = vmul.f32 %v4295_v19, %v4288_v27 }
0x1ee3   :  { %v4297_v15 = vadd.f32 %v4296_v13, %v4293_v7  ;;  %v4327_v13 = vld [vmem:[#allocation8 + $0xe8] sm:$0xff] }
0x1f90   :  { %v4109_v63 = vpop.f32.mrf.mxu1 }
0x1f91   :  { %v4110_v50 = vadd.f32 %v11999_v49, %v4109_v63 }
0x1f92   :  { %v10672_v24 = vpop.f32.mrf.mxu1 }
0x1f93   :  { %v4113_v25 = vmax.f32 %v4110_v50, 0.0  ;;  %v4315_v24 = vld [vmem:[#allocation8 + $0x88] sm:$0x1] }
0x1f95   :  { %v4114_v28 = vsel %vm2095_vm10, %v4113_v25, 0.0 }
0x1f96   :  { %v4115_v51 = vrot.slane %v4114_v28, 4 }
0x1f98   :  { %v4116_v61 = vadd.f32 %v4115_v51, %v4114_v28 }
0x1f9a   :  { %v4117_v9 = vrot.slane %v4116_v61, 2 }
0x1f9c   :  { %v4118_v2 = vadd.f32 %v4117_v9, %v4116_v61  ;;  %v4331_v61 = vld [vmem:[#allocation8 + $0x108] sm:$0xff]  ;;  %v4330_v9 = vld [vmem:[#allocation8 + $0x100] sm:$0xff] }
0x1f9e   :  { %v4119_v12 = vrot.slane %v4118_v2, 1 }
0x1fa0   :  { %v4120_v14 = vadd.f32 %v4119_v12, %v4118_v2  ;;  %v4329_v2 = vld [vmem:[#allocation8 + $0xf8] sm:$0xff]  ;;  %v4328_v12 = vld [vmem:[#allocation8 + $0xf0] sm:$0xff] }
0x1fa2   :  { %v4121_v49 = vmul.f32 0.5, %v4120_v14  ;;  %v4326_v14 = vld [vmem:[#allocation8 + $0xe0] sm:$0xff] }
0x1fa4   :  { %10690 = vmatmul.mubr.msk.f32.vlgmr.msra.gmra.mxu0 %vm427_vm4, %v4121_v49  ;;  %v4325_v49 = vld [vmem:[#allocation8 + $0xd8] sm:$0xff] }
0x1fa5   :  { %10712 = vmatpush3.msk.msra.mxu0 %vm4435_vm12, %v4297_v15  ;;  %10713 = vmatprep.mubr.msk.f32.mxu0 %vm11436_vm0, %v11435_v0 }
0x1fa6   :  { %10716 = vmatprep.subr.mxu0 %v11435_v0 }
0x1fa8   :  { %10714 = vmatmul.mubr.msk.f32.vlgmr.msra.gmra.mxu0 %vm4431_vm13, %v11439_v23 }
0x1fa9   :  { %10717 = vmatpush3.msra.mxu0 %v4305_v18  ;;  %10732 = vmatprep.mubr.msk.f32.mxu0 %vm11436_vm0, %v11435_v0 }
0x1faa   :  { %10718 = vmatprep.subr.mxu0 %v11435_v0 }
0x1fab   :  { %10719 = vmatpush3.msra.mxu0 %v4304_v30 }
0x1fac   :  { %10720 = vmatprep.subr.mxu0 %v11435_v0 }
0x1fad   :  { %10721 = vmatpush3.msra.mxu0 %v4303_v33 }
0x1fae   :  { %10722 = vmatprep.subr.mxu0 %v11435_v0 }
0x1faf   :  { %10723 = vmatpush3.msra.mxu0 %v4302_v34 }
0x1fb0   :  { %10724 = vmatprep.subr.mxu0 %v11435_v0 }
0x1fb1   :  { %10725 = vmatpush3.msra.mxu0 %v4301_v35  ;;  %v4333_v35 = vld [vmem:[#allocation8 + $0x118] sm:$0x1] }
0x1fb2   :  { %10726 = vmatprep.subr.mxu0 %v11435_v0 }
0x1fb3   :  { %10727 = vmatpush3.msra.mxu0 %v4300_v36 }
0x1fb4   :  { %10728 = vmatprep.subr.mxu0 %v11435_v0 }
0x1fb5   :  { %10729 = vmatpush3.msra.mxu0 %v4299_v39 }
0x1fb6   :  { %10730 = vmatprep.subr.mxu0 %v11435_v0 }
0x1fb7   :  { %10731 = vmatpush3.msra.mxu0 %v4298_v41 }
0x1fb8   :  { %10759 = vmatprep.subr.mxu0 %v11435_v0 }
0x2064   :  { %v4191_v47 = vpop.f32.mrf.mxu0 }
0x2065   :  { %v4192_v53 = vadd.f32 %v4191_v47, %v12037_v22  ;;  %v4320_v22 = vld [vmem:[#allocation8 + $0xb0] sm:$0xff] }
0x2066   :  { %v10691_v54 = vpop.f32.mrf.mxu0 }
0x2067   :  { %v4195_v55 = vmax.f32 %v4192_v53, 0.0 }
0x2068   :  { %v4505_v57 = vpop.f32.mrf.mxu0 }
0x2069   :  { %10709 = vmatmul.mubr.msk.f32.vlgmr.msra.gmra.mxu1 %vm427_vm4, %v4195_v55  ;;  %10733 = vmatmul.mubr.msk.f32.vlgmr.msra.gmra.mxu0 %vm427_vm4, %v4505_v57 }
0x206a   :  { %10760 = vmatpush3.msra.mxu0 %v4323_v56  ;;  %v10715_v21 = vpop.f32.mrf.mxu0  ;;  %10775 = vmatprep.mubr.msk.f32.mxu0 %vm11436_vm0, %v11435_v0 }
0x206b   :  { %10761 = vmatprep.subr.mxu0 %v11435_v0  ;;  %10737 = vmatprep.mubr.msk.f32.mxu1 %vm11436_vm0, %v11435_v0 }
0x206c   :  { %10762 = vmatpush3.msra.mxu0 %v4322_v58 }
0x206d   :  { %10763 = vmatprep.subr.mxu0 %v11435_v0 }
0x206e   :  { %10764 = vmatpush3.msra.mxu0 %v4321_v29  ;;  %v4341_v29 = vld [vmem:[#allocation8 + $0x158] sm:$0xff] }
0x206f   :  { %10765 = vmatprep.subr.mxu0 %v11435_v0 }
0x2070   :  { %10766 = vmatpush3.msra.mxu0 %v4320_v22  ;;  %v4340_v22 = vld [vmem:[#allocation8 + $0x150] sm:$0xff] }
0x2071   :  { %10767 = vmatprep.subr.mxu0 %v11435_v0 }
0x2072   :  { %10768 = vmatpush3.msra.mxu0 %v4319_v32  ;;  %v4339_v32 = vld [vmem:[#allocation8 + $0x148] sm:$0xff] }
0x2073   :  { %10769 = vmatprep.subr.mxu0 %v11435_v0 }
0x2074   :  { %10770 = vmatpush3.msra.mxu0 %v4318_v59  ;;  %v4338_v59 = vld [vmem:[#allocation8 + $0x140] sm:$0xff] }
0x2075   :  { %10771 = vmatprep.subr.mxu0 %v11435_v0 }
0x2076   :  { %10772 = vmatpush3.msra.mxu0 %v4317_v60  ;;  %v4337_v60 = vld [vmem:[#allocation8 + $0x138] sm:$0xff] }
0x2077   :  { %10773 = vmatprep.subr.mxu0 %v11435_v0 }
0x2078   :  { %10774 = vmatpush3.msra.mxu0 %v4316_v4  ;;  %v4336_v4 = vld [vmem:[#allocation8 + $0x130] sm:$0xff] }
0x2079   :  { %10776 = vmatmul.mubr.msk.f32.vlgmr.msra.gmra.mxu0 %vm427_vm4, %v4505_v57  ;;  %10802 = vmatprep.subr.mxu0 %v11435_v0 }
0x207a   :  { %10804 = vmatprep.mubr.msk.f32.mxu0 %vm11436_vm0, %v11435_v0 }
0x2129   :  { %v12360_v6 = vpop.f32.mrf.mxu1  ;;  %v4578_v8 = vpop.f32.mrf.mxu0 }
0x212a   :  { %v4579_v11 = vadd.f32 %v4578_v8, %v4306_v5  ;;  %v4335_v5 = vld [vmem:[#allocation8 + $0x128] sm:$0xff]  ;;  %v4334_v8 = vld [vmem:[#allocation8 + $0x120] sm:$0xff] }
0x212b   :  { %v10710_v1 = vpop.f32.mrf.mxu1  ;;  %v10734_v10 = vpop.f32.mrf.mxu0 }
0x212c   :  { %v4582_v16 = vmax.f32 %v4579_v11, 0.0  ;;  %v4359_v10 = vld [vmem:[#allocation8 + $0x1e8] sm:$0xff] }
0x212e   :  { %10736 = vmatpush3.msk.msra.mxu1 %vm4435_vm12, %v4582_v16 }
0x212f   :  { %10738 = vmatmul.mubr.msk.f32.vlgmr.msra.gmra.mxu1 %vm4431_vm13, %v11439_v23  ;;  %10740 = vmatprep.subr.mxu1 %v11435_v0 }
0x2130   :  { %10741 = vmatpush3.msra.mxu1 %v4314_v37  ;;  %10756 = vmatprep.mubr.msk.f32.mxu1 %vm11436_vm0, %v11435_v0  ;;  %v4358_v37 = vld [vmem:[#allocation8 + $0x1e0] sm:$0xff] }
0x2131   :  { %10742 = vmatprep.subr.mxu1 %v11435_v0 }
0x2132   :  { %10743 = vmatpush3.msra.mxu1 %v4313_v38 }
0x2133   :  { %10744 = vmatprep.subr.mxu1 %v11435_v0 }
0x2134   :  { %10745 = vmatpush3.msra.mxu1 %v4312_v40  ;;  %v4357_v40 = vld [vmem:[#allocation8 + $0x1d8] sm:$0xff] }
0x2135   :  { %10746 = vmatprep.subr.mxu1 %v11435_v0 }
0x2136   :  { %10747 = vmatpush3.msra.mxu1 %v4311_v42  ;;  %v4356_v42 = vld [vmem:[#allocation8 + $0x1d0] sm:$0xff] }
0x2137   :  { %10748 = vmatprep.subr.mxu1 %v11435_v0 }
0x2138   :  { %10749 = vmatpush3.msra.mxu1 %v4310_v43  ;;  %v4355_v43 = vld [vmem:[#allocation8 + $0x1c8] sm:$0xff] }
0x2139   :  { %v4796_v45 = vpop.f32.mrf.mxu0  ;;  %10750 = vmatprep.subr.mxu1 %v11435_v0 }
0x213a   :  { %10751 = vmatpush3.msra.mxu1 %v4309_v44  ;;  %v4797_v20 = vadd.f32 %v4796_v45, %v4324_v31  ;;  %v4354_v44 = vld [vmem:[#allocation8 + $0x1c0] sm:$0xff]  ;;  %v4353_v45 = vld [vmem:[#allocation8 + $0x1b8] sm:$0xff] }
0x213b   :  { %v10777_v62 = vpop.f32.mrf.mxu0  ;;  %10752 = vmatprep.subr.mxu1 %v11435_v0 }
0x213c   :  { %10753 = vmatpush3.msra.mxu1 %v4308_v46  ;;  %v4800_v3 = vmax.f32 %v4797_v20, 0.0  ;;  %v4352_v46 = vld [vmem:[#allocation8 + $0x1b0] sm:$0xff]  ;;  %v9350_v62 = vld [vmem:[#allocation8 + $0x160] ss:$0 sm:$0xff] }
0x213d   :  { %10754 = vmatprep.subr.mxu1 %v11435_v0 }
0x213e   :  { %10755 = vmatpush3.msra.mxu1 %v4307_v48 }
0x213f   :  { %10778 = vmatprep.subr.mxu1 %v11435_v0 }
0x21ef   :  { %v4652_v63 = vpop.f32.mrf.mxu1 }
0x21f0   :  { %10757 = vmatmul.mubr.msk.f32.vlgmr.msra.gmra.mxu1 %vm427_vm4, %v4652_v63  ;;  %v4350_v63 = vld [vmem:[#allocation8 + $0x1a0] sm:$0xff] }
0x21f1   :  { %10779 = vmatpush3.msk.msra.mxu1 %vm4435_vm12, %v4800_v3  ;;  %v10739_v50 = vpop.f32.mrf.mxu1  ;;  %10780 = vmatprep.mubr.msk.f32.mxu1 %vm11436_vm0, %v11435_v0 }
0x21f2   :  { %10783 = vmatprep.subr.mxu1 %v11435_v0  ;;  %v4349_v50 = vld [vmem:[#allocation8 + $0x198] sm:$0xff] }
0x21f4   :  { %10781 = vmatmul.mubr.msk.f32.vlgmr.msra.gmra.mxu1 %vm4431_vm13, %v11439_v23 }
0x21f5   :  { %10799 = vmatprep.mubr.msk.f32.mxu1 %vm11436_vm0, %v11435_v0  ;;  %10784 = vmatpush3.msra.mxu1 %v4332_v17 }
0x21f6   :  { %10785 = vmatprep.subr.mxu1 %v11435_v0 }
0x21f7   :  { %10786 = vmatpush3.msra.mxu1 %v4331_v61  ;;  %v4343_v61 = vld [vmem:[#allocation8 + $0x168] sm:$0xff] }
0x21f8   :  { %10787 = vmatprep.subr.mxu1 %v11435_v0 }
0x21f9   :  { %10788 = vmatpush3.msra.mxu1 %v4330_v9 }
0x21fa   :  { %10789 = vmatprep.subr.mxu1 %v11435_v0 }
0x21fb   :  { %10790 = vmatpush3.msra.mxu1 %v4329_v2 }
0x21fc   :  { %10791 = vmatprep.subr.mxu1 %v11435_v0 }
0x21fd   :  { %10792 = vmatpush3.msra.mxu1 %v4328_v12 }
0x21fe   :  { %10793 = vmatprep.subr.mxu1 %v11435_v0 }
0x21ff   :  { %10794 = vmatpush3.msra.mxu1 %v4327_v13  ;;  %v4368_v13 = vld [vmem:[#allocation8 + $0x230] sm:$0xff] }
0x2200   :  { %10795 = vmatprep.subr.mxu1 %v11435_v0 }
0x2201   :  { %10796 = vmatpush3.msra.mxu1 %v4326_v14  ;;  %v4367_v14 = vld [vmem:[#allocation8 + $0x228] sm:$0xff] }
0x2202   :  { %10797 = vmatprep.subr.mxu1 %v11435_v0 }
0x2203   :  { %10798 = vmatpush3.msra.mxu1 %v4325_v49  ;;  %v4366_v49 = vld [vmem:[#allocation8 + $0x220] sm:$0xff] }
0x2204   :  { %10817 = vmatprep.subr.mxu1 %v11435_v0 }
0x22b0   :  { %v4725_v25 = vpop.f32.mrf.mxu1 }
0x22b1   :  { %v4726_v26 = vadd.f32 %v4725_v25, %v4315_v24  ;;  %v4348_v24 = vld [vmem:[#allocation8 + $0x190] sm:$0xff]  ;;  %v4347_v25 = vld [vmem:[#allocation8 + $0x188] sm:$0xff] }
0x22b2   :  { %v10758_v27 = vpop.f32.mrf.mxu1 }
0x22b3   :  { %v4729_v28 = vmax.f32 %v4726_v26, 0.0  ;;  %v4346_v26 = vld [vmem:[#allocation8 + $0x180] sm:$0xff]  ;;  %v4345_v27 = vld [vmem:[#allocation8 + $0x178] sm:$0xff] }
0x22b4   :  { %v4870_v7 = vpop.f32.mrf.mxu1 }
0x22b5   :  { %v4948_v51 = vsel %vm2252_vm11, %v4729_v28, -inf  ;;  %10800 = vmatmul.mubr.msk.f32.vlgmr.msra.gmra.mxu1 %vm427_vm4, %v4870_v7  ;;  %v9356_v7 = vld [vmem:[#allocation8 + $0x1f0] ss:$0 sm:$0xff] }
0x22b6   :  { %4949 = vmax.xlane.f32.xlu0 %v4948_v51  ;;  %v10782_v19 = vpop.f32.mrf.mxu1  ;;  %10819 = vmatprep.mubr.msk.f32.mxu1 %vm11436_vm0, %v11435_v0  ;;  %v4344_v51 = vld [vmem:[#allocation8 + $0x170] sm:$0xff] }
0x233f   :  { %v4950_v15 = vpop.xlane.xlu0 %4949 }
0x2340   :  { %v4951_v18 = vsub.f32 %v4729_v28, %v4950_v15  ;;  %v4365_v15 = vld [vmem:[#allocation8 + $0x218] sm:$0xff] }
0x2342   :  { %v4952_v30 = vmul.f32 1.442695, %v4951_v18  ;;  %v4364_v18 = vld [vmem:[#allocation8 + $0x210] sm:$0xff] }
0x2344   :  { %11233 = vpow2.f32 %v4952_v30  ;;  %v4363_v30 = vld [vmem:[#allocation8 + $0x208] sm:$0xff] }
0x2351   :  { %v11234_v33 = vpop.eup %11233 }
0x2352   :  { %v4954_v34 = vsel %vm2252_vm11, %v11234_v33, 0.0 }
0x2353   :  { %4955 = vadd.xlane.f32.xlu1 %v4954_v34  ;;  %v4361_v34 = vld [vmem:[#allocation8 + $0x1f8] sm:$0xff] }
0x2375   :  { %v4943_v36 = vpop.f32.mrf.mxu1 }
0x2376   :  { %v4944_v39 = vadd.f32 %v4943_v36, %v4333_v35  ;;  %v9354_v35 = vld [vmem:[#allocation8 + $0x1a8] ss:$0 sm:$0xff] }
0x2377   :  { %v10801_v41 = vpop.f32.mrf.mxu1 }
0x2378   :  { %v4947_v47 = vmax.f32 %v4944_v39, 0.0 }
0x237a   :  { %10803 = vmatpush3.msk.msra.mxu0 %vm4435_vm12, %v4947_v47 }
0x237b   :  { %10807 = vmatprep.subr.mxu0 %v11435_v0 }
0x23dc   :  { %v4956_v53 = vpop.xlane.xlu1 %4955 }
0x23dd   :  { %11235 = vrcp.f32 %v4956_v53 }
0x23ea   :  { %v11236_v54 = vpop.eup %11235 }
0x23eb   :  { %v4958_v55 = vmul.f32 %v11236_v54, %v11234_v33  ;;  %v4362_v33 = vld [vmem:[#allocation8 + $0x200] sm:$0xff] }
0x23ed   :  { %4959 = vxpose.xlu0.b32.start.end [1/1] (short) (narrow) %v4958_v55, 8 }
0x2469   :  { %v4975_v56 = vpop.trf.xlu0 }
0x246a   :  { %10805 = vmatmul.mubr.msk.f32.vlgmr.msra.gmra.mxu0 %vm4431_vm13, %v4975_v56 }
0x246b   :  { %10808 = vmatpush3.msk.msra.mxu0 %vm4435_vm12, %v11439_v23  ;;  %10809 = vmatprep.mubr.msk.f32.mxu0 %vm11436_vm0, %v11435_v0 }
0x246c   :  { %10812 = vmatprep.subr.mxu0 %v11435_v0 }
0x246e   :  { %10810 = vmatmul.mubr.msk.f32.vlgmr.msra.gmra.mxu0 %vm4431_vm13, %v4975_v56 }
0x246f   :  { %10813 = vmatpush3.msk.msra.mxu0 %vm4435_vm12, %v4958_v55  ;;  %10814 = vmatprep.mubr.msk.f32.mxu0 %vm11436_vm0, %v11435_v0 }
0x2470   :  { %10822 = vmatprep.subr.mxu0 %v11435_v0 }
0x252a   :  { %v5063_v57 = vpop.f32.mrf.mxu0 }
0x252b   :  { %10818 = vmatpush3.msk.msra.mxu1 %vm1792_vm8, %v5063_v57 }
0x252c   :  { %v10806_v58 = vpop.f32.mrf.mxu0  ;;  %10841 = vmatprep.subr.mxu1 %v11435_v0 }
0x252e   :  { %v5135_v23 = vpop.f32.mrf.mxu0 }
0x252f   :  { %10815 = vmatmul.mubr.msk.f32.vlgmr.msra.gmra.mxu0 %vm4431_vm13, %v5135_v23 }
0x2530   :  { %v10811_v21 = vpop.f32.mrf.mxu0  ;;  %10838 = vmatprep.mubr.msk.f32.mxu0 %vm11436_vm0, %v11435_v0  ;;  %10823 = vmatpush3.msra.mxu0 %v4341_v29  ;;  %v9360_v29 = vld [vmem:[#allocation8 + $0x238] ss:$0 sm:$0xff] }
0x2531   :  { %10824 = vmatprep.subr.mxu0 %v11435_v0 }
0x2532   :  { %10825 = vmatpush3.msra.mxu0 %v4340_v22 }
0x2533   :  { %10826 = vmatprep.subr.mxu0 %v11435_v0 }
0x2534   :  { %10827 = vmatpush3.msra.mxu0 %v4339_v32 }
0x2535   :  { %10828 = vmatprep.subr.mxu0 %v11435_v0 }
0x2536   :  { %10829 = vmatpush3.msra.mxu0 %v4338_v59 }
0x2537   :  { %10830 = vmatprep.subr.mxu0 %v11435_v0 }
0x2538   :  { %10831 = vmatpush3.msra.mxu0 %v4337_v60 }
0x2539   :  { %10832 = vmatprep.subr.mxu0 %v11435_v0 }
0x253a   :  { %10833 = vmatpush3.msra.mxu0 %v4336_v4 }
0x253b   :  { %10834 = vmatprep.subr.mxu0 %v11435_v0 }
0x253c   :  { %10835 = vmatpush3.msra.mxu0 %v4335_v5 }
0x253d   :  { %10836 = vmatprep.subr.mxu0 %v11435_v0 }
0x253e   :  { %10837 = vmatpush3.msra.mxu0 %v4334_v8 }
0x253f   :  { %10865 = vmatprep.subr.mxu0 %v11435_v0 }
0x25ef   :  { %v12424_v11 = vpop.f32.mrf.mxu0 }
0x25f0   :  { %10820 = vmatmul.mubr.msk.f32.vlgmr.msra.gmra.mxu1 %vm1788_vm9, %v12424_v11 }
0x25f1   :  { %v10816_v1 = vpop.f32.mrf.mxu0  ;;  %10843 = vmatprep.mubr.msk.f32.mxu1 %vm11436_vm0, %v11435_v0 }
0x26b0   :  { %v5287_v16 = vpop.f32.mrf.mxu1 }
0x26b1   :  { %10839 = vmatmul.mubr.msk.f32.vlgmr.msra.gmra.mxu0 %vm427_vm4, %v5287_v16 }
0x26b2   :  { %10866 = vmatpush3.msra.mxu0 %v4359_v10  ;;  %v10821_v38 = vpop.f32.mrf.mxu1  ;;  %10881 = vmatprep.mubr.msk.f32.mxu0 %vm11436_vm0, %v11435_v0 }
0x26b3   :  { %10867 = vmatprep.subr.mxu0 %v11435_v0  ;;  %v4377_v38 = vld [vmem:[#allocation8 + $0x278] sm:$0xff] }
0x26b4   :  { %10868 = vmatpush3.msra.mxu0 %v4358_v37 }
0x26b5   :  { %10869 = vmatprep.subr.mxu0 %v11435_v0 }
0x26b6   :  { %10870 = vmatpush3.msra.mxu0 %v4357_v40  ;;  %v4376_v40 = vld [vmem:[#allocation8 + $0x270] sm:$0xff] }
0x26b7   :  { %10871 = vmatprep.subr.mxu0 %v11435_v0 }
0x26b8   :  { %10872 = vmatpush3.msra.mxu0 %v4356_v42  ;;  %v4375_v42 = vld [vmem:[#allocation8 + $0x268] sm:$0xff] }
0x26b9   :  { %10873 = vmatprep.subr.mxu0 %v11435_v0 }
0x26ba   :  { %10874 = vmatpush3.msra.mxu0 %v4355_v43  ;;  %v4374_v43 = vld [vmem:[#allocation8 + $0x260] sm:$0xff] }
0x26bb   :  { %10875 = vmatprep.subr.mxu0 %v11435_v0 }
0x26bc   :  { %10876 = vmatpush3.msra.mxu0 %v4354_v44  ;;  %v4373_v44 = vld [vmem:[#allocation8 + $0x258] sm:$0xff] }
0x26bd   :  { %10877 = vmatprep.subr.mxu0 %v11435_v0 }
0x26be   :  { %10878 = vmatpush3.msra.mxu0 %v4353_v45  ;;  %v4372_v45 = vld [vmem:[#allocation8 + $0x250] sm:$0xff] }
0x26bf   :  { %10879 = vmatprep.subr.mxu0 %v11435_v0 }
0x26c0   :  { %10880 = vmatpush3.msra.mxu0 %v4352_v46  ;;  %v4371_v46 = vld [vmem:[#allocation8 + $0x248] sm:$0xff] }
0x26c1   :  { %10882 = vmatmul.mubr.msk.f32.vlgmr.msra.gmra.mxu0 %vm427_vm4, %v5287_v16  ;;  %10908 = vmatprep.subr.mxu0 %v11435_v0 }
0x26c2   :  { %10910 = vmatprep.mubr.msk.f32.mxu0 %vm11436_vm0, %v11435_v0 }
0x2771   :  { %v5364_v48 = vpop.f32.mrf.mxu0 }
0x2772   :  { %v5365_v31 = vadd.f32 %v9350_v62, %v5364_v48 }
0x2773   :  { %v10840_v20 = vpop.f32.mrf.mxu0 }
0x2774   :  { %v5368_v3 = vmax.f32 %v5365_v31, 0.0  ;;  %v4370_v31 = vld [vmem:[#allocation8 + $0x240] sm:$0xff] }
0x2776   :  { %10842 = vmatpush3.msk.msra.mxu1 %vm1792_vm8, %v5368_v3 }
0x2777   :  { %10844 = vmatmul.mubr.msk.f32.vlgmr.msra.gmra.mxu1 %vm1788_vm9, %v12424_v11  ;;  %10846 = vmatprep.subr.mxu1 %v11435_v0 }
0x2778   :  { %10847 = vmatpush3.msra.mxu1 %v4350_v63  ;;  %10862 = vmatprep.mubr.msk.f32.mxu1 %vm11436_vm0, %v11435_v0  ;;  %v4428_v63 = vld [vmem:[#allocation10 + $0xf8] sm:$0xff] }
0x2779   :  { %10848 = vmatprep.subr.mxu1 %v11435_v0 }
0x277a   :  { %10849 = vmatpush3.msra.mxu1 %v4349_v50  ;;  %v4427_v50 = vld [vmem:[#allocation10 + $0xf0] sm:$0xff] }
0x277b   :  { %10850 = vmatprep.subr.mxu1 %v11435_v0 }
0x277c   :  { %10851 = vmatpush3.msra.mxu1 %v4348_v24  ;;  %v4424_v24 = vld [vmem:[#allocation10 + $0xd8] sm:$0xff] }
0x277d   :  { %10852 = vmatprep.subr.mxu1 %v11435_v0 }
0x277e   :  { %10853 = vmatpush3.msra.mxu1 %v4347_v25  ;;  %v4423_v25 = vld [vmem:[#allocation10 + $0xd0] sm:$0xff] }
0x277f   :  { %10854 = vmatprep.subr.mxu1 %v11435_v0 }
0x2780   :  { %10855 = vmatpush3.msra.mxu1 %v4346_v26  ;;  %v4420_v26 = vld [vmem:[#allocation10 + $0xb8] sm:$0xff] }
0x2781   :  { %v5590_v28 = vpop.f32.mrf.mxu0  ;;  %10856 = vmatprep.subr.mxu1 %v11435_v0 }
0x2782   :  { %10857 = vmatpush3.msra.mxu1 %v4345_v27  ;;  %v5591_v9 = vadd.f32 %v9356_v7, %v5590_v28  ;;  %v4419_v27 = vld [vmem:[#allocation10 + $0xb0] sm:$0xff]  ;;  %v4416_v28 = vld [vmem:[#allocation10 + $0x98] sm:$0xff] }
0x2783   :  { %v10883_v17 = vpop.f32.mrf.mxu0  ;;  %10858 = vmatprep.subr.mxu1 %v11435_v0  ;;  %v4408_v7 = vld [vmem:[#allocation10 + $0x58] sm:$0xff] }
0x2784   :  { %10859 = vmatpush3.msra.mxu1 %v4344_v51  ;;  %v5594_v19 = vmax.f32 %v5591_v9, 0.0  ;;  %v4415_v51 = vld [vmem:[#allocation10 + $0x90] sm:$0xff]  ;;  %v4412_v17 = vld [vmem:[#allocation10 + $0x78] sm:$0xff] }
0x2785   :  { %10860 = vmatprep.subr.mxu1 %v11435_v0  ;;  %v4407_v9 = vld [vmem:[#allocation10 + $0x50] sm:$0xff] }
0x2786   :  { %10861 = vmatpush3.msra.mxu1 %v4343_v61  ;;  %v4411_v61 = vld [vmem:[#allocation10 + $0x70] sm:$0xff] }
0x2787   :  { %10884 = vmatprep.subr.mxu1 %v11435_v0 }
0x2837   :  { %v5438_v2 = vpop.f32.mrf.mxu1 }
0x2838   :  { %10863 = vmatmul.mubr.msk.f32.vlgmr.msra.gmra.mxu1 %vm427_vm4, %v5438_v2  ;;  %v4403_v2 = vld [vmem:[#allocation10 + $0x30] sm:$0xff] }
0x2839   :  { %10885 = vmatpush3.msk.msra.mxu1 %vm1792_vm8, %v5594_v19  ;;  %v10845_v12 = vpop.f32.mrf.mxu1  ;;  %10886 = vmatprep.mubr.msk.f32.mxu1 %vm11436_vm0, %v11435_v0  ;;  %v4404_v19 = vld [vmem:[#allocation10 + $0x38] sm:$0xff] }
0x283a   :  { %10889 = vmatprep.subr.mxu1 %v11435_v0  ;;  %v4400_v12 = vld [vmem:[#allocation10 + $0x18] sm:$0xff] }
0x283c   :  { %10887 = vmatmul.mubr.msk.f32.vlgmr.msra.gmra.mxu1 %vm1788_vm9, %v12424_v11 }
0x283d   :  { %10890 = vmatpush3.msra.mxu1 %v4368_v13  ;;  %10905 = vmatprep.mubr.msk.f32.mxu1 %vm11436_vm0, %v11435_v0  ;;  %v9370_v13 = vld [vmem:[#allocation8 + $0x280] ss:$0 sm:$0xff] }
0x283e   :  { %10891 = vmatprep.subr.mxu1 %v11435_v0 }
0x283f   :  { %10892 = vmatpush3.msra.mxu1 %v4367_v14 }
0x2840   :  { %10893 = vmatprep.subr.mxu1 %v11435_v0 }
0x2841   :  { %10894 = vmatpush3.msra.mxu1 %v4366_v49 }
0x2842   :  { %10895 = vmatprep.subr.mxu1 %v11435_v0 }
0x2843   :  { %10896 = vmatpush3.msra.mxu1 %v4365_v15 }
0x2844   :  { %10897 = vmatprep.subr.mxu1 %v11435_v0 }
0x2845   :  { %10898 = vmatpush3.msra.mxu1 %v4364_v18 }
0x2846   :  { %10899 = vmatprep.subr.mxu1 %v11435_v0 }
0x2847   :  { %10900 = vmatpush3.msra.mxu1 %v4363_v30  ;;  %v4426_v30 = vld [vmem:[#allocation10 + $0xe8] sm:$0xff] }
0x2848   :  { %10901 = vmatprep.subr.mxu1 %v11435_v0 }
0x2849   :  { %10902 = vmatpush3.msra.mxu1 %v4362_v33  ;;  %v4425_v33 = vld [vmem:[#allocation10 + $0xe0] sm:$0xff] }
0x284a   :  { %10903 = vmatprep.subr.mxu1 %v11435_v0 }
0x284b   :  { %10904 = vmatpush3.msra.mxu1 %v4361_v34  ;;  %v4422_v34 = vld [vmem:[#allocation10 + $0xc8] sm:$0xff] }
0x284c   :  { %10923 = vmatprep.subr.mxu1 %v11435_v0 }
0x28f8   :  { %v5515_v36 = vpop.f32.mrf.mxu1 }
0x28f9   :  { %v5516_v39 = vadd.f32 %v9354_v35, %v5515_v36  ;;  %v4421_v35 = vld [vmem:[#allocation10 + $0xc0] sm:$0xff]  ;;  %v4418_v36 = vld [vmem:[#allocation10 + $0xa8] sm:$0xff] }
0x28fa   :  { %v10864_v41 = vpop.f32.mrf.mxu1 }
0x28fb   :  { %v5519_v47 = vmax.f32 %v5516_v39, 0.0  ;;  %v4417_v39 = vld [vmem:[#allocation10 + $0xa0] sm:$0xff]  ;;  %v4414_v41 = vld [vmem:[#allocation10 + $0x88] sm:$0xff] }
0x28fc   :  { %v5664_v53 = vpop.f32.mrf.mxu1 }
0x28fd   :  { %10906 = vmatmul.mubr.msk.f32.vlgmr.msra.gmra.mxu1 %vm427_vm4, %v5664_v53  ;;  %v5747_v54 = vsel %vm5746_vm14, %v5519_v47, -inf  ;;  %v4410_v53 = vld [vmem:[#allocation10 + $0x68] sm:$0xff] }
0x28fe   :  { %5748 = vmax.xlane.f32.xlu1 %v5747_v54  ;;  %v10888_v55 = vpop.f32.mrf.mxu1  ;;  %10925 = vmatprep.mubr.msk.f32.mxu1 %vm11436_vm0, %v11435_v0  ;;  %v4409_v54 = vld [vmem:[#allocation10 + $0x60] sm:$0xff] }
0x28ff   :  { %v4406_v55 = vld [vmem:[#allocation10 + $0x48] sm:$0xff] }
0x2987   :  { %v5749_v56 = vpop.xlane.xlu1 %5748 }
0x2988   :  { %v5750_v57 = vsub.f32 %v5519_v47, %v5749_v56  ;;  %v4413_v47 = vld [vmem:[#allocation10 + $0x80] sm:$0xff] }
0x2989   :  { %v4405_v56 = vld [vmem:[#allocation10 + $0x40] sm:$0xff] }
0x298a   :  { %v5751_v58 = vmul.f32 1.442695, %v5750_v57  ;;  %v4402_v57 = vld [vmem:[#allocation10 + $0x28] sm:$0xff] }
0x298c   :  { %11237 = vpow2.f32 %v5751_v58  ;;  %v4401_v58 = vld [vmem:[#allocation10 + $0x20] sm:$0xff] }
0x2999   :  { %v11238_v23 = vpop.eup %11237 }
0x299a   :  { %v5753_v21 = vsel %vm5746_vm14, %v11238_v23, 0.0 }
0x299b   :  { %5754 = vadd.xlane.f32.xlu1 %v5753_v21  ;;  %v4397_v21 = vld [vmem:[#allocation10] sm:$0xff] }
0x29bd   :  { %v5741_v22 = vpop.f32.mrf.mxu1 }
0x29be   :  { %v5742_v32 = vadd.f32 %v9360_v29, %v5741_v22  ;;  %v4399_v29 = vld [vmem:[#allocation10 + $0x10] sm:$0xff]  ;;  %v4386_v22 = vld [vmem:[#allocation8 + $0x2c0] sm:$0xff] }
0x29bf   :  { %v10907_v59 = vpop.f32.mrf.mxu1 }
0x29c0   :  { %v5745_v60 = vmax.f32 %v5742_v32, 0.0  ;;  %v4385_v59 = vld [vmem:[#allocation8 + $0x2b8] sm:$0xff] }
0x29c2   :  { %10909 = vmatpush3.msk.msra.mxu0 %vm1792_vm8, %v5745_v60 }
0x29c3   :  { %10913 = vmatprep.subr.mxu0 %v11435_v0 }
0x2a24   :  { %v5755_v4 = vpop.xlane.xlu1 %5754 }
0x2a25   :  { %11239 = vrcp.f32 %v5755_v4  ;;  %v4384_v4 = vld [vmem:[#allocation8 + $0x2b0] sm:$0xff] }
0x2a32   :  { %v11240_v5 = vpop.eup %11239 }
0x2a33   :  { %v5757_v8 = vmul.f32 %v11240_v5, %v11238_v23  ;;  %v4398_v23 = vld [vmem:[#allocation10 + $0x8] sm:$0xff]  ;;  %v4383_v5 = vld [vmem:[#allocation8 + $0x2a8] sm:$0xff] }
0x2a35   :  { %5758 = vxpose.xlu1.b32.start.end [1/1] (short) (narrow) %v5757_v8, 8 }
0x2ab1   :  { %v5774_v1 = vpop.trf.xlu1 }
0x2ab2   :  { %10911 = vmatmul.mubr.msk.f32.vlgmr.msra.gmra.mxu0 %vm1788_vm9, %v5774_v1 }
0x2ab3   :  { %10914 = vmatpush3.msk.msra.mxu0 %vm1792_vm8, %v12424_v11  ;;  %10915 = vmatprep.mubr.msk.f32.mxu0 %vm11436_vm0, %v11435_v0 }
0x2ab4   :  { %10918 = vmatprep.subr.mxu0 %v11435_v0 }
0x2ab6   :  { %10916 = vmatmul.mubr.msk.f32.vlgmr.msra.gmra.mxu0 %vm1788_vm9, %v5774_v1  ;;  %v4381_v1 = vld [vmem:[#allocation8 + $0x298] sm:$0xff] }
0x2ab7   :  { %10919 = vmatpush3.msk.msra.mxu0 %vm1792_vm8, %v5757_v8  ;;  %10920 = vmatprep.mubr.msk.f32.mxu0 %vm11436_vm0, %v11435_v0  ;;  %v4382_v8 = vld [vmem:[#allocation8 + $0x2a0] sm:$0xff] }
0x2ab8   :  { %10928 = vmatprep.subr.mxu0 %v11435_v0 }
0x2b72   :  { %v5862_v10 = vpop.f32.mrf.mxu0 }
0x2b73   :  { %10924 = vmatpush3.msk.msra.mxu1 %vm991_vm6, %v5862_v10  ;;  %v4380_v10 = vld [vmem:[#allocation8 + $0x290] sm:$0xff] }
0x2b74   :  { %v10912_v16 = vpop.f32.mrf.mxu0  ;;  %10947 = vmatprep.subr.mxu1 %v11435_v0 }
0x2b75   :  { %v4379_v16 = vld [vmem:[#allocation8 + $0x288] sm:$0xff] }
0x2b76   :  { %v5934_v11 = vpop.f32.mrf.mxu0 }
0x2b77   :  { %10921 = vmatmul.mubr.msk.f32.vlgmr.msra.gmra.mxu0 %vm1788_vm9, %v5934_v11  ;;  %v6242_v11 = vlaneseq }
0x2b78   :  { %v10917_v37 = vpop.f32.mrf.mxu0  ;;  %10944 = vmatprep.mubr.msk.f32.mxu0 %vm11436_vm0, %v11435_v0  ;;  %10929 = vmatpush3.msra.mxu0 %v4377_v38 }
0x2b79   :  { %10930 = vmatprep.subr.mxu0 %v11435_v0  ;;  %v6243_v37 = vshrl.u32 %v6242_v11, 7 }
0x2b7a   :  { %10931 = vmatpush3.msra.mxu0 %v4376_v40 }
0x2b7b   :  { %10932 = vmatprep.subr.mxu0 %v11435_v0  ;;  %v6244_v38 = vsub.s32 0, %v6243_v37  ;;  %v6252_v40 = vsub.s32 2, %v6243_v37 }
0x2b7c   :  { %10933 = vmatpush3.msra.mxu0 %v4375_v42  ;;  %v4430_v42 = vld [vmem:[#allocation10 + $0x100] ss:$8 sm:$0xf] }
0x2b7d   :  { %10934 = vmatprep.subr.mxu0 %v11435_v0 }
0x2b7e   :  { %10935 = vmatpush3.msra.mxu0 %v4374_v43  ;;  %v6248_v43 = vsub.s32 1, %v6243_v37 }
0x2b7f   :  { %10936 = vmatprep.subr.mxu0 %v11435_v0 }
0x2b80   :  { %10937 = vmatpush3.msra.mxu0 %v4373_v44  ;;  %v6256_v44 = vsub.s32 3, %v6243_v37 }
0x2b81   :  { %10938 = vmatprep.subr.mxu0 %v11435_v0 }
0x2b82   :  { %10939 = vmatpush3.msra.mxu0 %v4372_v45  ;;  %v6638_v45 = vand.u32 127, %v6242_v11 }
0x2b83   :  { %10940 = vmatprep.subr.mxu0 %v11435_v0 }
0x2b84   :  { %10941 = vmatpush3.msra.mxu0 %v4371_v46  ;;  %v6245_v46 = vrot.slane %v4430_v42, %v6244_v38 }
0x2b85   :  { %10942 = vmatprep.subr.mxu0 %v11435_v0 }
0x2b86   :  { %10943 = vmatpush3.msra.mxu0 %v4370_v31  ;;  %v6249_v31 = vrot.slane %v4430_v42, %v6248_v43 }
0x2b87   :  { %6352 = vmatprep.subr.mxu0 %v4428_v63 }
0x2c37   :  { %v12503_v62 = vpop.f32.mrf.mxu0 }
0x2c38   :  { %10926 = vmatmul.mubr.msk.f32.vlgmr.msra.gmra.mxu1 %vm728_vm5, %v12503_v62 }
0x2c39   :  { %v10922_v48 = vpop.f32.mrf.mxu0  ;;  %10949 = vmatprep.mubr.msk.f32.mxu1 %vm11436_vm0, %v11435_v0 }
0x2c3a   :  { %v6253_v48 = vrot.slane %v4430_v42, %v6252_v40 }
0x2cf8   :  { %v12509_v20 = vpop.f32.mrf.mxu1 }
0x2cf9   :  { %10945 = vmatmul.mubr.msk.f32.vlgmr.msra.gmra.mxu0 %vm427_vm4, %v12509_v20 }
0x2cfa   :  { %v10927_v3 = vpop.f32.mrf.mxu1  ;;  %6400 = vmatprep.mubr.f32.mxu0 %v11435_v0  ;;  %6353 = vmatpush1.msra.mxu0 %v4427_v50 }
0x2cfb   :  { %6354 = vmatprep.subr.mxu0 %v4424_v24  ;;  %v6257_v3 = vrot.slane %v4430_v42, %v6256_v44  ;;  %v6641_v24 = vadd.s32 384, %v6638_v45 }
0x2cfc   :  { %6355 = vmatpush1.msra.mxu0 %v4423_v25 }
0x2cfd   :  { %6356 = vmatprep.subr.mxu0 %v4420_v26  ;;  %vm6645_vm15 = vcmp.lt.s32.totalorder %v6641_v24, 500  ;;  %v9380_v24 = vld [vmem:[#allocation8 + $0x310] ss:$0 sm:$0xff] }
0x2cfe   :  { %6357 = vmatpush1.msra.mxu0 %v4419_v27 }
0x2cff   :  { %6358 = vmatprep.subr.mxu0 %v4416_v28 }
0x2d00   :  { %6359 = vmatpush1.msra.mxu0 %v4415_v51 }
0x2d01   :  { %6360 = vmatprep.subr.mxu0 %v4412_v17 }
0x2d02   :  { %6361 = vmatpush1.msra.mxu0 %v4411_v61 }
0x2d03   :  { %6362 = vmatprep.subr.mxu0 %v4408_v7 }
0x2d04   :  { %6363 = vmatpush1.msra.mxu0 %v4407_v9 }
0x2d05   :  { %6364 = vmatprep.subr.mxu0 %v4404_v19 }
0x2d06   :  { %6365 = vmatpush1.msra.mxu0 %v4403_v2 }
0x2d07   :  { %6366 = vmatprep.subr.mxu0 %v4400_v12 }
0x2d08   :  { %6367 = vmatpush1.msra.mxu0 %v4399_v29 }
0x2d09   :  { %10971 = vmatprep.subr.mxu0 %v11435_v0 }
0x2db9   :  { %v6163_v14 = vpop.f32.mrf.mxu0 }
0x2dba   :  { %v6164_v49 = vadd.f32 %v9370_v13, %v6163_v14 }
0x2dbb   :  { %v10946_v15 = vpop.f32.mrf.mxu0 }
0x2dbc   :  { %v6167_v18 = vmax.f32 %v6164_v49, 0.0 }
0x2dbe   :  { %10948 = vmatpush3.msk.msra.mxu1 %vm991_vm6, %v6167_v18 }
0x2dbf   :  { %10950 = vmatmul.mubr.msk.f32.vlgmr.msra.gmra.mxu1 %vm728_vm5, %v12503_v62  ;;  %6281 = vmatprep.subr.mxu1 %v4426_v30  ;;  %v9376_v30 = vld [vmem:[#allocation8 + $0x2c8] ss:$0 sm:$0xff] }
0x2dc0   :  { %6282 = vmatpush1.msra.mxu1 %v4425_v33  ;;  %6329 = vmatprep.mubr.f32.mxu1 %v11435_v0 }
0x2dc1   :  { %6283 = vmatprep.subr.mxu1 %v4422_v34 }
0x2dc2   :  { %6284 = vmatpush1.msra.mxu1 %v4421_v35 }
0x2dc3   :  { %6285 = vmatprep.subr.mxu1 %v4418_v36 }
0x2dc4   :  { %6286 = vmatpush1.msra.mxu1 %v4417_v39  ;;  %v4395_v39 = vld [vmem:[#allocation8 + $0x308] sm:$0xff] }
0x2dc5   :  { %6287 = vmatprep.subr.mxu1 %v4414_v41  ;;  %v4394_v41 = vld [vmem:[#allocation8 + $0x300] sm:$0xff] }
0x2dc6   :  { %6288 = vmatpush1.msra.mxu1 %v4413_v47  ;;  %v4393_v47 = vld [vmem:[#allocation8 + $0x2f8] sm:$0xff] }
0x2dc7   :  { %6289 = vmatprep.subr.mxu1 %v4410_v53  ;;  %v4392_v53 = vld [vmem:[#allocation8 + $0x2f0] sm:$0xff] }
0x2dc8   :  { %6290 = vmatpush1.msra.mxu1 %v4409_v54  ;;  %v4391_v54 = vld [vmem:[#allocation8 + $0x2e8] sm:$0xff] }
0x2dc9   :  { %6291 = vmatprep.subr.mxu1 %v4406_v55  ;;  %v4390_v55 = vld [vmem:[#allocation8 + $0x2e0] sm:$0xff] }
0x2dca   :  { %6292 = vmatpush1.msra.mxu1 %v4405_v56  ;;  %v4389_v56 = vld [vmem:[#allocation8 + $0x2d8] sm:$0xff] }
0x2dcb   :  { %6293 = vmatprep.subr.mxu1 %v4402_v57  ;;  %v4388_v57 = vld [vmem:[#allocation8 + $0x2d0] sm:$0xff] }
0x2dcc   :  { %6294 = vmatpush1.msra.mxu1 %v4401_v58 }
0x2dcd   :  { %6295 = vmatprep.subr.mxu1 %v4398_v23 }
0x2dce   :  { %6296 = vmatpush1.msra.mxu1 %v4397_v21 }
0x2dcf   :  { %10952 = vmatprep.subr.mxu1 %v11435_v0 }
0x2e7f   :  { %v6237_v32 = vpop.f32.mrf.mxu1 }
0x2e80   :  { %9374 = vmatmul.mubr.msk.f32.vlgmr.msra.gmra.mxu1 %vm427_vm4, %v6237_v32  ;;  %9375 = vmatmul.mubr.msk.f32.vlgmr.msra.gmra.mxu0 %vm427_vm4, %v6237_v32 }
0x2e81   :  { %10953 = vmatpush3.msra.mxu1 %v4386_v22  ;;  %v10951_v60 = vpop.f32.mrf.mxu1  ;;  %10968 = vmatprep.mubr.msk.f32.mxu1 %vm11436_vm0, %v11435_v0 }
0x2e82   :  { %10954 = vmatprep.subr.mxu1 %v11435_v0  ;;  %10973 = vmatprep.mubr.msk.f32.mxu0 %vm11436_vm0, %v11435_v0 }
0x2e83   :  { %10955 = vmatpush3.msra.mxu1 %v4385_v59 }
0x2e84   :  { %10956 = vmatprep.subr.mxu1 %v11435_v0 }
0x2e85   :  { %10957 = vmatpush3.msra.mxu1 %v4384_v4 }
0x2e86   :  { %10958 = vmatprep.subr.mxu1 %v11435_v0 }
0x2e87   :  { %10959 = vmatpush3.msra.mxu1 %v4383_v5 }
0x2e88   :  { %10960 = vmatprep.subr.mxu1 %v11435_v0 }
0x2e89   :  { %10961 = vmatpush3.msra.mxu1 %v4382_v8 }
0x2e8a   :  { %10962 = vmatprep.subr.mxu1 %v11435_v0 }
0x2e8b   :  { %10963 = vmatpush3.msra.mxu1 %v4381_v1 }
0x2e8c   :  { %10964 = vmatprep.subr.mxu1 %v11435_v0 }
0x2e8d   :  { %10965 = vmatpush3.msra.mxu1 %v4380_v10 }
0x2e8e   :  { %10966 = vmatprep.subr.mxu1 %v11435_v0 }
0x2e8f   :  { %10967 = vmatpush3.msra.mxu1 %v4379_v16 }
0x2e90   :  { %10969 = vmatmul.mubr.msk.f32.vlgmr.msra.gmra.mxu1 %vm427_vm4, %v12509_v20 }
0x2f40   :  { %v6331_v63 = vpop.f32.mrf.mxu1  ;;  %v6402_v50 = vpop.f32.mrf.mxu0 }
0x2f41   :  { %v6332_v25 = vadd.f32 %v6331_v63, %v6245_v46  ;;  %v6403_v26 = vadd.f32 %v6402_v50, %v6253_v48 }
0x2f42   :  { %v6333_v27 = vpop.f32.mrf.mxu1  ;;  %v6404_v28 = vpop.f32.mrf.mxu0 }
0x2f43   :  { %v6407_v20 = vmax.f32 %v6332_v25, 0.0  ;;  %v6334_v51 = vadd.f32 %v6333_v27, %v6249_v31  ;;  %v6405_v17 = vadd.f32 %v6404_v28, %v6257_v3  ;;  %v6409_v61 = vmax.f32 %v6403_v26, 0.0 }
0x2f45   :  { %v6408_v7 = vmax.f32 %v6334_v51, 0.0  ;;  %v6410_v9 = vmax.f32 %v6405_v17, 0.0  ;;  %v6650_v19 = vsel %vm991_vm6, %v6407_v20, -inf  ;;  %v6652_v13 = vsel %vm991_vm6, %v6409_v61, -inf }
0x2f47   :  { %v6651_v2 = vsel %vm991_vm6, %v6408_v7, -inf  ;;  %v6649_v12 = vsel %vm6645_vm15, %v6410_v9, -1e+30 }
0x2f48   :  { %v6653_v14 = vsel %vm991_vm6, %v6649_v12, -inf  ;;  %v6654_v49 = vmax.f32 %v6650_v19, %v6651_v2 }
0x2f49   :  { %v6655_v15 = vmax.f32 %v6652_v13, %v6653_v14 }
0x2f4b   :  { %v6656_v18 = vmax.f32 %v6654_v49, %v6655_v15 }
0x2f4d   :  { %6657 = vmax.xlane.f32.xlu0 %v6656_v18 }
0x2f50   :  { %v6481_v33 = vpop.f32.mrf.mxu1 }
0x2f51   :  { %v6482_v34 = vadd.f32 %v9376_v30, %v6481_v33 }
0x2f52   :  { %v10970_v35 = vpop.f32.mrf.mxu1 }
0x2f53   :  { %v6485_v36 = vmax.f32 %v6482_v34, 0.0 }
0x2f55   :  { %10972 = vmatpush3.msk.msra.mxu0 %vm991_vm6, %v6485_v36  ;;  %v11255_v36 = vld [vmem:[#allocation7 + $0x308] sm:$0x1] }
0x2f56   :  { %10974 = vmatmul.mubr.msk.f32.vlgmr.msra.gmra.mxu0 %vm728_vm5, %v12503_v62  ;;  %10976 = vmatprep.subr.mxu0 %v11435_v0 }
0x2f57   :  { %10977 = vmatpush3.msra.mxu0 %v4395_v39  ;;  %10992 = vmatprep.mubr.msk.f32.mxu0 %vm11436_vm0, %v11435_v0  ;;  %v12599_v39 = vadd.f32 %v11255_v36, %v12360_v6 }
0x2f58   :  { %10978 = vmatprep.subr.mxu0 %v11435_v0 }
0x2f59   :  { %10979 = vmatpush3.msra.mxu0 %v4394_v41 }
0x2f5a   :  { %10980 = vmatprep.subr.mxu0 %v11435_v0 }
0x2f5b   :  { %10981 = vmatpush3.msra.mxu0 %v4393_v47 }
0x2f5c   :  { %10982 = vmatprep.subr.mxu0 %v11435_v0 }
0x2f5d   :  { %10983 = vmatpush3.msra.mxu0 %v4392_v53  ;;  %v4269_v53 = vsel %vm2252_vm11, %v12599_v39, -inf }
0x2f5e   :  { %10984 = vmatprep.subr.mxu0 %v11435_v0 }
0x2f5f   :  { %10985 = vmatpush3.msra.mxu0 %v4391_v54 }
0x2f60   :  { %10986 = vmatprep.subr.mxu0 %v11435_v0 }
0x2f61   :  { %10987 = vmatpush3.msra.mxu0 %v4390_v55 }
0x2f62   :  { %10988 = vmatprep.subr.mxu0 %v11435_v0 }
0x2f63   :  { %10989 = vmatpush3.msra.mxu0 %v4389_v56 }
0x2f64   :  { %10990 = vmatprep.subr.mxu0 %v11435_v0 }
0x2f65   :  { %10991 = vmatpush3.msra.mxu0 %v4388_v57 }
0x2f66   :  { %11093 = vmatprep.subr.msk.mxu0 %vm991_vm6, %v12503_v62 }
0x2fd6   :  { %v6658_v58 = vpop.xlane.xlu0 %6657 }
0x2fd7   :  { %v6659_v23 = vsub.f32 %v6407_v20, %v6658_v58  ;;  %v6660_v21 = vsub.f32 %v6408_v7, %v6658_v58  ;;  %v6661_v29 = vsub.f32 %v6409_v61, %v6658_v58  ;;  %v6662_v22 = vsub.f32 %v6649_v12, %v6658_v58 }
0x2fd9   :  { %v6663_v32 = vmul.f32 1.442695, %v6659_v23  ;;  %v6665_v59 = vmul.f32 1.442695, %v6660_v21  ;;  %v6667_v60 = vmul.f32 1.442695, %v6661_v29 }
0x2fda   :  { %v6669_v4 = vmul.f32 1.442695, %v6662_v22 }
0x2fdb   :  { %11241 = vpow2.f32 %v6663_v32 }
0x2fdc   :  { %11243 = vpow2.f32 %v6665_v59 }
0x2fdd   :  { %11245 = vpow2.f32 %v6667_v60 }
0x2fde   :  { %11247 = vpow2.f32 %v6669_v4 }
0x2fe8   :  { %v11242_v5 = vpop.eup %11241 }
0x2fe9   :  { %v11244_v8 = vpop.eup %11243  ;;  %v6671_v1 = vsel %vm991_vm6, %v11242_v5, 0.0 }
0x2fea   :  { %v11246_v10 = vpop.eup %11245  ;;  %v6672_v16 = vsel %vm991_vm6, %v11244_v8, 0.0 }
0x2feb   :  { %v11248_v11 = vpop.eup %11247  ;;  %v6673_v37 = vadd.f32 %v6672_v16, %v6671_v1  ;;  %v6674_v38 = vsel %vm991_vm6, %v11246_v10, 0.0 }
0x2fec   :  { %v6676_v42 = vsel %vm991_vm6, %v11248_v11, 0.0 }
0x2fed   :  { %v6675_v40 = vadd.f32 %v6674_v38, %v6673_v37 }
0x2fef   :  { %v6677_v43 = vadd.f32 %v6676_v42, %v6675_v40 }
0x2ff1   :  { %6678 = vadd.xlane.f32.xlu1 %v6677_v43 }
0x3016   :  { %v6555_v44 = vpop.f32.mrf.mxu0 }
0x3017   :  { %10993 = vmatmul.mubr.msk.f32.vlgmr.msra.gmra.mxu0 %vm427_vm4, %v6555_v44 }
0x3018   :  { %11094 = vmatpush3.msk.msra.mxu0 %vm991_vm6, %v12503_v62  ;;  %v10975_v45 = vpop.f32.mrf.mxu0 }
0x307a   :  { %v6679_v46 = vpop.xlane.xlu1 %6678 }
0x307b   :  { %11249 = vrcp.f32 %v6679_v46 }
0x3088   :  { %v11250_v48 = vpop.eup %11249 }
0x3089   :  { %v6684_v31 = vmul.f32 %v11250_v48, %v11248_v11  ;;  %v6682_v3 = vmul.f32 %v11250_v48, %v11244_v8  ;;  %v6681_v63 = vmul.f32 %v11250_v48, %v11242_v5  ;;  %v6683_v50 = vmul.f32 %v11250_v48, %v11246_v10 }
0x308b   :  { %9578 = vmatprep.subr.msk.mxu0 %vm991_vm6, %v6684_v31  ;;  %6717 = vxpose.xlu1.b32.start.end [1/1] (short) %v6682_v3, 128 }
0x308c   :  { %6685 = vxpose.xlu0.b32.start.end [1/1] (short) %v6681_v63, 128 }
0x30c8   :  { %6781 = vxpose.xlu1.b32.start.end [1/1] (short) %v6684_v31, 128 }
0x30c9   :  { %6749 = vxpose.xlu0.b32.start.end [1/1] (short) %v6683_v50, 128 }
0x30d7   :  { %v6632_v25 = vpop.f32.mrf.mxu0 }
0x30d8   :  { %v6633_v26 = vadd.f32 %v9380_v24, %v6632_v25 }
0x30d9   :  { %v10994_v27 = vpop.f32.mrf.mxu0 }
0x30da   :  { %v6636_v28 = vmax.f32 %v6633_v26, 0.0 }
0x30dc   :  { %10995 = vmatprep.subr.msk.mxu1 %vm991_vm6, %v6636_v28 }
0x30dd   :  { %10996 = vmatpush3.msk.msra.mxu1 %vm991_vm6, %v6636_v28 }
0x30de   :  { %9512 = vmatprep.subr.msk.mxu1 %vm991_vm6, %v6682_v3 }
0x30f2   :  { %11210 = vset.pattern.permute.xlu0 %v11438_v52 }
0x3107   :  { %v12566_v62 = vpop.trf.xlu1 }
0x3108   :  { %v6701_v20 = vpop.trf.xlu0 }
0x3109   :  { %10997 = vmatprep.mubr.msk.f32.mxu1 %vm728_vm5, %v6701_v20  ;;  %11095 = vmatprep.mubr.msk.f32.mxu0 %vm728_vm5, %v6701_v20 }
0x310b   :  { %v12570_v51 = vpop.trf.xlu1 }
0x310c   :  { %v6702_v17 = vpop.trf.xlu0 }
0x310d   :  { %10998 = vmatmul.mubr.msk.f32.vlgmr.msra.gmra.mxu1 %vm728_vm5, %v6702_v17  ;;  %11096 = vmatmul.mubr.msk.f32.vlgmr.msra.gmra.mxu0 %vm728_vm5, %v6702_v17 }
0x310e   :  { %9513 = vmatpush1.msk.msra.mxu1 %vm991_vm6, %v6681_v63  ;;  %9579 = vmatpush1.msk.msra.mxu0 %vm991_vm6, %v6683_v50 }
0x310f   :  { %v12576_v61 = vpop.trf.xlu1 }
0x3110   :  { %v6703_v52 = vpop.trf.xlu0 }
0x3111   :  { %11000 = vmatprep.mubr.msk.f32.mxu1 %vm728_vm5, %v6703_v52  ;;  %11098 = vmatprep.mubr.msk.f32.mxu0 %vm728_vm5, %v6703_v52 }
0x3113   :  { %v12580_v7 = vpop.trf.xlu1 }
0x3114   :  { %v6704_v9 = vpop.trf.xlu0 }
0x3115   :  { %11099 = vmatmul.mubr.msk.f32.gmra.mxu0 %vm728_vm5, %v6704_v9  ;;  %11001 = vmatmul.mubr.msk.f32.gmra.mxu1 %vm728_vm5, %v6704_v9 }
0x3117   :  { %v12584_v19 = vpop.trf.xlu1 }
0x3118   :  { %v6705_v2 = vpop.trf.xlu0 }
0x3119   :  { %11003 = vmatprep.mubr.msk.f32.mxu1 %vm728_vm5, %v6705_v2  ;;  %11101 = vmatprep.mubr.msk.f32.mxu0 %vm728_vm5, %v6705_v2 }
0x311b   :  { %v12588_v12 = vpop.trf.xlu1 }
0x311c   :  { %v6706_v13 = vpop.trf.xlu0 }
0x311d   :  { %11102 = vmatmul.mubr.msk.f32.gmra.mxu0 %vm728_vm5, %v6706_v13  ;;  %11004 = vmatmul.mubr.msk.f32.gmra.mxu1 %vm728_vm5, %v6706_v13 }
0x311f   :  { %v6739_v14 = vpop.trf.xlu1 }
0x3120   :  { %v6707_v49 = vpop.trf.xlu0 }
0x3121   :  { %11006 = vmatprep.mubr.msk.f32.mxu1 %vm728_vm5, %v6707_v49  ;;  %11104 = vmatprep.mubr.msk.f32.mxu0 %vm728_vm5, %v6707_v49 }
0x3123   :  { %v6740_v15 = vpop.trf.xlu1 }
0x3124   :  { %v6708_v18 = vpop.trf.xlu0 }
0x3125   :  { %11105 = vmatmul.mubr.msk.f32.gmra.mxu0 %vm728_vm5, %v6708_v18  ;;  %11007 = vmatmul.mubr.msk.f32.gmra.mxu1 %vm728_vm5, %v6708_v18 }
0x3127   :  { %v6741_v30 = vpop.trf.xlu1 }
0x3128   :  { %v6709_v33 = vpop.trf.xlu0 }
0x3129   :  { %11009 = vmatprep.mubr.msk.f32.mxu1 %vm728_vm5, %v6709_v33  ;;  %11107 = vmatprep.mubr.msk.f32.mxu0 %vm728_vm5, %v6709_v33 }
0x312b   :  { %v6742_v34 = vpop.trf.xlu1 }
0x312c   :  { %v6710_v35 = vpop.trf.xlu0 }
0x312d   :  { %11108 = vmatmul.mubr.msk.f32.gmra.mxu0 %vm728_vm5, %v6710_v35  ;;  %11010 = vmatmul.mubr.msk.f32.gmra.mxu1 %vm728_vm5, %v6710_v35 }
0x312f   :  { %v6743_v41 = vpop.trf.xlu1 }
0x3130   :  { %v6711_v47 = vpop.trf.xlu0 }
0x3131   :  { %11012 = vmatprep.mubr.msk.f32.mxu1 %vm728_vm5, %v6711_v47  ;;  %11110 = vmatprep.mubr.msk.f32.mxu0 %vm728_vm5, %v6711_v47 }
0x3132   :  { %4270 = vmax.xlane.f32.xlu0 %v4269_v53 }
0x3133   :  { %v6744_v54 = vpop.trf.xlu1 }
0x3134   :  { %v6712_v55 = vpop.trf.xlu0 }
0x3135   :  { %11111 = vmatmul.mubr.msk.f32.gmra.mxu0 %vm728_vm5, %v6712_v55  ;;  %11013 = vmatmul.mubr.msk.f32.gmra.mxu1 %vm728_vm5, %v6712_v55 }
0x3137   :  { %v6745_v6 = vpop.trf.xlu1 }
0x3138   :  { %v6713_v56 = vpop.trf.xlu0 }
0x3139   :  { %11015 = vmatprep.mubr.msk.f32.mxu1 %vm728_vm5, %v6713_v56  ;;  %11113 = vmatprep.mubr.msk.f32.mxu0 %vm728_vm5, %v6713_v56 }
0x313b   :  { %v6746_v57 = vpop.trf.xlu1 }
0x313c   :  { %v6714_v58 = vpop.trf.xlu0 }
0x313d   :  { %11114 = vmatmul.mubr.msk.f32.gmra.mxu0 %vm728_vm5, %v6714_v58  ;;  %11016 = vmatmul.mubr.msk.f32.gmra.mxu1 %vm728_vm5, %v6714_v58 }
0x313f   :  { %v6747_v23 = vpop.trf.xlu1 }
0x3140   :  { %v6715_v21 = vpop.trf.xlu0 }
0x3141   :  { %11018 = vmatprep.mubr.msk.f32.mxu1 %vm728_vm5, %v6715_v21  ;;  %11116 = vmatprep.mubr.msk.f32.mxu0 %vm728_vm5, %v6715_v21 }
0x3143   :  { %v6748_v22 = vpop.trf.xlu1 }
0x3144   :  { %v6716_v29 = vpop.trf.xlu0 }
0x3145   :  { %11117 = vmatmul.mubr.msk.f32.gmra.mxu0 %vm728_vm5, %v6716_v29  ;;  %11019 = vmatmul.mubr.msk.f32.gmra.mxu1 %vm728_vm5, %v6716_v29 }
0x3146   :  { %11021 = vmatprep.mubr.msk.f32.mxu1 %vm728_vm5, %v12566_v62  ;;  %11119 = vmatprep.mubr.msk.f32.mxu0 %vm728_vm5, %v12566_v62 }
0x3147   :  { %v12621_v59 = vpop.trf.xlu1 }
0x3148   :  { %v6765_v32 = vpop.trf.xlu0 }
0x3149   :  { %11120 = vmatmul.mubr.msk.f32.gmra.mxu0 %vm728_vm5, %v12570_v51  ;;  %11022 = vmatmul.mubr.msk.f32.gmra.mxu1 %vm728_vm5, %v12570_v51 }
0x314a   :  { %11024 = vmatprep.mubr.msk.f32.mxu1 %vm728_vm5, %v12576_v61  ;;  %11122 = vmatprep.mubr.msk.f32.mxu0 %vm728_vm5, %v12576_v61 }
0x314b   :  { %v12639_v4 = vpop.trf.xlu1 }
0x314c   :  { %v6766_v60 = vpop.trf.xlu0 }
0x314d   :  { %11123 = vmatmul.mubr.msk.f32.gmra.mxu0 %vm728_vm5, %v12580_v7  ;;  %11025 = vmatmul.mubr.msk.f32.gmra.mxu1 %vm728_vm5, %v12580_v7 }
0x314e   :  { %11027 = vmatprep.mubr.msk.f32.mxu1 %vm728_vm5, %v12584_v19  ;;  %11125 = vmatprep.mubr.msk.f32.mxu0 %vm728_vm5, %v12584_v19 }
0x314f   :  { %v12647_v1 = vpop.trf.xlu1 }
0x3150   :  { %v6767_v5 = vpop.trf.xlu0 }
0x3151   :  { %11028 = vmatmul.mubr.msk.f32.gmra.mxu1 %vm728_vm5, %v12588_v12  ;;  %11126 = vmatmul.mubr.msk.f32.gmra.mxu0 %vm728_vm5, %v12588_v12 }
0x3152   :  { %11030 = vmatprep.mubr.msk.f32.mxu1 %vm728_vm5, %v6739_v14  ;;  %11128 = vmatprep.mubr.msk.f32.mxu0 %vm728_vm5, %v6739_v14 }
0x3153   :  { %v12657_v16 = vpop.trf.xlu1 }
0x3154   :  { %v6768_v8 = vpop.trf.xlu0 }
0x3155   :  { %11031 = vmatmul.mubr.msk.f32.gmra.mxu1 %vm728_vm5, %v6740_v15  ;;  %11129 = vmatmul.mubr.msk.f32.gmra.mxu0 %vm728_vm5, %v6740_v15 }
0x3156   :  { %11033 = vmatprep.mubr.msk.f32.mxu1 %vm728_vm5, %v6741_v30  ;;  %11131 = vmatprep.mubr.msk.f32.mxu0 %vm728_vm5, %v6741_v30 }
0x3157   :  { %v12663_v38 = vpop.trf.xlu1 }
0x3158   :  { %v6769_v10 = vpop.trf.xlu0 }
0x3159   :  { %11034 = vmatmul.mubr.msk.f32.gmra.mxu1 %vm728_vm5, %v6742_v34  ;;  %11132 = vmatmul.mubr.msk.f32.gmra.mxu0 %vm728_vm5, %v6742_v34 }
0x315a   :  { %11036 = vmatprep.mubr.msk.f32.mxu1 %vm728_vm5, %v6743_v41  ;;  %11134 = vmatprep.mubr.msk.f32.mxu0 %vm728_vm5, %v6743_v41 }
0x315b   :  { %v6802_v42 = vpop.trf.xlu1 }
0x315c   :  { %v6770_v11 = vpop.trf.xlu0 }
0x315d   :  { %11037 = vmatmul.mubr.msk.f32.gmra.mxu1 %vm728_vm5, %v6744_v54  ;;  %11135 = vmatmul.mubr.msk.f32.gmra.mxu0 %vm728_vm5, %v6744_v54 }
0x315e   :  { %11039 = vmatprep.mubr.msk.f32.mxu1 %vm728_vm5, %v6745_v6  ;;  %11137 = vmatprep.mubr.msk.f32.mxu0 %vm728_vm5, %v6745_v6 }
0x315f   :  { %v6803_v45 = vpop.trf.xlu1 }
0x3160   :  { %v6771_v37 = vpop.trf.xlu0 }
0x3161   :  { %11040 = vmatmul.mubr.msk.f32.gmra.mxu1 %vm728_vm5, %v6746_v57  ;;  %11138 = vmatmul.mubr.msk.f32.gmra.mxu0 %vm728_vm5, %v6746_v57 }
0x3162   :  { %11042 = vmatprep.mubr.msk.f32.mxu1 %vm728_vm5, %v6747_v23  ;;  %11140 = vmatprep.mubr.msk.f32.mxu0 %vm728_vm5, %v6747_v23 }
0x3163   :  { %v6804_v48 = vpop.trf.xlu1 }
0x3164   :  { %v6772_v40 = vpop.trf.xlu0 }
0x3165   :  { %11043 = vmatmul.mubr.msk.f32.gmra.mxu1 %vm728_vm5, %v6748_v22  ;;  %11141 = vmatmul.mubr.msk.f32.gmra.mxu0 %vm728_vm5, %v6748_v22 }
0x3166   :  { %11045 = vmatprep.mubr.msk.f32.mxu1 %vm728_vm5, %v6765_v32  ;;  %11143 = vmatprep.mubr.msk.f32.mxu0 %vm728_vm5, %v6765_v32 }
0x3167   :  { %v6805_v63 = vpop.trf.xlu1 }
0x3168   :  { %v6773_v43 = vpop.trf.xlu0 }
0x3169   :  { %11046 = vmatmul.mubr.msk.f32.gmra.mxu1 %vm728_vm5, %v6766_v60  ;;  %11144 = vmatmul.mubr.msk.f32.gmra.mxu0 %vm728_vm5, %v6766_v60 }
0x316a   :  { %11048 = vmatprep.mubr.msk.f32.mxu1 %vm728_vm5, %v6767_v5  ;;  %11146 = vmatprep.mubr.msk.f32.mxu0 %vm728_vm5, %v6767_v5 }
0x316b   :  { %v6806_v24 = vpop.trf.xlu1 }
0x316c   :  { %v6774_v44 = vpop.trf.xlu0 }
0x316d   :  { %11049 = vmatmul.mubr.msk.f32.gmra.mxu1 %vm728_vm5, %v6768_v8  ;;  %11147 = vmatmul.mubr.msk.f32.gmra.mxu0 %vm728_vm5, %v6768_v8 }
0x316e   :  { %11051 = vmatprep.mubr.msk.f32.mxu1 %vm728_vm5, %v6769_v10  ;;  %11149 = vmatprep.mubr.msk.f32.mxu0 %vm728_vm5, %v6769_v10 }
0x316f   :  { %v6807_v27 = vpop.trf.xlu1 }
0x3170   :  { %v6775_v46 = vpop.trf.xlu0 }
0x3171   :  { %11052 = vmatmul.mubr.msk.f32.gmra.mxu1 %vm728_vm5, %v6770_v11  ;;  %11150 = vmatmul.mubr.msk.f32.gmra.mxu0 %vm728_vm5, %v6770_v11 }
0x3172   :  { %11054 = vmatprep.mubr.msk.f32.mxu1 %vm728_vm5, %v6771_v37  ;;  %11152 = vmatprep.mubr.msk.f32.mxu0 %vm728_vm5, %v6771_v37 }
0x3173   :  { %v6808_v28 = vpop.trf.xlu1 }
0x3174   :  { %v6776_v31 = vpop.trf.xlu0 }
0x3175   :  { %11055 = vmatmul.mubr.msk.f32.gmra.mxu1 %vm728_vm5, %v6772_v40  ;;  %11153 = vmatmul.mubr.msk.f32.gmra.mxu0 %vm728_vm5, %v6772_v40 }
0x3176   :  { %11057 = vmatprep.mubr.msk.f32.mxu1 %vm728_vm5, %v6773_v43  ;;  %11155 = vmatprep.mubr.msk.f32.mxu0 %vm728_vm5, %v6773_v43 }
0x3177   :  { %v6809_v62 = vpop.trf.xlu1 }
0x3178   :  { %v6777_v3 = vpop.trf.xlu0 }
0x3179   :  { %11058 = vmatmul.mubr.msk.f32.gmra.mxu1 %vm728_vm5, %v6774_v44  ;;  %11156 = vmatmul.mubr.msk.f32.gmra.mxu0 %vm728_vm5, %v6774_v44 }
0x317a   :  { %11060 = vmatprep.mubr.msk.f32.mxu1 %vm728_vm5, %v6775_v46  ;;  %11158 = vmatprep.mubr.msk.f32.mxu0 %vm728_vm5, %v6775_v46 }
0x317b   :  { %v6810_v20 = vpop.trf.xlu1 }
0x317c   :  { %v6778_v50 = vpop.trf.xlu0 }
0x317d   :  { %11061 = vmatmul.mubr.msk.f32.gmra.mxu1 %vm728_vm5, %v6776_v31  ;;  %11159 = vmatmul.mubr.msk.f32.gmra.mxu0 %vm728_vm5, %v6776_v31 }
0x317e   :  { %11063 = vmatprep.mubr.msk.f32.mxu1 %vm728_vm5, %v6777_v3  ;;  %11161 = vmatprep.mubr.msk.f32.mxu0 %vm728_vm5, %v6777_v3 }
0x317f   :  { %v6811_v51 = vpop.trf.xlu1 }
0x3180   :  { %v6779_v25 = vpop.trf.xlu0 }
0x3181   :  { %11064 = vmatmul.mubr.msk.f32.gmra.mxu1 %vm728_vm5, %v6778_v50  ;;  %11162 = vmatmul.mubr.msk.f32.gmra.mxu0 %vm728_vm5, %v6778_v50 }
0x3182   :  { %11066 = vmatprep.mubr.msk.f32.mxu1 %vm728_vm5, %v6779_v25  ;;  %11164 = vmatprep.mubr.msk.f32.mxu0 %vm728_vm5, %v6779_v25 }
0x3183   :  { %v6812_v17 = vpop.trf.xlu1 }
0x3184   :  { %v6780_v26 = vpop.trf.xlu0 }
0x3185   :  { %11067 = vmatmul.mubr.msk.f32.gmra.mxu1 %vm728_vm5, %v6780_v26  ;;  %11165 = vmatmul.mubr.msk.f32.gmra.mxu0 %vm728_vm5, %v6780_v26 }
0x3186   :  { %11069 = vmatprep.mubr.msk.f32.mxu1 %vm728_vm5, %v12621_v59  ;;  %11167 = vmatprep.mubr.msk.f32.mxu0 %vm728_vm5, %v12621_v59 }
0x3189   :  { %11070 = vmatmul.mubr.msk.f32.gmra.mxu1 %vm728_vm5, %v12639_v4  ;;  %11168 = vmatmul.mubr.msk.f32.gmra.mxu0 %vm728_vm5, %v12639_v4 }
0x318a   :  { %11072 = vmatprep.mubr.msk.f32.mxu1 %vm728_vm5, %v12647_v1  ;;  %11170 = vmatprep.mubr.msk.f32.mxu0 %vm728_vm5, %v12647_v1 }
0x318d   :  { %11073 = vmatmul.mubr.msk.f32.gmra.mxu1 %vm728_vm5, %v12657_v16  ;;  %11171 = vmatmul.mubr.msk.f32.gmra.mxu0 %vm728_vm5, %v12657_v16 }
0x318e   :  { %11075 = vmatprep.mubr.msk.f32.mxu1 %vm728_vm5, %v12663_v38  ;;  %11173 = vmatprep.mubr.msk.f32.mxu0 %vm728_vm5, %v12663_v38 }
0x3191   :  { %11076 = vmatmul.mubr.msk.f32.gmra.mxu1 %vm728_vm5, %v6802_v42  ;;  %11174 = vmatmul.mubr.msk.f32.gmra.mxu0 %vm728_vm5, %v6802_v42 }
0x3192   :  { %11078 = vmatprep.mubr.msk.f32.mxu1 %vm728_vm5, %v6803_v45  ;;  %11176 = vmatprep.mubr.msk.f32.mxu0 %vm728_vm5, %v6803_v45 }
0x3195   :  { %11079 = vmatmul.mubr.msk.f32.gmra.mxu1 %vm728_vm5, %v6804_v48  ;;  %11177 = vmatmul.mubr.msk.f32.gmra.mxu0 %vm728_vm5, %v6804_v48 }
0x3196   :  { %11081 = vmatprep.mubr.msk.f32.mxu1 %vm728_vm5, %v6805_v63  ;;  %11179 = vmatprep.mubr.msk.f32.mxu0 %vm728_vm5, %v6805_v63 }
0x3199   :  { %11082 = vmatmul.mubr.msk.f32.gmra.mxu1 %vm728_vm5, %v6806_v24  ;;  %11180 = vmatmul.mubr.msk.f32.gmra.mxu0 %vm728_vm5, %v6806_v24 }
0x319a   :  { %11084 = vmatprep.mubr.msk.f32.mxu1 %vm728_vm5, %v6807_v27  ;;  %11182 = vmatprep.mubr.msk.f32.mxu0 %vm728_vm5, %v6807_v27 }
0x319d   :  { %11085 = vmatmul.mubr.msk.f32.gmra.mxu1 %vm728_vm5, %v6808_v28  ;;  %11183 = vmatmul.mubr.msk.f32.gmra.mxu0 %vm728_vm5, %v6808_v28 }
0x319e   :  { %11087 = vmatprep.mubr.msk.f32.mxu1 %vm728_vm5, %v6809_v62  ;;  %11185 = vmatprep.mubr.msk.f32.mxu0 %vm728_vm5, %v6809_v62 }
0x31a1   :  { %11088 = vmatmul.mubr.msk.f32.gmra.mxu1 %vm728_vm5, %v6810_v20  ;;  %11186 = vmatmul.mubr.msk.f32.gmra.mxu0 %vm728_vm5, %v6810_v20 }
0x31a2   :  { %11090 = vmatprep.mubr.msk.f32.mxu1 %vm728_vm5, %v6811_v51  ;;  %11188 = vmatprep.mubr.msk.f32.mxu0 %vm728_vm5, %v6811_v51 }
0x31a5   :  { %11091 = vmatmul.mubr.msk.f32.gmra.mxu1 %vm728_vm5, %v6812_v17  ;;  %11189 = vmatmul.mubr.msk.f32.gmra.mxu0 %vm728_vm5, %v6812_v17 }
0x31a6   :  { %8048 = vmatprep.mubr.f32.mxu1 %v11435_v0  ;;  %8497 = vmatprep.mubr.f32.mxu0 %v11435_v0 }
0x31bb   :  { %v4271_v61 = vpop.xlane.xlu0 %4270 }
0x31bc   :  { %v12748_v52 = vsub.f32 %v12599_v39, %v4271_v61 }
0x31be   :  { %v4273_v7 = vmul.f32 1.442695, %v12748_v52 }
0x31c0   :  { %11251 = vpow2.f32 %v4273_v7 }
0x31cd   :  { %v11252_v9 = vpop.eup %11251  ;;  %v11097_v19 = vpop.f32.mrf.mxu0 }
0x31ce   :  { %v10999_v2 = vpop.f32.mrf.mxu1  ;;  %v4275_v12 = vsel %vm2252_vm11, %v11252_v9, 0.0 }
0x31cf   :  { %8883 = vst [vmem:[#allocation12 + $0x8] sm:$0xff] %v10999_v2  ;;  %v7461_v13 = vpop.f32.mrf.mxu0  ;;  %4276 = vadd.xlane.f32.xlu1 %v4275_v12 }
0x31d0   :  { %v7074_v14 = vpop.f32.mrf.mxu1  ;;  %9514 = vmatmul.mubr.msk.f32.vlgmr.msra.gmra.mxu1 %vm728_vm5, %v7461_v13  ;;  %9580 = vmatmul.mubr.msk.f32.vlgmr.msra.gmra.mxu0 %vm728_vm5, %v7461_v13 }
0x31d1   :  { %8882 = vst [vmem:[#allocation12] sm:$0xff] %v7074_v14  ;;  %8054 = vmatprep.mubr.f32.mxu1 %v11435_v0  ;;  %8503 = vmatprep.mubr.f32.mxu0 %v11435_v0 }
0x31d4   :  { %9515 = vmatmul.mubr.msk.f32.gmra.mxu1 %vm728_vm5, %v11097_v19  ;;  %9581 = vmatmul.mubr.msk.f32.gmra.mxu0 %vm728_vm5, %v11097_v19 }
0x31d5   :  { %v11100_v49 = vpop.f32.mrf.mxu0  ;;  %v11002_v15 = vpop.f32.mrf.mxu1  ;;  %8060 = vmatprep.mubr.f32.mxu1 %v11435_v0  ;;  %8509 = vmatprep.mubr.f32.mxu0 %v11435_v0 }
0x31d6   :  { %8885 = vst [vmem:[#allocation12 + $0x18] sm:$0xff] %v11002_v15 }
0x31d7   :  { %v7471_v18 = vpop.f32.mrf.mxu0  ;;  %v7084_v30 = vpop.f32.mrf.mxu1 }
0x31d8   :  { %8884 = vst [vmem:[#allocation12 + $0x10] sm:$0xff] %v7084_v30  ;;  %9516 = vmatmul.mubr.msk.f32.gmra.mxu1 %vm728_vm5, %v7471_v18  ;;  %9582 = vmatmul.mubr.msk.f32.gmra.mxu0 %vm728_vm5, %v7471_v18 }
0x31d9   :  { %8066 = vmatprep.mubr.f32.mxu1 %v11435_v0  ;;  %8515 = vmatprep.mubr.f32.mxu0 %v11435_v0 }
0x31dc   :  { %9517 = vmatmul.mubr.msk.f32.gmra.mxu1 %vm728_vm5, %v11100_v49  ;;  %9583 = vmatmul.mubr.msk.f32.gmra.mxu0 %vm728_vm5, %v11100_v49 }
0x31dd   :  { %v11103_v33 = vpop.f32.mrf.mxu0  ;;  %v11005_v34 = vpop.f32.mrf.mxu1  ;;  %8072 = vmatprep.mubr.f32.mxu1 %v11435_v0  ;;  %8521 = vmatprep.mubr.f32.mxu0 %v11435_v0 }
0x31de   :  { %8887 = vst [vmem:[#allocation12 + $0x28] sm:$0xff] %v11005_v34 }
0x31df   :  { %v7481_v35 = vpop.f32.mrf.mxu0  ;;  %v7094_v36 = vpop.f32.mrf.mxu1 }
0x31e0   :  { %8886 = vst [vmem:[#allocation12 + $0x20] sm:$0xff] %v7094_v36  ;;  %9518 = vmatmul.mubr.msk.f32.gmra.mxu1 %vm728_vm5, %v7481_v35  ;;  %9584 = vmatmul.mubr.msk.f32.gmra.mxu0 %vm728_vm5, %v7481_v35 }
0x31e1   :  { %8078 = vmatprep.mubr.f32.mxu1 %v11435_v0  ;;  %8527 = vmatprep.mubr.f32.mxu0 %v11435_v0 }
0x31e4   :  { %9519 = vmatmul.mubr.msk.f32.gmra.mxu1 %vm728_vm5, %v11103_v33  ;;  %9585 = vmatmul.mubr.msk.f32.gmra.mxu0 %vm728_vm5, %v11103_v33 }
0x31e5   :  { %v11106_v39 = vpop.f32.mrf.mxu0  ;;  %v11008_v41 = vpop.f32.mrf.mxu1  ;;  %8084 = vmatprep.mubr.f32.mxu1 %v11435_v0  ;;  %8533 = vmatprep.mubr.f32.mxu0 %v11435_v0 }
0x31e6   :  { %8889 = vst [vmem:[#allocation12 + $0x38] sm:$0xff] %v11008_v41 }
0x31e7   :  { %v7491_v47 = vpop.f32.mrf.mxu0  ;;  %v7104_v53 = vpop.f32.mrf.mxu1 }
0x31e8   :  { %8888 = vst [vmem:[#allocation12 + $0x30] sm:$0xff] %v7104_v53  ;;  %9520 = vmatmul.mubr.msk.f32.gmra.mxu1 %vm728_vm5, %v7491_v47  ;;  %9586 = vmatmul.mubr.msk.f32.gmra.mxu0 %vm728_vm5, %v7491_v47 }
0x31e9   :  { %8090 = vmatprep.mubr.f32.mxu1 %v11435_v0  ;;  %8539 = vmatprep.mubr.f32.mxu0 %v11435_v0 }
0x31ec   :  { %9521 = vmatmul.mubr.msk.f32.gmra.mxu1 %vm728_vm5, %v11106_v39  ;;  %9587 = vmatmul.mubr.msk.f32.gmra.mxu0 %vm728_vm5, %v11106_v39 }
0x31ed   :  { %v11109_v54 = vpop.f32.mrf.mxu0  ;;  %v11011_v55 = vpop.f32.mrf.mxu1  ;;  %8096 = vmatprep.mubr.f32.mxu1 %v11435_v0  ;;  %8545 = vmatprep.mubr.f32.mxu0 %v11435_v0 }
0x31ee   :  { %8891 = vst [vmem:[#allocation12 + $0x48] sm:$0xff] %v11011_v55 }
0x31ef   :  { %v7501_v6 = vpop.f32.mrf.mxu0  ;;  %v7114_v56 = vpop.f32.mrf.mxu1 }
0x31f0   :  { %8890 = vst [vmem:[#allocation12 + $0x40] sm:$0xff] %v7114_v56  ;;  %9522 = vmatmul.mubr.msk.f32.gmra.mxu1 %vm728_vm5, %v7501_v6  ;;  %9588 = vmatmul.mubr.msk.f32.gmra.mxu0 %vm728_vm5, %v7501_v6 }
0x31f1   :  { %8102 = vmatprep.mubr.f32.mxu1 %v11435_v0  ;;  %8551 = vmatprep.mubr.f32.mxu0 %v11435_v0 }
0x31f4   :  { %9523 = vmatmul.mubr.msk.f32.gmra.mxu1 %vm728_vm5, %v11109_v54  ;;  %9589 = vmatmul.mubr.msk.f32.gmra.mxu0 %vm728_vm5, %v11109_v54 }
0x31f5   :  { %v11112_v57 = vpop.f32.mrf.mxu0  ;;  %v11014_v58 = vpop.f32.mrf.mxu1  ;;  %8108 = vmatprep.mubr.f32.mxu1 %v11435_v0  ;;  %8557 = vmatprep.mubr.f32.mxu0 %v11435_v0 }
0x31f6   :  { %8893 = vst [vmem:[#allocation12 + $0x58] sm:$0xff] %v11014_v58 }
0x31f7   :  { %v7511_v23 = vpop.f32.mrf.mxu0  ;;  %v7124_v21 = vpop.f32.mrf.mxu1 }
0x31f8   :  { %8892 = vst [vmem:[#allocation12 + $0x50] sm:$0xff] %v7124_v21  ;;  %9524 = vmatmul.mubr.msk.f32.gmra.mxu1 %vm728_vm5, %v7511_v23  ;;  %9590 = vmatmul.mubr.msk.f32.gmra.mxu0 %vm728_vm5, %v7511_v23 }
0x31f9   :  { %8114 = vmatprep.mubr.f32.mxu1 %v11435_v0  ;;  %8563 = vmatprep.mubr.f32.mxu0 %v11435_v0 }
0x31fc   :  { %9525 = vmatmul.mubr.msk.f32.gmra.mxu1 %vm728_vm5, %v11112_v57  ;;  %9591 = vmatmul.mubr.msk.f32.gmra.mxu0 %vm728_vm5, %v11112_v57 }
0x31fd   :  { %v11115_v29 = vpop.f32.mrf.mxu0  ;;  %v11017_v22 = vpop.f32.mrf.mxu1  ;;  %8120 = vmatprep.mubr.f32.mxu1 %v11435_v0  ;;  %8569 = vmatprep.mubr.f32.mxu0 %v11435_v0 }
0x31fe   :  { %8895 = vst [vmem:[#allocation12 + $0x68] sm:$0xff] %v11017_v22 }
0x31ff   :  { %v7521_v32 = vpop.f32.mrf.mxu0  ;;  %v7134_v59 = vpop.f32.mrf.mxu1 }
0x3200   :  { %8894 = vst [vmem:[#allocation12 + $0x60] sm:$0xff] %v7134_v59  ;;  %9526 = vmatmul.mubr.msk.f32.gmra.mxu1 %vm728_vm5, %v7521_v32  ;;  %9592 = vmatmul.mubr.msk.f32.gmra.mxu0 %vm728_vm5, %v7521_v32 }
0x3201   :  { %8126 = vmatprep.mubr.f32.mxu1 %v11435_v0  ;;  %8575 = vmatprep.mubr.f32.mxu0 %v11435_v0 }
0x3204   :  { %9527 = vmatmul.mubr.msk.f32.gmra.mxu1 %vm728_vm5, %v11115_v29  ;;  %9593 = vmatmul.mubr.msk.f32.gmra.mxu0 %vm728_vm5, %v11115_v29 }
0x3205   :  { %v11118_v60 = vpop.f32.mrf.mxu0  ;;  %v11020_v4 = vpop.f32.mrf.mxu1  ;;  %8132 = vmatprep.mubr.f32.mxu1 %v11435_v0  ;;  %8581 = vmatprep.mubr.f32.mxu0 %v11435_v0 }
0x3206   :  { %8897 = vst [vmem:[#allocation12 + $0x78] sm:$0xff] %v11020_v4 }
0x3207   :  { %v7531_v5 = vpop.f32.mrf.mxu0  ;;  %v7144_v8 = vpop.f32.mrf.mxu1 }
0x3208   :  { %8896 = vst [vmem:[#allocation12 + $0x70] sm:$0xff] %v7144_v8  ;;  %9528 = vmatmul.mubr.msk.f32.gmra.mxu1 %vm728_vm5, %v7531_v5  ;;  %9594 = vmatmul.mubr.msk.f32.gmra.mxu0 %vm728_vm5, %v7531_v5 }
0x3209   :  { %8138 = vmatprep.mubr.f32.mxu1 %v11435_v0  ;;  %8587 = vmatprep.mubr.f32.mxu0 %v11435_v0  ;;  %v11121_v1 = vpop.f32.mrf.mxu0  ;;  %v11023_v10 = vpop.f32.mrf.mxu1 }
0x320a   :  { %8899 = vst [vmem:[#allocation12 + $0x88] sm:$0xff] %v11023_v10 }
0x320b   :  { %v7541_v16 = vpop.f32.mrf.mxu0  ;;  %v7154_v11 = vpop.f32.mrf.mxu1 }
0x320c   :  { %9529 = vmatmul.mubr.msk.f32.gmra.mxu1 %vm728_vm5, %v11118_v60  ;;  %9595 = vmatmul.mubr.msk.f32.gmra.mxu0 %vm728_vm5, %v11118_v60  ;;  %8898 = vst [vmem:[#allocation12 + $0x80] sm:$0xff] %v7154_v11 }
0x320d   :  { %8144 = vmatprep.mubr.f32.mxu1 %v11435_v0  ;;  %8593 = vmatprep.mubr.f32.mxu0 %v11435_v0  ;;  %v11124_v37 = vpop.f32.mrf.mxu0  ;;  %v11026_v38 = vpop.f32.mrf.mxu1 }
0x320e   :  { %8901 = vst [vmem:[#allocation12 + $0x98] sm:$0xff] %v11026_v38 }
0x320f   :  { %v7551_v40 = vpop.f32.mrf.mxu0  ;;  %v7164_v42 = vpop.f32.mrf.mxu1 }
0x3210   :  { %9530 = vmatmul.mubr.msk.f32.gmra.mxu1 %vm728_vm5, %v7541_v16  ;;  %9596 = vmatmul.mubr.msk.f32.gmra.mxu0 %vm728_vm5, %v7541_v16  ;;  %8900 = vst [vmem:[#allocation12 + $0x90] sm:$0xff] %v7164_v42 }
0x3211   :  { %8150 = vmatprep.mubr.f32.mxu1 %v11435_v0  ;;  %8599 = vmatprep.mubr.f32.mxu0 %v11435_v0  ;;  %v11029_v43 = vpop.f32.mrf.mxu1  ;;  %v11127_v44 = vpop.f32.mrf.mxu0 }
0x3212   :  { %8903 = vst [vmem:[#allocation12 + $0xa8] sm:$0xff] %v11029_v43 }
0x3213   :  { %v7174_v45 = vpop.f32.mrf.mxu1  ;;  %v7561_v46 = vpop.f32.mrf.mxu0 }
0x3214   :  { %9531 = vmatmul.mubr.msk.f32.gmra.mxu1 %vm728_vm5, %v11121_v1  ;;  %9597 = vmatmul.mubr.msk.f32.gmra.mxu0 %vm728_vm5, %v11121_v1  ;;  %8902 = vst [vmem:[#allocation12 + $0xa0] sm:$0xff] %v7174_v45 }
0x3215   :  { %8156 = vmatprep.mubr.f32.mxu1 %v11435_v0  ;;  %8605 = vmatprep.mubr.f32.mxu0 %v11435_v0  ;;  %v11032_v48 = vpop.f32.mrf.mxu1  ;;  %v11130_v31 = vpop.f32.mrf.mxu0 }
0x3216   :  { %8905 = vst [vmem:[#allocation12 + $0xb8] sm:$0xff] %v11032_v48 }
0x3217   :  { %v7184_v3 = vpop.f32.mrf.mxu1  ;;  %v7571_v63 = vpop.f32.mrf.mxu0 }
0x3218   :  { %9532 = vmatmul.mubr.msk.f32.gmra.mxu1 %vm728_vm5, %v7551_v40  ;;  %9598 = vmatmul.mubr.msk.f32.gmra.mxu0 %vm728_vm5, %v7551_v40  ;;  %8904 = vst [vmem:[#allocation12 + $0xb0] sm:$0xff] %v7184_v3 }
0x3219   :  { %8162 = vmatprep.mubr.f32.mxu1 %v11435_v0  ;;  %8611 = vmatprep.mubr.f32.mxu0 %v11435_v0  ;;  %v11035_v50 = vpop.f32.mrf.mxu1  ;;  %v12828_v24 = vpop.f32.mrf.mxu0 }
0x321a   :  { %8907 = vst [vmem:[#allocation12 + $0xc8] sm:$0xff] %v11035_v50 }
0x321b   :  { %v7194_v25 = vpop.f32.mrf.mxu1  ;;  %v7581_v26 = vpop.f32.mrf.mxu0 }
0x321c   :  { %9533 = vmatmul.mubr.msk.f32.gmra.mxu1 %vm728_vm5, %v11124_v37  ;;  %9599 = vmatmul.mubr.msk.f32.gmra.mxu0 %vm728_vm5, %v11124_v37  ;;  %8906 = vst [vmem:[#allocation12 + $0xc0] sm:$0xff] %v7194_v25 }
0x321d   :  { %8168 = vmatprep.mubr.f32.mxu1 %v11435_v0  ;;  %8617 = vmatprep.mubr.f32.mxu0 %v11435_v0  ;;  %v11038_v27 = vpop.f32.mrf.mxu1  ;;  %v12834_v28 = vpop.f32.mrf.mxu0 }
0x321e   :  { %8909 = vst [vmem:[#allocation12 + $0xd8] sm:$0xff] %v11038_v27 }
0x321f   :  { %v7204_v62 = vpop.f32.mrf.mxu1  ;;  %v7591_v20 = vpop.f32.mrf.mxu0 }
0x3220   :  { %9534 = vmatmul.mubr.msk.f32.gmra.mxu1 %vm728_vm5, %v7561_v46  ;;  %9600 = vmatmul.mubr.msk.f32.gmra.mxu0 %vm728_vm5, %v7561_v46  ;;  %8908 = vst [vmem:[#allocation12 + $0xd0] sm:$0xff] %v7204_v62 }
0x3221   :  { %8174 = vmatprep.mubr.f32.mxu1 %v11435_v0  ;;  %8623 = vmatprep.mubr.f32.mxu0 %v11435_v0  ;;  %v11041_v51 = vpop.f32.mrf.mxu1  ;;  %v12840_v17 = vpop.f32.mrf.mxu0 }
0x3222   :  { %8911 = vst [vmem:[#allocation12 + $0xe8] sm:$0xff] %v11041_v51 }
0x3223   :  { %v7214_v61 = vpop.f32.mrf.mxu1  ;;  %v12842_v7 = vpop.f32.mrf.mxu0 }
0x3224   :  { %9535 = vmatmul.mubr.msk.f32.gmra.mxu1 %vm728_vm5, %v11127_v44  ;;  %9601 = vmatmul.mubr.msk.f32.gmra.mxu0 %vm728_vm5, %v11127_v44  ;;  %8910 = vst [vmem:[#allocation12 + $0xe0] sm:$0xff] %v7214_v61 }
0x3225   :  { %8180 = vmatprep.mubr.f32.mxu1 %v11435_v0  ;;  %8629 = vmatprep.mubr.f32.mxu0 %v11435_v0  ;;  %v11044_v9 = vpop.f32.mrf.mxu1  ;;  %v12848_v19 = vpop.f32.mrf.mxu0 }
0x3226   :  { %8913 = vst [vmem:[#allocation12 + $0xf8] sm:$0xff] %v11044_v9 }
0x3227   :  { %v7224_v2 = vpop.f32.mrf.mxu1  ;;  %v12850_v12 = vpop.f32.mrf.mxu0 }
0x3228   :  { %9536 = vmatmul.mubr.msk.f32.gmra.mxu1 %vm728_vm5, %v7571_v63  ;;  %9602 = vmatmul.mubr.msk.f32.gmra.mxu0 %vm728_vm5, %v7571_v63  ;;  %8912 = vst [vmem:[#allocation12 + $0xf0] sm:$0xff] %v7224_v2 }
0x3229   :  { %8186 = vmatprep.mubr.f32.mxu1 %v11435_v0  ;;  %8635 = vmatprep.mubr.f32.mxu0 %v11435_v0  ;;  %v11047_v13 = vpop.f32.mrf.mxu1  ;;  %v12856_v14 = vpop.f32.mrf.mxu0 }
0x322a   :  { %8915 = vst [vmem:[#allocation12 + $0x108] sm:$0xff] %v11047_v13 }
0x322b   :  { %v7234_v49 = vpop.f32.mrf.mxu1  ;;  %v12858_v15 = vpop.f32.mrf.mxu0 }
0x322c   :  { %9537 = vmatmul.mubr.msk.f32.gmra.mxu1 %vm728_vm5, %v11130_v31  ;;  %9603 = vmatmul.mubr.msk.f32.gmra.mxu0 %vm728_vm5, %v11130_v31  ;;  %8914 = vst [vmem:[#allocation12 + $0x100] sm:$0xff] %v7234_v49 }
0x322d   :  { %8192 = vmatprep.mubr.f32.mxu1 %v11435_v0  ;;  %8641 = vmatprep.mubr.f32.mxu0 %v11435_v0  ;;  %v11050_v18 = vpop.f32.mrf.mxu1  ;;  %v12864_v30 = vpop.f32.mrf.mxu0 }
0x322e   :  { %8917 = vst [vmem:[#allocation12 + $0x118] sm:$0xff] %v11050_v18 }
0x322f   :  { %v7244_v33 = vpop.f32.mrf.mxu1  ;;  %v12866_v34 = vpop.f32.mrf.mxu0 }
0x3230   :  { %9538 = vmatmul.mubr.msk.f32.gmra.mxu1 %vm728_vm5, %v7581_v26  ;;  %9604 = vmatmul.mubr.msk.f32.gmra.mxu0 %vm728_vm5, %v7581_v26  ;;  %8916 = vst [vmem:[#allocation12 + $0x110] sm:$0xff] %v7244_v33 }
0x3231   :  { %8198 = vmatprep.mubr.f32.mxu1 %v11435_v0  ;;  %8647 = vmatprep.mubr.f32.mxu0 %v11435_v0  ;;  %v11053_v35 = vpop.f32.mrf.mxu1  ;;  %v12872_v36 = vpop.f32.mrf.mxu0 }
0x3232   :  { %8919 = vst [vmem:[#allocation12 + $0x128] sm:$0xff] %v11053_v35 }
0x3233   :  { %v7254_v39 = vpop.f32.mrf.mxu1  ;;  %v12878_v41 = vpop.f32.mrf.mxu0 }
0x3234   :  { %9539 = vmatmul.mubr.msk.f32.gmra.mxu1 %vm728_vm5, %v12828_v24  ;;  %9605 = vmatmul.mubr.msk.f32.gmra.mxu0 %vm728_vm5, %v12828_v24  ;;  %8918 = vst [vmem:[#allocation12 + $0x120] sm:$0xff] %v7254_v39 }
0x3235   :  { %8204 = vmatprep.mubr.f32.mxu1 %v11435_v0  ;;  %8653 = vmatprep.mubr.f32.mxu0 %v11435_v0  ;;  %v11056_v47 = vpop.f32.mrf.mxu1  ;;  %v12884_v54 = vpop.f32.mrf.mxu0 }
0x3236   :  { %8921 = vst [vmem:[#allocation12 + $0x138] sm:$0xff] %v11056_v47 }
0x3237   :  { %v7264_v53 = vpop.f32.mrf.mxu1  ;;  %v12892_v56 = vpop.f32.mrf.mxu0 }
0x3238   :  { %9540 = vmatmul.mubr.msk.f32.gmra.mxu1 %vm728_vm5, %v7591_v20  ;;  %9606 = vmatmul.mubr.msk.f32.gmra.mxu0 %vm728_vm5, %v7591_v20  ;;  %8920 = vst [vmem:[#allocation12 + $0x130] sm:$0xff] %v7264_v53 }
0x3239   :  { %8210 = vmatprep.mubr.f32.mxu1 %v11435_v0  ;;  %8659 = vmatprep.mubr.f32.mxu0 %v11435_v0  ;;  %v11059_v55 = vpop.f32.mrf.mxu1  ;;  %v12900_v23 = vpop.f32.mrf.mxu0 }
0x323a   :  { %8923 = vst [vmem:[#allocation12 + $0x148] sm:$0xff] %v11059_v55 }
0x323b   :  { %v7274_v6 = vpop.f32.mrf.mxu1  ;;  %v12908_v22 = vpop.f32.mrf.mxu0 }
0x323c   :  { %9541 = vmatmul.mubr.msk.f32.gmra.mxu1 %vm728_vm5, %v12834_v28  ;;  %9607 = vmatmul.mubr.msk.f32.gmra.mxu0 %vm728_vm5, %v12834_v28  ;;  %8922 = vst [vmem:[#allocation12 + $0x140] sm:$0xff] %v7274_v6 }
0x323d   :  { %8216 = vmatprep.mubr.f32.mxu1 %v11435_v0  ;;  %8665 = vmatprep.mubr.f32.mxu0 %v11435_v0  ;;  %v11062_v57 = vpop.f32.mrf.mxu1  ;;  %v12916_v60 = vpop.f32.mrf.mxu0 }
0x323e   :  { %8925 = vst [vmem:[#allocation12 + $0x158] sm:$0xff] %v11062_v57 }
0x323f   :  { %v7284_v58 = vpop.f32.mrf.mxu1  ;;  %v12920_v8 = vpop.f32.mrf.mxu0 }
0x3240   :  { %9542 = vmatmul.mubr.msk.f32.gmra.mxu1 %vm728_vm5, %v12842_v7  ;;  %9608 = vmatmul.mubr.msk.f32.gmra.mxu0 %vm728_vm5, %v12842_v7  ;;  %8924 = vst [vmem:[#allocation12 + $0x150] sm:$0xff] %v7284_v58 }
0x3241   :  { %8222 = vmatprep.mubr.f32.mxu1 %v11435_v0  ;;  %8671 = vmatprep.mubr.f32.mxu0 %v11435_v0  ;;  %v11065_v21 = vpop.f32.mrf.mxu1  ;;  %v12928_v16 = vpop.f32.mrf.mxu0 }
0x3242   :  { %8927 = vst [vmem:[#allocation12 + $0x168] sm:$0xff] %v11065_v21 }
0x3243   :  { %v7294_v29 = vpop.f32.mrf.mxu1  ;;  %v12936_v38 = vpop.f32.mrf.mxu0 }
0x3244   :  { %9543 = vmatmul.mubr.msk.f32.gmra.mxu1 %vm728_vm5, %v12840_v17  ;;  %9609 = vmatmul.mubr.msk.f32.gmra.mxu0 %vm728_vm5, %v12840_v17  ;;  %8926 = vst [vmem:[#allocation12 + $0x160] sm:$0xff] %v7294_v29 }
0x3245   :  { %8228 = vmatprep.mubr.f32.mxu1 %v11435_v0  ;;  %8677 = vmatprep.mubr.f32.mxu0 %v11435_v0  ;;  %v11068_v32 = vpop.f32.mrf.mxu1  ;;  %v12944_v43 = vpop.f32.mrf.mxu0 }
0x3246   :  { %8929 = vst [vmem:[#allocation12 + $0x178] sm:$0xff] %v11068_v32 }
0x3247   :  { %v7304_v59 = vpop.f32.mrf.mxu1  ;;  %v12952_v48 = vpop.f32.mrf.mxu0 }
0x3248   :  { %9544 = vmatmul.mubr.msk.f32.gmra.mxu1 %vm728_vm5, %v12850_v12  ;;  %9610 = vmatmul.mubr.msk.f32.gmra.mxu0 %vm728_vm5, %v12850_v12  ;;  %8928 = vst [vmem:[#allocation12 + $0x170] sm:$0xff] %v7304_v59 }
0x3249   :  { %8234 = vmatprep.mubr.f32.mxu1 %v11435_v0  ;;  %8683 = vmatprep.mubr.f32.mxu0 %v11435_v0  ;;  %v11071_v4 = vpop.f32.mrf.mxu1  ;;  %v12960_v63 = vpop.f32.mrf.mxu0 }
0x324a   :  { %8931 = vst [vmem:[#allocation12 + $0x188] sm:$0xff] %v11071_v4 }
0x324b   :  { %v7314_v5 = vpop.f32.mrf.mxu1  ;;  %v12968_v25 = vpop.f32.mrf.mxu0 }
0x324c   :  { %9545 = vmatmul.mubr.msk.f32.gmra.mxu1 %vm728_vm5, %v12848_v19  ;;  %9611 = vmatmul.mubr.msk.f32.gmra.mxu0 %vm728_vm5, %v12848_v19  ;;  %8930 = vst [vmem:[#allocation12 + $0x180] sm:$0xff] %v7314_v5 }
0x324d   :  { %8240 = vmatprep.mubr.f32.mxu1 %v11435_v0  ;;  %8689 = vmatprep.mubr.f32.mxu0 %v11435_v0  ;;  %v11074_v1 = vpop.f32.mrf.mxu1  ;;  %v12976_v28 = vpop.f32.mrf.mxu0 }
0x324e   :  { %8933 = vst [vmem:[#allocation12 + $0x198] sm:$0xff] %v11074_v1 }
0x324f   :  { %v7324_v10 = vpop.f32.mrf.mxu1  ;;  %v12985_v17 = vpop.f32.mrf.mxu0 }
0x3250   :  { %9546 = vmatmul.mubr.msk.f32.gmra.mxu1 %vm728_vm5, %v12858_v15  ;;  %9612 = vmatmul.mubr.msk.f32.gmra.mxu0 %vm728_vm5, %v12858_v15  ;;  %8932 = vst [vmem:[#allocation12 + $0x190] sm:$0xff] %v7324_v10 }
0x3251   :  { %8246 = vmatprep.mubr.f32.mxu1 %v11435_v0  ;;  %8695 = vmatprep.mubr.f32.mxu0 %v11435_v0  ;;  %v11077_v11 = vpop.f32.mrf.mxu1  ;;  %v12988_v61 = vpop.f32.mrf.mxu0 }
0x3252   :  { %8935 = vst [vmem:[#allocation12 + $0x1a8] sm:$0xff] %v11077_v11 }
0x3253   :  { %v7334_v37 = vpop.f32.mrf.mxu1 }
0x3254   :  { %9547 = vmatmul.mubr.msk.f32.gmra.mxu1 %vm728_vm5, %v12856_v14  ;;  %9613 = vmatmul.mubr.msk.f32.gmra.mxu0 %vm728_vm5, %v12856_v14  ;;  %8934 = vst [vmem:[#allocation12 + $0x1a0] sm:$0xff] %v7334_v37 }
0x3255   :  { %8252 = vmatprep.mubr.f32.mxu1 %v11435_v0  ;;  %8701 = vmatprep.mubr.f32.mxu0 %v11435_v0  ;;  %v11080_v40 = vpop.f32.mrf.mxu1 }
0x3256   :  { %8937 = vst [vmem:[#allocation12 + $0x1b8] sm:$0xff] %v11080_v40 }
0x3257   :  { %v7344_v42 = vpop.f32.mrf.mxu1 }
0x3258   :  { %9548 = vmatmul.mubr.msk.f32.gmra.mxu1 %vm728_vm5, %v12866_v34  ;;  %9614 = vmatmul.mubr.msk.f32.gmra.mxu0 %vm728_vm5, %v12866_v34  ;;  %v4277_v44 = vpop.xlane.xlu1 %4276  ;;  %8936 = vst [vmem:[#allocation12 + $0x1b0] sm:$0xff] %v7344_v42 }
0x3259   :  { %11253 = vlog2.f32 %v4277_v44  ;;  %8258 = vmatprep.mubr.f32.mxu1 %v11435_v0  ;;  %8707 = vmatprep.mubr.f32.mxu0 %v11435_v0  ;;  %v11083_v45 = vpop.f32.mrf.mxu1 }
0x325a   :  { %8939 = vst [vmem:[#allocation12 + $0x1c8] sm:$0xff] %v11083_v45 }
0x325b   :  { %v7354_v46 = vpop.f32.mrf.mxu1 }
0x325c   :  { %9549 = vmatmul.mubr.msk.f32.gmra.mxu1 %vm728_vm5, %v12864_v30  ;;  %9615 = vmatmul.mubr.msk.f32.gmra.mxu0 %vm728_vm5, %v12864_v30  ;;  %8938 = vst [vmem:[#allocation12 + $0x1c0] sm:$0xff] %v7354_v46 }
0x325d   :  { %8264 = vmatprep.mubr.f32.mxu1 %v11435_v0  ;;  %8713 = vmatprep.mubr.f32.mxu0 %v11435_v0  ;;  %v11086_v31 = vpop.f32.mrf.mxu1 }
0x325e   :  { %8941 = vst [vmem:[#allocation12 + $0x1d8] sm:$0xff] %v11086_v31 }
0x325f   :  { %v7364_v3 = vpop.f32.mrf.mxu1 }
0x3260   :  { %9550 = vmatmul.mubr.msk.f32.gmra.mxu1 %vm728_vm5, %v12878_v41  ;;  %9616 = vmatmul.mubr.msk.f32.gmra.mxu0 %vm728_vm5, %v12878_v41  ;;  %8940 = vst [vmem:[#allocation12 + $0x1d0] sm:$0xff] %v7364_v3 }
0x3261   :  { %8270 = vmatprep.mubr.f32.mxu1 %v11435_v0  ;;  %8719 = vmatprep.mubr.f32.mxu0 %v11435_v0  ;;  %v11089_v50 = vpop.f32.mrf.mxu1 }
0x3262   :  { %8943 = vst [vmem:[#allocation12 + $0x1e8] sm:$0xff] %v11089_v50 }
0x3263   :  { %v7374_v24 = vpop.f32.mrf.mxu1 }
0x3264   :  { %9551 = vmatmul.mubr.msk.f32.gmra.mxu1 %vm728_vm5, %v12872_v36  ;;  %9617 = vmatmul.mubr.msk.f32.gmra.mxu0 %vm728_vm5, %v12872_v36  ;;  %8942 = vst [vmem:[#allocation12 + $0x1e0] sm:$0xff] %v7374_v24 }
0x3265   :  { %8276 = vmatprep.mubr.f32.mxu1 %v11435_v0  ;;  %8725 = vmatprep.mubr.f32.mxu0 %v11435_v0  ;;  %v11092_v26 = vpop.f32.mrf.mxu1 }
0x3266   :  { %v11254_v27 = vpop.eup %11253  ;;  %8945 = vst [vmem:[#allocation12 + $0x1f8] sm:$0xff] %v11092_v26 }
0x3267   :  { %v4279_v62 = vmul.f32 0.6931472, %v11254_v27  ;;  %v7384_v20 = vpop.f32.mrf.mxu1 }
0x3268   :  { %9552 = vmatmul.mubr.msk.f32.gmra.mxu1 %vm728_vm5, %v12892_v56  ;;  %9618 = vmatmul.mubr.msk.f32.gmra.mxu0 %vm728_vm5, %v12892_v56  ;;  %8944 = vst [vmem:[#allocation12 + $0x1f0] sm:$0xff] %v7384_v20 }
0x3269   :  { %v4280_v51 = vsub.f32 %v12748_v52, %v4279_v62  ;;  %8282 = vmatprep.mubr.f32.mxu1 %v11435_v0  ;;  %8731 = vmatprep.mubr.f32.mxu0 %v11435_v0  ;;  %v12996_v52 = vpop.f32.mrf.mxu0 }
0x326b   :  { %4281 = vst.msk [vmem:[#allocation11 + $0x1] sm:$0x1] %vm2252_vm11, %v4280_v51  ;;  %v13004_v7 = vpop.f32.mrf.mxu0 }
0x326c   :  { %9553 = vmatmul.mubr.msk.f32.gmra.mxu1 %vm728_vm5, %v12884_v54  ;;  %9619 = vmatmul.mubr.msk.f32.gmra.mxu0 %vm728_vm5, %v12884_v54 }
0x326d   :  { %8288 = vmatprep.mubr.f32.mxu1 %v11435_v0  ;;  %8737 = vmatprep.mubr.f32.mxu0 %v11435_v0  ;;  %v13012_v9 = vpop.f32.mrf.mxu0 }
0x326f   :  { %v13014_v19 = vpop.f32.mrf.mxu0 }
0x3270   :  { %9554 = vmatmul.mubr.msk.f32.gmra.mxu1 %vm728_vm5, %v12908_v22  ;;  %9620 = vmatmul.mubr.msk.f32.gmra.mxu0 %vm728_vm5, %v12908_v22 }
0x3271   :  { %8294 = vmatprep.mubr.f32.mxu1 %v11435_v0  ;;  %8743 = vmatprep.mubr.f32.mxu0 %v11435_v0  ;;  %v13022_v2 = vpop.f32.mrf.mxu0 }
0x3273   :  { %v13030_v12 = vpop.f32.mrf.mxu0 }
0x3274   :  { %9555 = vmatmul.mubr.msk.f32.gmra.mxu1 %vm728_vm5, %v12900_v23  ;;  %9621 = vmatmul.mubr.msk.f32.gmra.mxu0 %vm728_vm5, %v12900_v23 }
0x3275   :  { %8300 = vmatprep.mubr.f32.mxu1 %v11435_v0  ;;  %8749 = vmatprep.mubr.f32.mxu0 %v11435_v0  ;;  %v13038_v13 = vpop.f32.mrf.mxu0 }
0x3277   :  { %v13044_v14 = vpop.f32.mrf.mxu0 }
0x3278   :  { %9556 = vmatmul.mubr.msk.f32.gmra.mxu1 %vm728_vm5, %v12920_v8  ;;  %9622 = vmatmul.mubr.msk.f32.gmra.mxu0 %vm728_vm5, %v12920_v8 }
0x3279   :  { %8306 = vmatprep.mubr.f32.mxu1 %v11435_v0  ;;  %8755 = vmatprep.mubr.f32.mxu0 %v11435_v0  ;;  %v13048_v49 = vpop.f32.mrf.mxu0 }
0x327b   :  { %v13056_v15 = vpop.f32.mrf.mxu0 }
0x327c   :  { %9557 = vmatmul.mubr.msk.f32.gmra.mxu1 %vm728_vm5, %v12916_v60  ;;  %9623 = vmatmul.mubr.msk.f32.gmra.mxu0 %vm728_vm5, %v12916_v60 }
0x327d   :  { %8312 = vmatprep.mubr.f32.mxu1 %v11435_v0  ;;  %8761 = vmatprep.mubr.f32.mxu0 %v11435_v0  ;;  %v13064_v18 = vpop.f32.mrf.mxu0 }
0x3280   :  { %9558 = vmatmul.mubr.msk.f32.gmra.mxu1 %vm728_vm5, %v12936_v38  ;;  %9624 = vmatmul.mubr.msk.f32.gmra.mxu0 %vm728_vm5, %v12936_v38 }
0x3281   :  { %8318 = vmatprep.mubr.f32.mxu1 %v11435_v0  ;;  %8767 = vmatprep.mubr.f32.mxu0 %v11435_v0 }
0x3284   :  { %9559 = vmatmul.mubr.msk.f32.gmra.mxu1 %vm728_vm5, %v12928_v16  ;;  %9625 = vmatmul.mubr.msk.f32.gmra.mxu0 %vm728_vm5, %v12928_v16 }
0x3285   :  { %8324 = vmatprep.mubr.f32.mxu1 %v11435_v0  ;;  %8773 = vmatprep.mubr.f32.mxu0 %v11435_v0 }
0x3288   :  { %9560 = vmatmul.mubr.msk.f32.gmra.mxu1 %vm728_vm5, %v12952_v48  ;;  %9626 = vmatmul.mubr.msk.f32.gmra.mxu0 %vm728_vm5, %v12952_v48 }
0x3289   :  { %8330 = vmatprep.mubr.f32.mxu1 %v11435_v0  ;;  %8779 = vmatprep.mubr.f32.mxu0 %v11435_v0 }
0x328c   :  { %9561 = vmatmul.mubr.msk.f32.gmra.mxu1 %vm728_vm5, %v12944_v43  ;;  %9627 = vmatmul.mubr.msk.f32.gmra.mxu0 %vm728_vm5, %v12944_v43 }
0x328d   :  { %8336 = vmatprep.mubr.f32.mxu1 %v11435_v0  ;;  %8785 = vmatprep.mubr.f32.mxu0 %v11435_v0 }
0x3290   :  { %v8050_v30 = vpop.f32.mrf.mxu1  ;;  %9562 = vmatmul.mubr.msk.f32.gmra.mxu1 %vm728_vm5, %v12968_v25  ;;  %v8499_v33 = vpop.f32.mrf.mxu0  ;;  %9628 = vmatmul.mubr.msk.f32.gmra.mxu0 %vm728_vm5, %v12968_v25 }
0x3291   :  { %8946 = vst [vmem:[#allocation14] sm:$0xff] %v8050_v30  ;;  %8948 = vst [vmem:[#allocation14 + $0x10] sm:$0xff] %v8499_v33  ;;  %8342 = vmatprep.mubr.f32.mxu1 %v11435_v0  ;;  %8791 = vmatprep.mubr.f32.mxu0 %v11435_v0 }
0x3292   :  { %v8052_v34 = vpop.f32.mrf.mxu1  ;;  %v8501_v35 = vpop.f32.mrf.mxu0 }
0x3293   :  { %8947 = vst [vmem:[#allocation14 + $0x8] sm:$0xff] %v8052_v34  ;;  %8949 = vst [vmem:[#allocation14 + $0x18] sm:$0xff] %v8501_v35 }
0x3294   :  { %v8056_v36 = vpop.f32.mrf.mxu1  ;;  %9563 = vmatmul.mubr.msk.f32.gmra.mxu1 %vm728_vm5, %v12960_v63  ;;  %v8505_v39 = vpop.f32.mrf.mxu0  ;;  %9629 = vmatmul.mubr.msk.f32.gmra.mxu0 %vm728_vm5, %v12960_v63 }
0x3295   :  { %8950 = vst [vmem:[#allocation14 + $0x20] sm:$0xff] %v8056_v36  ;;  %8952 = vst [vmem:[#allocation14 + $0x30] sm:$0xff] %v8505_v39  ;;  %8348 = vmatprep.mubr.f32.mxu1 %v11435_v0  ;;  %8797 = vmatprep.mubr.f32.mxu0 %v11435_v0 }
0x3296   :  { %v8058_v41 = vpop.f32.mrf.mxu1  ;;  %v8507_v47 = vpop.f32.mrf.mxu0 }
0x3297   :  { %8951 = vst [vmem:[#allocation14 + $0x28] sm:$0xff] %v8058_v41  ;;  %8953 = vst [vmem:[#allocation14 + $0x38] sm:$0xff] %v8507_v47 }
0x3298   :  { %v8062_v53 = vpop.f32.mrf.mxu1  ;;  %9564 = vmatmul.mubr.msk.f32.gmra.mxu1 %vm728_vm5, %v12985_v17  ;;  %v8511_v54 = vpop.f32.mrf.mxu0  ;;  %9630 = vmatmul.mubr.msk.f32.gmra.mxu0 %vm728_vm5, %v12985_v17 }
0x3299   :  { %8954 = vst [vmem:[#allocation14 + $0x40] sm:$0xff] %v8062_v53  ;;  %8956 = vst [vmem:[#allocation14 + $0x50] sm:$0xff] %v8511_v54  ;;  %8354 = vmatprep.mubr.f32.mxu1 %v11435_v0  ;;  %8803 = vmatprep.mubr.f32.mxu0 %v11435_v0 }
0x329a   :  { %v8064_v55 = vpop.f32.mrf.mxu1  ;;  %v8513_v6 = vpop.f32.mrf.mxu0 }
0x329b   :  { %8955 = vst [vmem:[#allocation14 + $0x48] sm:$0xff] %v8064_v55  ;;  %8957 = vst [vmem:[#allocation14 + $0x58] sm:$0xff] %v8513_v6 }
0x329c   :  { %v8068_v56 = vpop.f32.mrf.mxu1  ;;  %9565 = vmatmul.mubr.msk.f32.gmra.mxu1 %vm728_vm5, %v12976_v28  ;;  %v8517_v57 = vpop.f32.mrf.mxu0  ;;  %9631 = vmatmul.mubr.msk.f32.gmra.mxu0 %vm728_vm5, %v12976_v28 }
0x329d   :  { %8958 = vst [vmem:[#allocation14 + $0x60] sm:$0xff] %v8068_v56  ;;  %8960 = vst [vmem:[#allocation14 + $0x70] sm:$0xff] %v8517_v57  ;;  %8360 = vmatprep.mubr.f32.mxu1 %v11435_v0  ;;  %8809 = vmatprep.mubr.f32.mxu0 %v11435_v0 }
0x329e   :  { %v8070_v58 = vpop.f32.mrf.mxu1  ;;  %v8519_v23 = vpop.f32.mrf.mxu0 }
0x329f   :  { %8959 = vst [vmem:[#allocation14 + $0x68] sm:$0xff] %v8070_v58  ;;  %8961 = vst [vmem:[#allocation14 + $0x78] sm:$0xff] %v8519_v23 }
0x32a0   :  { %v8074_v21 = vpop.f32.mrf.mxu1  ;;  %9566 = vmatmul.mubr.msk.f32.gmra.mxu1 %vm728_vm5, %v12996_v52  ;;  %v8523_v29 = vpop.f32.mrf.mxu0  ;;  %9632 = vmatmul.mubr.msk.f32.gmra.mxu0 %vm728_vm5, %v12996_v52 }
0x32a1   :  { %8962 = vst [vmem:[#allocation14 + $0x80] sm:$0xff] %v8074_v21  ;;  %8964 = vst [vmem:[#allocation14 + $0x90] sm:$0xff] %v8523_v29  ;;  %8366 = vmatprep.mubr.f32.mxu1 %v11435_v0  ;;  %8815 = vmatprep.mubr.f32.mxu0 %v11435_v0 }
0x32a2   :  { %v8076_v22 = vpop.f32.mrf.mxu1  ;;  %v8525_v32 = vpop.f32.mrf.mxu0 }
0x32a3   :  { %8963 = vst [vmem:[#allocation14 + $0x88] sm:$0xff] %v8076_v22  ;;  %8965 = vst [vmem:[#allocation14 + $0x98] sm:$0xff] %v8525_v32 }
0x32a4   :  { %v8080_v59 = vpop.f32.mrf.mxu1  ;;  %9567 = vmatmul.mubr.msk.f32.gmra.mxu1 %vm728_vm5, %v12988_v61  ;;  %v8529_v60 = vpop.f32.mrf.mxu0  ;;  %9633 = vmatmul.mubr.msk.f32.gmra.mxu0 %vm728_vm5, %v12988_v61 }
0x32a5   :  { %8966 = vst [vmem:[#allocation14 + $0xa0] sm:$0xff] %v8080_v59  ;;  %8968 = vst [vmem:[#allocation14 + $0xb0] sm:$0xff] %v8529_v60  ;;  %8372 = vmatprep.mubr.f32.mxu1 %v11435_v0  ;;  %8821 = vmatprep.mubr.f32.mxu0 %v11435_v0 }
0x32a6   :  { %v8082_v4 = vpop.f32.mrf.mxu1  ;;  %v8531_v5 = vpop.f32.mrf.mxu0 }
0x32a7   :  { %8967 = vst [vmem:[#allocation14 + $0xa8] sm:$0xff] %v8082_v4  ;;  %8969 = vst [vmem:[#allocation14 + $0xb8] sm:$0xff] %v8531_v5 }
0x32a8   :  { %v8086_v8 = vpop.f32.mrf.mxu1  ;;  %9568 = vmatmul.mubr.msk.f32.gmra.mxu1 %vm728_vm5, %v13012_v9  ;;  %v8535_v1 = vpop.f32.mrf.mxu0  ;;  %9634 = vmatmul.mubr.msk.f32.gmra.mxu0 %vm728_vm5, %v13012_v9 }
0x32a9   :  { %8970 = vst [vmem:[#allocation14 + $0xc0] sm:$0xff] %v8086_v8  ;;  %8972 = vst [vmem:[#allocation14 + $0xd0] sm:$0xff] %v8535_v1  ;;  %8378 = vmatprep.mubr.f32.mxu1 %v11435_v0  ;;  %8827 = vmatprep.mubr.f32.mxu0 %v11435_v0 }
0x32aa   :  { %v8088_v10 = vpop.f32.mrf.mxu1  ;;  %v8537_v16 = vpop.f32.mrf.mxu0 }
0x32ab   :  { %8971 = vst [vmem:[#allocation14 + $0xc8] sm:$0xff] %v8088_v10  ;;  %8973 = vst [vmem:[#allocation14 + $0xd8] sm:$0xff] %v8537_v16 }
0x32ac   :  { %v8092_v11 = vpop.f32.mrf.mxu1  ;;  %9569 = vmatmul.mubr.msk.f32.gmra.mxu1 %vm728_vm5, %v13004_v7  ;;  %v8541_v37 = vpop.f32.mrf.mxu0  ;;  %9635 = vmatmul.mubr.msk.f32.gmra.mxu0 %vm728_vm5, %v13004_v7 }
0x32ad   :  { %8974 = vst [vmem:[#allocation14 + $0xe0] sm:$0xff] %v8092_v11  ;;  %8976 = vst [vmem:[#allocation14 + $0xf0] sm:$0xff] %v8541_v37  ;;  %8384 = vmatprep.mubr.f32.mxu1 %v11435_v0  ;;  %8833 = vmatprep.mubr.f32.mxu0 %v11435_v0 }
0x32ae   :  { %v8094_v38 = vpop.f32.mrf.mxu1  ;;  %v8543_v40 = vpop.f32.mrf.mxu0 }
0x32af   :  { %8975 = vst [vmem:[#allocation14 + $0xe8] sm:$0xff] %v8094_v38  ;;  %8977 = vst [vmem:[#allocation14 + $0xf8] sm:$0xff] %v8543_v40 }
0x32b0   :  { %v8098_v42 = vpop.f32.mrf.mxu1  ;;  %9570 = vmatmul.mubr.msk.f32.gmra.mxu1 %vm728_vm5, %v13022_v2  ;;  %v8547_v43 = vpop.f32.mrf.mxu0  ;;  %9636 = vmatmul.mubr.msk.f32.gmra.mxu0 %vm728_vm5, %v13022_v2 }
0x32b1   :  { %8978 = vst [vmem:[#allocation14 + $0x100] sm:$0xff] %v8098_v42  ;;  %8980 = vst [vmem:[#allocation14 + $0x110] sm:$0xff] %v8547_v43  ;;  %8390 = vmatprep.mubr.f32.mxu1 %v11435_v0  ;;  %8839 = vmatprep.mubr.f32.mxu0 %v11435_v0 }
0x32b2   :  { %v8100_v44 = vpop.f32.mrf.mxu1  ;;  %v8549_v45 = vpop.f32.mrf.mxu0 }
0x32b3   :  { %8979 = vst [vmem:[#allocation14 + $0x108] sm:$0xff] %v8100_v44  ;;  %8981 = vst [vmem:[#allocation14 + $0x118] sm:$0xff] %v8549_v45 }
0x32b4   :  { %v8104_v46 = vpop.f32.mrf.mxu1  ;;  %9571 = vmatmul.mubr.msk.f32.gmra.mxu1 %vm728_vm5, %v13014_v19  ;;  %v8553_v48 = vpop.f32.mrf.mxu0  ;;  %9637 = vmatmul.mubr.msk.f32.gmra.mxu0 %vm728_vm5, %v13014_v19 }
0x32b5   :  { %8982 = vst [vmem:[#allocation14 + $0x120] sm:$0xff] %v8104_v46  ;;  %8984 = vst [vmem:[#allocation14 + $0x130] sm:$0xff] %v8553_v48  ;;  %8396 = vmatprep.mubr.f32.mxu1 %v11435_v0  ;;  %8845 = vmatprep.mubr.f32.mxu0 %v11435_v0 }
0x32b6   :  { %v8106_v31 = vpop.f32.mrf.mxu1  ;;  %v8555_v3 = vpop.f32.mrf.mxu0 }
0x32b7   :  { %8983 = vst [vmem:[#allocation14 + $0x128] sm:$0xff] %v8106_v31  ;;  %8985 = vst [vmem:[#allocation14 + $0x138] sm:$0xff] %v8555_v3 }
0x32b8   :  { %v8110_v63 = vpop.f32.mrf.mxu1  ;;  %9572 = vmatmul.mubr.msk.f32.gmra.mxu1 %vm728_vm5, %v13038_v13  ;;  %v8559_v50 = vpop.f32.mrf.mxu0  ;;  %9638 = vmatmul.mubr.msk.f32.gmra.mxu0 %vm728_vm5, %v13038_v13 }
0x32b9   :  { %8986 = vst [vmem:[#allocation14 + $0x140] sm:$0xff] %v8110_v63  ;;  %8988 = vst [vmem:[#allocation14 + $0x150] sm:$0xff] %v8559_v50  ;;  %8402 = vmatprep.mubr.f32.mxu1 %v11435_v0  ;;  %8851 = vmatprep.mubr.f32.mxu0 %v11435_v0 }
0x32ba   :  { %v8112_v24 = vpop.f32.mrf.mxu1  ;;  %v8561_v25 = vpop.f32.mrf.mxu0 }
0x32bb   :  { %8987 = vst [vmem:[#allocation14 + $0x148] sm:$0xff] %v8112_v24  ;;  %8989 = vst [vmem:[#allocation14 + $0x158] sm:$0xff] %v8561_v25 }
0x32bc   :  { %v8116_v26 = vpop.f32.mrf.mxu1  ;;  %9573 = vmatmul.mubr.msk.f32.gmra.mxu1 %vm728_vm5, %v13030_v12  ;;  %v8565_v27 = vpop.f32.mrf.mxu0  ;;  %9639 = vmatmul.mubr.msk.f32.gmra.mxu0 %vm728_vm5, %v13030_v12 }
0x32bd   :  { %8990 = vst [vmem:[#allocation14 + $0x160] sm:$0xff] %v8116_v26  ;;  %8992 = vst [vmem:[#allocation14 + $0x170] sm:$0xff] %v8565_v27  ;;  %8408 = vmatprep.mubr.f32.mxu1 %v11435_v0  ;;  %8857 = vmatprep.mubr.f32.mxu0 %v11435_v0 }
0x32be   :  { %v8118_v28 = vpop.f32.mrf.mxu1  ;;  %v8567_v62 = vpop.f32.mrf.mxu0 }
0x32bf   :  { %8991 = vst [vmem:[#allocation14 + $0x168] sm:$0xff] %v8118_v28  ;;  %8993 = vst [vmem:[#allocation14 + $0x178] sm:$0xff] %v8567_v62 }
0x32c0   :  { %v8122_v20 = vpop.f32.mrf.mxu1  ;;  %9574 = vmatmul.mubr.msk.f32.gmra.mxu1 %vm728_vm5, %v13048_v49  ;;  %v8571_v51 = vpop.f32.mrf.mxu0  ;;  %9640 = vmatmul.mubr.msk.f32.gmra.mxu0 %vm728_vm5, %v13048_v49 }
0x32c1   :  { %8994 = vst [vmem:[#allocation14 + $0x180] sm:$0xff] %v8122_v20  ;;  %8996 = vst [vmem:[#allocation14 + $0x190] sm:$0xff] %v8571_v51  ;;  %8414 = vmatprep.mubr.f32.mxu1 %v11435_v0  ;;  %8863 = vmatprep.mubr.f32.mxu0 %v11435_v0 }
0x32c2   :  { %v8124_v17 = vpop.f32.mrf.mxu1  ;;  %v8573_v61 = vpop.f32.mrf.mxu0 }
0x32c3   :  { %8995 = vst [vmem:[#allocation14 + $0x188] sm:$0xff] %v8124_v17  ;;  %8997 = vst [vmem:[#allocation14 + $0x198] sm:$0xff] %v8573_v61 }
0x32c4   :  { %v8128_v52 = vpop.f32.mrf.mxu1  ;;  %9575 = vmatmul.mubr.msk.f32.gmra.mxu1 %vm728_vm5, %v13044_v14  ;;  %v8577_v7 = vpop.f32.mrf.mxu0  ;;  %9641 = vmatmul.mubr.msk.f32.gmra.mxu0 %vm728_vm5, %v13044_v14 }
0x32c5   :  { %8998 = vst [vmem:[#allocation14 + $0x1a0] sm:$0xff] %v8128_v52  ;;  %9000 = vst [vmem:[#allocation14 + $0x1b0] sm:$0xff] %v8577_v7  ;;  %8420 = vmatprep.mubr.f32.mxu1 %v11435_v0  ;;  %8869 = vmatprep.mubr.f32.mxu0 %v11435_v0 }
0x32c6   :  { %v8130_v9 = vpop.f32.mrf.mxu1  ;;  %v8579_v19 = vpop.f32.mrf.mxu0 }
0x32c7   :  { %8999 = vst [vmem:[#allocation14 + $0x1a8] sm:$0xff] %v8130_v9  ;;  %9001 = vst [vmem:[#allocation14 + $0x1b8] sm:$0xff] %v8579_v19 }
0x32c8   :  { %v8134_v2 = vpop.f32.mrf.mxu1  ;;  %9576 = vmatmul.mubr.msk.f32.gmra.mxu1 %vm728_vm5, %v13064_v18  ;;  %v8583_v12 = vpop.f32.mrf.mxu0  ;;  %9642 = vmatmul.mubr.msk.f32.gmra.mxu0 %vm728_vm5, %v13064_v18 }
0x32c9   :  { %9002 = vst [vmem:[#allocation14 + $0x1c0] sm:$0xff] %v8134_v2  ;;  %9004 = vst [vmem:[#allocation14 + $0x1d0] sm:$0xff] %v8583_v12  ;;  %8426 = vmatprep.mubr.f32.mxu1 %v11435_v0  ;;  %8875 = vmatprep.mubr.f32.mxu0 %v11435_v0 }
0x32ca   :  { %v8136_v13 = vpop.f32.mrf.mxu1  ;;  %v8585_v14 = vpop.f32.mrf.mxu0 }
0x32cb   :  { %9003 = vst [vmem:[#allocation14 + $0x1c8] sm:$0xff] %v8136_v13  ;;  %9005 = vst [vmem:[#allocation14 + $0x1d8] sm:$0xff] %v8585_v14 }
0x32cc   :  { %v8140_v49 = vpop.f32.mrf.mxu1  ;;  %9577 = vmatmul.mubr.msk.f32.gmra.mxu1 %vm728_vm5, %v13056_v15  ;;  %v8589_v30 = vpop.f32.mrf.mxu0  ;;  %9643 = vmatmul.mubr.msk.f32.gmra.mxu0 %vm728_vm5, %v13056_v15 }
0x32cd   :  { %9006 = vst [vmem:[#allocation14 + $0x1e0] sm:$0xff] %v8140_v49  ;;  %9008 = vst [vmem:[#allocation14 + $0x1f0] sm:$0xff] %v8589_v30 }
0x32ce   :  { %v8142_v18 = vpop.f32.mrf.mxu1  ;;  %v8591_v33 = vpop.f32.mrf.mxu0 }
0x32cf   :  { %9007 = vst [vmem:[#allocation14 + $0x1e8] sm:$0xff] %v8142_v18  ;;  %9009 = vst [vmem:[#allocation14 + $0x1f8] sm:$0xff] %v8591_v33 }
0x32d0   :  { %v8146_v34 = vpop.f32.mrf.mxu1  ;;  %v8595_v0 = vpop.f32.mrf.mxu0 }
0x32d1   :  { %9010 = vst [vmem:[#allocation14 + $0x200] sm:$0xff] %v8146_v34  ;;  %9012 = vst [vmem:[#allocation14 + $0x210] sm:$0xff] %v8595_v0 }
0x32d2   :  { %v8148_v35 = vpop.f32.mrf.mxu1  ;;  %v8597_v36 = vpop.f32.mrf.mxu0 }
0x32d3   :  { %9011 = vst [vmem:[#allocation14 + $0x208] sm:$0xff] %v8148_v35  ;;  %9013 = vst [vmem:[#allocation14 + $0x218] sm:$0xff] %v8597_v36 }
0x32d4   :  { %v8152_v39 = vpop.f32.mrf.mxu1  ;;  %v8601_v41 = vpop.f32.mrf.mxu0 }
0x32d5   :  { %9014 = vst [vmem:[#allocation14 + $0x220] sm:$0xff] %v8152_v39  ;;  %9016 = vst [vmem:[#allocation14 + $0x230] sm:$0xff] %v8601_v41 }
0x32d6   :  { %v8154_v47 = vpop.f32.mrf.mxu1  ;;  %v8603_v15 = vpop.f32.mrf.mxu0 }
0x32d7   :  { %9015 = vst [vmem:[#allocation14 + $0x228] sm:$0xff] %v8154_v47  ;;  %9017 = vst [vmem:[#allocation14 + $0x238] sm:$0xff] %v8603_v15 }
0x32d8   :  { %v8158_v53 = vpop.f32.mrf.mxu1  ;;  %v8607_v54 = vpop.f32.mrf.mxu0 }
0x32d9   :  { %9018 = vst [vmem:[#allocation14 + $0x240] sm:$0xff] %v8158_v53  ;;  %9020 = vst [vmem:[#allocation14 + $0x250] sm:$0xff] %v8607_v54 }
0x32da   :  { %v8160_v55 = vpop.f32.mrf.mxu1  ;;  %v8609_v6 = vpop.f32.mrf.mxu0 }
0x32db   :  { %9019 = vst [vmem:[#allocation14 + $0x248] sm:$0xff] %v8160_v55  ;;  %9021 = vst [vmem:[#allocation14 + $0x258] sm:$0xff] %v8609_v6 }
0x32dc   :  { %v8164_v56 = vpop.f32.mrf.mxu1  ;;  %v8613_v57 = vpop.f32.mrf.mxu0 }
0x32dd   :  { %9022 = vst [vmem:[#allocation14 + $0x260] sm:$0xff] %v8164_v56  ;;  %9024 = vst [vmem:[#allocation14 + $0x270] sm:$0xff] %v8613_v57 }
0x32de   :  { %v8166_v58 = vpop.f32.mrf.mxu1  ;;  %v8615_v23 = vpop.f32.mrf.mxu0 }
0x32df   :  { %9023 = vst [vmem:[#allocation14 + $0x268] sm:$0xff] %v8166_v58  ;;  %9025 = vst [vmem:[#allocation14 + $0x278] sm:$0xff] %v8615_v23 }
0x32e0   :  { %v8170_v21 = vpop.f32.mrf.mxu1  ;;  %v8619_v29 = vpop.f32.mrf.mxu0 }
0x32e1   :  { %9026 = vst [vmem:[#allocation14 + $0x280] sm:$0xff] %v8170_v21  ;;  %9028 = vst [vmem:[#allocation14 + $0x290] sm:$0xff] %v8619_v29 }
0x32e2   :  { %v8172_v22 = vpop.f32.mrf.mxu1  ;;  %v8621_v32 = vpop.f32.mrf.mxu0 }
0x32e3   :  { %9027 = vst [vmem:[#allocation14 + $0x288] sm:$0xff] %v8172_v22  ;;  %9029 = vst [vmem:[#allocation14 + $0x298] sm:$0xff] %v8621_v32 }
0x32e4   :  { %v8176_v59 = vpop.f32.mrf.mxu1  ;;  %v8625_v60 = vpop.f32.mrf.mxu0 }
0x32e5   :  { %9030 = vst [vmem:[#allocation14 + $0x2a0] sm:$0xff] %v8176_v59  ;;  %9032 = vst [vmem:[#allocation14 + $0x2b0] sm:$0xff] %v8625_v60 }
0x32e6   :  { %v8178_v4 = vpop.f32.mrf.mxu1  ;;  %v8627_v5 = vpop.f32.mrf.mxu0 }
0x32e7   :  { %9031 = vst [vmem:[#allocation14 + $0x2a8] sm:$0xff] %v8178_v4  ;;  %9033 = vst [vmem:[#allocation14 + $0x2b8] sm:$0xff] %v8627_v5 }
0x32e8   :  { %v8182_v8 = vpop.f32.mrf.mxu1  ;;  %v8631_v1 = vpop.f32.mrf.mxu0 }
0x32e9   :  { %9034 = vst [vmem:[#allocation14 + $0x2c0] sm:$0xff] %v8182_v8  ;;  %9036 = vst [vmem:[#allocation14 + $0x2d0] sm:$0xff] %v8631_v1 }
0x32ea   :  { %v8184_v10 = vpop.f32.mrf.mxu1  ;;  %v8633_v16 = vpop.f32.mrf.mxu0 }
0x32eb   :  { %9035 = vst [vmem:[#allocation14 + $0x2c8] sm:$0xff] %v8184_v10  ;;  %9037 = vst [vmem:[#allocation14 + $0x2d8] sm:$0xff] %v8633_v16 }
0x32ec   :  { %v8188_v11 = vpop.f32.mrf.mxu1  ;;  %v8637_v37 = vpop.f32.mrf.mxu0 }
0x32ed   :  { %9038 = vst [vmem:[#allocation14 + $0x2e0] sm:$0xff] %v8188_v11  ;;  %9040 = vst [vmem:[#allocation14 + $0x2f0] sm:$0xff] %v8637_v37 }
0x32ee   :  { %v8190_v38 = vpop.f32.mrf.mxu1  ;;  %v8639_v40 = vpop.f32.mrf.mxu0 }
0x32ef   :  { %9039 = vst [vmem:[#allocation14 + $0x2e8] sm:$0xff] %v8190_v38  ;;  %9041 = vst [vmem:[#allocation14 + $0x2f8] sm:$0xff] %v8639_v40 }
0x32f0   :  { %v8194_v42 = vpop.f32.mrf.mxu1  ;;  %v8643_v43 = vpop.f32.mrf.mxu0 }
0x32f1   :  { %9042 = vst [vmem:[#allocation14 + $0x300] sm:$0xff] %v8194_v42  ;;  %9044 = vst [vmem:[#allocation14 + $0x310] sm:$0xff] %v8643_v43 }
0x32f2   :  { %v8196_v44 = vpop.f32.mrf.mxu1  ;;  %v8645_v45 = vpop.f32.mrf.mxu0 }
0x32f3   :  { %9043 = vst [vmem:[#allocation14 + $0x308] sm:$0xff] %v8196_v44  ;;  %9045 = vst [vmem:[#allocation14 + $0x318] sm:$0xff] %v8645_v45 }
0x32f4   :  { %v8200_v46 = vpop.f32.mrf.mxu1  ;;  %v8649_v48 = vpop.f32.mrf.mxu0 }
0x32f5   :  { %9046 = vst [vmem:[#allocation14 + $0x320] sm:$0xff] %v8200_v46  ;;  %9048 = vst [vmem:[#allocation14 + $0x330] sm:$0xff] %v8649_v48 }
0x32f6   :  { %v8202_v31 = vpop.f32.mrf.mxu1  ;;  %v8651_v3 = vpop.f32.mrf.mxu0 }
0x32f7   :  { %9047 = vst [vmem:[#allocation14 + $0x328] sm:$0xff] %v8202_v31  ;;  %9049 = vst [vmem:[#allocation14 + $0x338] sm:$0xff] %v8651_v3 }
0x32f8   :  { %v8206_v63 = vpop.f32.mrf.mxu1  ;;  %v8655_v50 = vpop.f32.mrf.mxu0 }
0x32f9   :  { %9050 = vst [vmem:[#allocation14 + $0x340] sm:$0xff] %v8206_v63  ;;  %9052 = vst [vmem:[#allocation14 + $0x350] sm:$0xff] %v8655_v50 }
0x32fa   :  { %v8208_v24 = vpop.f32.mrf.mxu1  ;;  %v8657_v25 = vpop.f32.mrf.mxu0 }
0x32fb   :  { %9051 = vst [vmem:[#allocation14 + $0x348] sm:$0xff] %v8208_v24  ;;  %9053 = vst [vmem:[#allocation14 + $0x358] sm:$0xff] %v8657_v25 }
0x32fc   :  { %v8212_v26 = vpop.f32.mrf.mxu1  ;;  %v8661_v27 = vpop.f32.mrf.mxu0 }
0x32fd   :  { %9054 = vst [vmem:[#allocation14 + $0x360] sm:$0xff] %v8212_v26  ;;  %9056 = vst [vmem:[#allocation14 + $0x370] sm:$0xff] %v8661_v27 }
0x32fe   :  { %v8214_v28 = vpop.f32.mrf.mxu1  ;;  %v8663_v62 = vpop.f32.mrf.mxu0 }
0x32ff   :  { %9055 = vst [vmem:[#allocation14 + $0x368] sm:$0xff] %v8214_v28  ;;  %9057 = vst [vmem:[#allocation14 + $0x378] sm:$0xff] %v8663_v62 }
0x3300   :  { %v8218_v20 = vpop.f32.mrf.mxu1  ;;  %v8667_v51 = vpop.f32.mrf.mxu0 }
0x3301   :  { %9058 = vst [vmem:[#allocation14 + $0x380] sm:$0xff] %v8218_v20  ;;  %9060 = vst [vmem:[#allocation14 + $0x390] sm:$0xff] %v8667_v51 }
0x3302   :  { %v8220_v17 = vpop.f32.mrf.mxu1  ;;  %v8669_v61 = vpop.f32.mrf.mxu0 }
0x3303   :  { %9059 = vst [vmem:[#allocation14 + $0x388] sm:$0xff] %v8220_v17  ;;  %9061 = vst [vmem:[#allocation14 + $0x398] sm:$0xff] %v8669_v61 }
0x3304   :  { %v8224_v52 = vpop.f32.mrf.mxu1  ;;  %v8673_v7 = vpop.f32.mrf.mxu0 }
0x3305   :  { %9062 = vst [vmem:[#allocation14 + $0x3a0] sm:$0xff] %v8224_v52  ;;  %9064 = vst [vmem:[#allocation14 + $0x3b0] sm:$0xff] %v8673_v7 }
0x3306   :  { %v8226_v9 = vpop.f32.mrf.mxu1  ;;  %v8675_v19 = vpop.f32.mrf.mxu0 }
0x3307   :  { %9063 = vst [vmem:[#allocation14 + $0x3a8] sm:$0xff] %v8226_v9  ;;  %9065 = vst [vmem:[#allocation14 + $0x3b8] sm:$0xff] %v8675_v19 }
0x3308   :  { %v8230_v2 = vpop.f32.mrf.mxu1  ;;  %v8679_v12 = vpop.f32.mrf.mxu0 }
0x3309   :  { %9066 = vst [vmem:[#allocation14 + $0x3c0] sm:$0xff] %v8230_v2  ;;  %9068 = vst [vmem:[#allocation14 + $0x3d0] sm:$0xff] %v8679_v12 }
0x330a   :  { %v8232_v13 = vpop.f32.mrf.mxu1  ;;  %v8681_v14 = vpop.f32.mrf.mxu0 }
0x330b   :  { %9067 = vst [vmem:[#allocation14 + $0x3c8] sm:$0xff] %v8232_v13  ;;  %9069 = vst [vmem:[#allocation14 + $0x3d8] sm:$0xff] %v8681_v14 }
0x330c   :  { %v8236_v49 = vpop.f32.mrf.mxu1  ;;  %v8685_v30 = vpop.f32.mrf.mxu0 }
0x330d   :  { %9070 = vst [vmem:[#allocation14 + $0x3e0] sm:$0xff] %v8236_v49  ;;  %9072 = vst [vmem:[#allocation14 + $0x3f0] sm:$0xff] %v8685_v30 }
0x330e   :  { %v8238_v18 = vpop.f32.mrf.mxu1  ;;  %v8687_v33 = vpop.f32.mrf.mxu0 }
0x330f   :  { %9071 = vst [vmem:[#allocation14 + $0x3e8] sm:$0xff] %v8238_v18  ;;  %9073 = vst [vmem:[#allocation14 + $0x3f8] sm:$0xff] %v8687_v33 }
0x3310   :  { %v8242_v34 = vpop.f32.mrf.mxu1  ;;  %v8691_v0 = vpop.f32.mrf.mxu0 }
0x3311   :  { %11367 = shalt.err (!%p11364_p1)
}
0x3312   :  { %9223 = dma.vmem_to_hbm [thread:$0]  %s9218_s9, 8192, %s13182_s7, [#allocation13], %s11428_s10, %s11428_s10, %s11429_s11   ;;  %9074 = vst [vmem:[#allocation14 + $0x400] sm:$0xff] %v8242_v34  ;;  %9076 = vst [vmem:[#allocation14 + $0x410] sm:$0xff] %v8691_v0  ;;  %v8244_v35 = vpop.f32.mrf.mxu1  ;;  %v8693_v36 = vpop.f32.mrf.mxu0 }
0x3313   :  { %s11376_s17 = scalar_lea.vmem %s9209_s13, 32  ;;  %p11381_p3 = scmp.lt.s32.totalorder %s9209_s13, %s9209_s13 }
0x3314   :  { %p11377_p2 = scmp.ne.s32.totalorder %s9209_s13, %s11376_s17  ;;  %p11382_p4 = scmp.lt.s32.totalorder %s11376_s17, %s11376_s17 }
0x3316   :  { %p11383_p5 = por %p11382_p4, %p11381_p3 }
0x3318   :  { %p11384_p6 = pnand %p11383_p5, %p11377_p2 }
0x331a   :  { %11387 = shalt.err (!%p11384_p6)
}
0x331b   :  { %9211 = dma.vmem_to_hbm [thread:$0]  %s9209_s13, 32, %s13181_s6, [#allocation4]   ;;  %9075 = vst [vmem:[#allocation14 + $0x408] sm:$0xff] %v8244_v35  ;;  %9077 = vst [vmem:[#allocation14 + $0x418] sm:$0xff] %v8693_v36  ;;  %v8248_v39 = vpop.f32.mrf.mxu1  ;;  %v8697_v41 = vpop.f32.mrf.mxu0 }
0x331c   :  { %9078 = vst [vmem:[#allocation14 + $0x420] sm:$0xff] %v8248_v39  ;;  %9080 = vst [vmem:[#allocation14 + $0x430] sm:$0xff] %v8697_v41  ;;  %s11442_s6 = smov [#allocation14]  }
0x331d   :  { %v8250_v47 = vpop.f32.mrf.mxu1  ;;  %v8699_v15 = vpop.f32.mrf.mxu0  ;;  %s9229_s7 = sshll.u32 %s11442_s6, 4  ;;  %s9230_s7 = int_to_ptr.vmem [resolvable:$true] %s9229_s7 }
0x331e   :  { %9079 = vst [vmem:[#allocation14 + $0x428] sm:$0xff] %v8250_v47  ;;  %9081 = vst [vmem:[#allocation14 + $0x438] sm:$0xff] %v8699_v15  ;;  %s11396_s10 = scalar_lea.vmem %s9230_s7, 32768  ;;  %p11401_p8 = scmp.lt.s32.totalorder %s9230_s7, %s9230_s7 }
0x331f   :  { %v8254_v53 = vpop.f32.mrf.mxu1  ;;  %v8703_v54 = vpop.f32.mrf.mxu0  ;;  %p11397_p7 = scmp.ne.s32.totalorder %s9230_s7, %s11396_s10  ;;  %p11402_p9 = scmp.lt.s32.totalorder %s11396_s10, %s11396_s10 }
0x3320   :  { %9082 = vst [vmem:[#allocation14 + $0x440] sm:$0xff] %v8254_v53  ;;  %9084 = vst [vmem:[#allocation14 + $0x450] sm:$0xff] %v8703_v54 }
0x3321   :  { %v8256_v55 = vpop.f32.mrf.mxu1  ;;  %v8705_v6 = vpop.f32.mrf.mxu0  ;;  %p11403_p10 = por %p11402_p9, %p11401_p8 }
0x3322   :  { %9083 = vst [vmem:[#allocation14 + $0x448] sm:$0xff] %v8256_v55  ;;  %9085 = vst [vmem:[#allocation14 + $0x458] sm:$0xff] %v8705_v6 }
0x3323   :  { %v8260_v56 = vpop.f32.mrf.mxu1  ;;  %v8709_v57 = vpop.f32.mrf.mxu0  ;;  %p11404_p11 = pnand %p11403_p10, %p11397_p7 }
0x3324   :  { %9086 = vst [vmem:[#allocation14 + $0x460] sm:$0xff] %v8260_v56  ;;  %9088 = vst [vmem:[#allocation14 + $0x470] sm:$0xff] %v8709_v57 }
0x3325   :  { %v8262_v58 = vpop.f32.mrf.mxu1  ;;  %v8711_v23 = vpop.f32.mrf.mxu0 }
0x3326   :  { %9087 = vst [vmem:[#allocation14 + $0x468] sm:$0xff] %v8262_v58  ;;  %9089 = vst [vmem:[#allocation14 + $0x478] sm:$0xff] %v8711_v23 }
0x3327   :  { %v8266_v21 = vpop.f32.mrf.mxu1  ;;  %v8715_v29 = vpop.f32.mrf.mxu0 }
0x3328   :  { %9090 = vst [vmem:[#allocation14 + $0x480] sm:$0xff] %v8266_v21  ;;  %9092 = vst [vmem:[#allocation14 + $0x490] sm:$0xff] %v8715_v29 }
0x3329   :  { %v8268_v22 = vpop.f32.mrf.mxu1  ;;  %v8717_v32 = vpop.f32.mrf.mxu0 }
0x332a   :  { %9091 = vst [vmem:[#allocation14 + $0x488] sm:$0xff] %v8268_v22  ;;  %9093 = vst [vmem:[#allocation14 + $0x498] sm:$0xff] %v8717_v32 }
0x332b   :  { %v8272_v59 = vpop.f32.mrf.mxu1  ;;  %v8721_v60 = vpop.f32.mrf.mxu0 }
0x332c   :  { %9094 = vst [vmem:[#allocation14 + $0x4a0] sm:$0xff] %v8272_v59  ;;  %9096 = vst [vmem:[#allocation14 + $0x4b0] sm:$0xff] %v8721_v60 }
0x332d   :  { %v8274_v4 = vpop.f32.mrf.mxu1  ;;  %v8723_v5 = vpop.f32.mrf.mxu0 }
0x332e   :  { %9095 = vst [vmem:[#allocation14 + $0x4a8] sm:$0xff] %v8274_v4  ;;  %9097 = vst [vmem:[#allocation14 + $0x4b8] sm:$0xff] %v8723_v5 }
0x332f   :  { %v8278_v8 = vpop.f32.mrf.mxu1  ;;  %v8727_v1 = vpop.f32.mrf.mxu0 }
0x3330   :  { %9098 = vst [vmem:[#allocation14 + $0x4c0] sm:$0xff] %v8278_v8  ;;  %9100 = vst [vmem:[#allocation14 + $0x4d0] sm:$0xff] %v8727_v1 }
0x3331   :  { %v8280_v10 = vpop.f32.mrf.mxu1  ;;  %v8729_v16 = vpop.f32.mrf.mxu0 }
0x3332   :  { %9099 = vst [vmem:[#allocation14 + $0x4c8] sm:$0xff] %v8280_v10  ;;  %9101 = vst [vmem:[#allocation14 + $0x4d8] sm:$0xff] %v8729_v16 }
0x3333   :  { %v8284_v11 = vpop.f32.mrf.mxu1  ;;  %v8733_v37 = vpop.f32.mrf.mxu0 }
0x3334   :  { %9102 = vst [vmem:[#allocation14 + $0x4e0] sm:$0xff] %v8284_v11  ;;  %9104 = vst [vmem:[#allocation14 + $0x4f0] sm:$0xff] %v8733_v37 }
0x3335   :  { %v8286_v38 = vpop.f32.mrf.mxu1  ;;  %v8735_v40 = vpop.f32.mrf.mxu0 }
0x3336   :  { %9103 = vst [vmem:[#allocation14 + $0x4e8] sm:$0xff] %v8286_v38  ;;  %9105 = vst [vmem:[#allocation14 + $0x4f8] sm:$0xff] %v8735_v40 }
0x3337   :  { %v8290_v42 = vpop.f32.mrf.mxu1  ;;  %v8739_v43 = vpop.f32.mrf.mxu0 }
0x3338   :  { %9106 = vst [vmem:[#allocation14 + $0x500] sm:$0xff] %v8290_v42  ;;  %9108 = vst [vmem:[#allocation14 + $0x510] sm:$0xff] %v8739_v43 }
0x3339   :  { %v8292_v44 = vpop.f32.mrf.mxu1  ;;  %v8741_v45 = vpop.f32.mrf.mxu0 }
0x333a   :  { %9107 = vst [vmem:[#allocation14 + $0x508] sm:$0xff] %v8292_v44  ;;  %9109 = vst [vmem:[#allocation14 + $0x518] sm:$0xff] %v8741_v45 }
0x333b   :  { %v8296_v46 = vpop.f32.mrf.mxu1  ;;  %v8745_v48 = vpop.f32.mrf.mxu0 }
0x333c   :  { %9110 = vst [vmem:[#allocation14 + $0x520] sm:$0xff] %v8296_v46  ;;  %9112 = vst [vmem:[#allocation14 + $0x530] sm:$0xff] %v8745_v48 }
0x333d   :  { %v8298_v31 = vpop.f32.mrf.mxu1  ;;  %v8747_v3 = vpop.f32.mrf.mxu0 }
0x333e   :  { %9111 = vst [vmem:[#allocation14 + $0x528] sm:$0xff] %v8298_v31  ;;  %9113 = vst [vmem:[#allocation14 + $0x538] sm:$0xff] %v8747_v3 }
0x333f   :  { %v8302_v63 = vpop.f32.mrf.mxu1  ;;  %v8751_v50 = vpop.f32.mrf.mxu0 }
0x3340   :  { %9114 = vst [vmem:[#allocation14 + $0x540] sm:$0xff] %v8302_v63  ;;  %9116 = vst [vmem:[#allocation14 + $0x550] sm:$0xff] %v8751_v50 }
0x3341   :  { %v8304_v24 = vpop.f32.mrf.mxu1  ;;  %v8753_v25 = vpop.f32.mrf.mxu0 }
0x3342   :  { %9115 = vst [vmem:[#allocation14 + $0x548] sm:$0xff] %v8304_v24  ;;  %9117 = vst [vmem:[#allocation14 + $0x558] sm:$0xff] %v8753_v25 }
0x3343   :  { %v8308_v26 = vpop.f32.mrf.mxu1  ;;  %v8757_v27 = vpop.f32.mrf.mxu0 }
0x3344   :  { %9118 = vst [vmem:[#allocation14 + $0x560] sm:$0xff] %v8308_v26  ;;  %9120 = vst [vmem:[#allocation14 + $0x570] sm:$0xff] %v8757_v27 }
0x3345   :  { %v8310_v28 = vpop.f32.mrf.mxu1  ;;  %v8759_v62 = vpop.f32.mrf.mxu0 }
0x3346   :  { %9119 = vst [vmem:[#allocation14 + $0x568] sm:$0xff] %v8310_v28  ;;  %9121 = vst [vmem:[#allocation14 + $0x578] sm:$0xff] %v8759_v62 }
0x3347   :  { %v8314_v20 = vpop.f32.mrf.mxu1  ;;  %v8763_v51 = vpop.f32.mrf.mxu0 }
0x3348   :  { %9122 = vst [vmem:[#allocation14 + $0x580] sm:$0xff] %v8314_v20  ;;  %9124 = vst [vmem:[#allocation14 + $0x590] sm:$0xff] %v8763_v51 }
0x3349   :  { %v8316_v17 = vpop.f32.mrf.mxu1  ;;  %v8765_v61 = vpop.f32.mrf.mxu0 }
0x334a   :  { %9123 = vst [vmem:[#allocation14 + $0x588] sm:$0xff] %v8316_v17  ;;  %9125 = vst [vmem:[#allocation14 + $0x598] sm:$0xff] %v8765_v61 }
0x334b   :  { %v8320_v52 = vpop.f32.mrf.mxu1  ;;  %v8769_v7 = vpop.f32.mrf.mxu0 }
0x334c   :  { %9126 = vst [vmem:[#allocation14 + $0x5a0] sm:$0xff] %v8320_v52  ;;  %9128 = vst [vmem:[#allocation14 + $0x5b0] sm:$0xff] %v8769_v7 }
0x334d   :  { %v8322_v9 = vpop.f32.mrf.mxu1  ;;  %v8771_v19 = vpop.f32.mrf.mxu0 }
0x334e   :  { %9127 = vst [vmem:[#allocation14 + $0x5a8] sm:$0xff] %v8322_v9  ;;  %9129 = vst [vmem:[#allocation14 + $0x5b8] sm:$0xff] %v8771_v19 }
0x334f   :  { %v8326_v2 = vpop.f32.mrf.mxu1  ;;  %v8775_v12 = vpop.f32.mrf.mxu0 }
0x3350   :  { %9130 = vst [vmem:[#allocation14 + $0x5c0] sm:$0xff] %v8326_v2  ;;  %9132 = vst [vmem:[#allocation14 + $0x5d0] sm:$0xff] %v8775_v12 }
0x3351   :  { %v8328_v13 = vpop.f32.mrf.mxu1  ;;  %v8777_v14 = vpop.f32.mrf.mxu0 }
0x3352   :  { %9131 = vst [vmem:[#allocation14 + $0x5c8] sm:$0xff] %v8328_v13  ;;  %9133 = vst [vmem:[#allocation14 + $0x5d8] sm:$0xff] %v8777_v14 }
0x3353   :  { %v8332_v49 = vpop.f32.mrf.mxu1  ;;  %v8781_v30 = vpop.f32.mrf.mxu0 }
0x3354   :  { %9134 = vst [vmem:[#allocation14 + $0x5e0] sm:$0xff] %v8332_v49  ;;  %9136 = vst [vmem:[#allocation14 + $0x5f0] sm:$0xff] %v8781_v30 }
0x3355   :  { %v8334_v18 = vpop.f32.mrf.mxu1  ;;  %v8783_v33 = vpop.f32.mrf.mxu0 }
0x3356   :  { %9135 = vst [vmem:[#allocation14 + $0x5e8] sm:$0xff] %v8334_v18  ;;  %9137 = vst [vmem:[#allocation14 + $0x5f8] sm:$0xff] %v8783_v33 }
0x3357   :  { %v8338_v34 = vpop.f32.mrf.mxu1  ;;  %v8787_v0 = vpop.f32.mrf.mxu0 }
0x3358   :  { %9138 = vst [vmem:[#allocation14 + $0x600] sm:$0xff] %v8338_v34  ;;  %9140 = vst [vmem:[#allocation14 + $0x610] sm:$0xff] %v8787_v0 }
0x3359   :  { %v8340_v35 = vpop.f32.mrf.mxu1  ;;  %v8789_v36 = vpop.f32.mrf.mxu0 }
0x335a   :  { %9139 = vst [vmem:[#allocation14 + $0x608] sm:$0xff] %v8340_v35  ;;  %9141 = vst [vmem:[#allocation14 + $0x618] sm:$0xff] %v8789_v36 }
0x335b   :  { %v8344_v39 = vpop.f32.mrf.mxu1  ;;  %v8793_v41 = vpop.f32.mrf.mxu0 }
0x335c   :  { %9142 = vst [vmem:[#allocation14 + $0x620] sm:$0xff] %v8344_v39  ;;  %9144 = vst [vmem:[#allocation14 + $0x630] sm:$0xff] %v8793_v41 }
0x335d   :  { %v8346_v47 = vpop.f32.mrf.mxu1  ;;  %v8795_v15 = vpop.f32.mrf.mxu0 }
0x335e   :  { %9143 = vst [vmem:[#allocation14 + $0x628] sm:$0xff] %v8346_v47  ;;  %9145 = vst [vmem:[#allocation14 + $0x638] sm:$0xff] %v8795_v15 }
0x335f   :  { %v8350_v53 = vpop.f32.mrf.mxu1  ;;  %v8799_v54 = vpop.f32.mrf.mxu0 }
0x3360   :  { %9146 = vst [vmem:[#allocation14 + $0x640] sm:$0xff] %v8350_v53  ;;  %9148 = vst [vmem:[#allocation14 + $0x650] sm:$0xff] %v8799_v54 }
0x3361   :  { %v8352_v55 = vpop.f32.mrf.mxu1  ;;  %v8801_v6 = vpop.f32.mrf.mxu0 }
0x3362   :  { %9147 = vst [vmem:[#allocation14 + $0x648] sm:$0xff] %v8352_v55  ;;  %9149 = vst [vmem:[#allocation14 + $0x658] sm:$0xff] %v8801_v6 }
0x3363   :  { %v8356_v56 = vpop.f32.mrf.mxu1  ;;  %v8805_v57 = vpop.f32.mrf.mxu0 }
0x3364   :  { %9150 = vst [vmem:[#allocation14 + $0x660] sm:$0xff] %v8356_v56  ;;  %9152 = vst [vmem:[#allocation14 + $0x670] sm:$0xff] %v8805_v57 }
0x3365   :  { %v8358_v58 = vpop.f32.mrf.mxu1  ;;  %v8807_v23 = vpop.f32.mrf.mxu0 }
0x3366   :  { %9151 = vst [vmem:[#allocation14 + $0x668] sm:$0xff] %v8358_v58  ;;  %9153 = vst [vmem:[#allocation14 + $0x678] sm:$0xff] %v8807_v23 }
0x3367   :  { %v8362_v21 = vpop.f32.mrf.mxu1  ;;  %v8811_v29 = vpop.f32.mrf.mxu0 }
0x3368   :  { %9154 = vst [vmem:[#allocation14 + $0x680] sm:$0xff] %v8362_v21  ;;  %9156 = vst [vmem:[#allocation14 + $0x690] sm:$0xff] %v8811_v29 }
0x3369   :  { %v8364_v22 = vpop.f32.mrf.mxu1  ;;  %v8813_v32 = vpop.f32.mrf.mxu0 }
0x336a   :  { %9155 = vst [vmem:[#allocation14 + $0x688] sm:$0xff] %v8364_v22  ;;  %9157 = vst [vmem:[#allocation14 + $0x698] sm:$0xff] %v8813_v32 }
0x336b   :  { %v8368_v59 = vpop.f32.mrf.mxu1  ;;  %v8817_v60 = vpop.f32.mrf.mxu0 }
0x336c   :  { %9158 = vst [vmem:[#allocation14 + $0x6a0] sm:$0xff] %v8368_v59  ;;  %9160 = vst [vmem:[#allocation14 + $0x6b0] sm:$0xff] %v8817_v60 }
0x336d   :  { %v8370_v4 = vpop.f32.mrf.mxu1  ;;  %v8819_v5 = vpop.f32.mrf.mxu0 }
0x336e   :  { %9159 = vst [vmem:[#allocation14 + $0x6a8] sm:$0xff] %v8370_v4  ;;  %9161 = vst [vmem:[#allocation14 + $0x6b8] sm:$0xff] %v8819_v5 }
0x336f   :  { %v8374_v8 = vpop.f32.mrf.mxu1  ;;  %v8823_v1 = vpop.f32.mrf.mxu0 }
0x3370   :  { %9162 = vst [vmem:[#allocation14 + $0x6c0] sm:$0xff] %v8374_v8  ;;  %9164 = vst [vmem:[#allocation14 + $0x6d0] sm:$0xff] %v8823_v1 }
0x3371   :  { %v8376_v10 = vpop.f32.mrf.mxu1  ;;  %v8825_v16 = vpop.f32.mrf.mxu0 }
0x3372   :  { %9163 = vst [vmem:[#allocation14 + $0x6c8] sm:$0xff] %v8376_v10  ;;  %9165 = vst [vmem:[#allocation14 + $0x6d8] sm:$0xff] %v8825_v16 }
0x3373   :  { %v8380_v11 = vpop.f32.mrf.mxu1  ;;  %v8829_v37 = vpop.f32.mrf.mxu0 }
0x3374   :  { %9166 = vst [vmem:[#allocation14 + $0x6e0] sm:$0xff] %v8380_v11  ;;  %9168 = vst [vmem:[#allocation14 + $0x6f0] sm:$0xff] %v8829_v37 }
0x3375   :  { %v8382_v38 = vpop.f32.mrf.mxu1  ;;  %v8831_v40 = vpop.f32.mrf.mxu0 }
0x3376   :  { %9167 = vst [vmem:[#allocation14 + $0x6e8] sm:$0xff] %v8382_v38  ;;  %9169 = vst [vmem:[#allocation14 + $0x6f8] sm:$0xff] %v8831_v40 }
0x3377   :  { %v8386_v42 = vpop.f32.mrf.mxu1  ;;  %v8835_v43 = vpop.f32.mrf.mxu0 }
0x3378   :  { %9170 = vst [vmem:[#allocation14 + $0x700] sm:$0xff] %v8386_v42  ;;  %9172 = vst [vmem:[#allocation14 + $0x710] sm:$0xff] %v8835_v43 }
0x3379   :  { %v8388_v44 = vpop.f32.mrf.mxu1  ;;  %v8837_v45 = vpop.f32.mrf.mxu0 }
0x337a   :  { %9171 = vst [vmem:[#allocation14 + $0x708] sm:$0xff] %v8388_v44  ;;  %9173 = vst [vmem:[#allocation14 + $0x718] sm:$0xff] %v8837_v45 }
0x337b   :  { %v8392_v46 = vpop.f32.mrf.mxu1  ;;  %v8841_v48 = vpop.f32.mrf.mxu0 }
0x337c   :  { %9174 = vst [vmem:[#allocation14 + $0x720] sm:$0xff] %v8392_v46  ;;  %9176 = vst [vmem:[#allocation14 + $0x730] sm:$0xff] %v8841_v48 }
0x337d   :  { %v8394_v31 = vpop.f32.mrf.mxu1  ;;  %v8843_v3 = vpop.f32.mrf.mxu0 }
0x337e   :  { %9175 = vst [vmem:[#allocation14 + $0x728] sm:$0xff] %v8394_v31  ;;  %9177 = vst [vmem:[#allocation14 + $0x738] sm:$0xff] %v8843_v3 }
0x337f   :  { %v8398_v63 = vpop.f32.mrf.mxu1  ;;  %v8847_v50 = vpop.f32.mrf.mxu0 }
0x3380   :  { %9178 = vst [vmem:[#allocation14 + $0x740] sm:$0xff] %v8398_v63  ;;  %9180 = vst [vmem:[#allocation14 + $0x750] sm:$0xff] %v8847_v50 }
0x3381   :  { %v8400_v24 = vpop.f32.mrf.mxu1  ;;  %v8849_v25 = vpop.f32.mrf.mxu0 }
0x3382   :  { %9179 = vst [vmem:[#allocation14 + $0x748] sm:$0xff] %v8400_v24  ;;  %9181 = vst [vmem:[#allocation14 + $0x758] sm:$0xff] %v8849_v25 }
0x3383   :  { %v8404_v26 = vpop.f32.mrf.mxu1  ;;  %v8853_v27 = vpop.f32.mrf.mxu0 }
0x3384   :  { %9182 = vst [vmem:[#allocation14 + $0x760] sm:$0xff] %v8404_v26  ;;  %9184 = vst [vmem:[#allocation14 + $0x770] sm:$0xff] %v8853_v27 }
0x3385   :  { %v8406_v28 = vpop.f32.mrf.mxu1  ;;  %v8855_v62 = vpop.f32.mrf.mxu0 }
0x3386   :  { %9183 = vst [vmem:[#allocation14 + $0x768] sm:$0xff] %v8406_v28  ;;  %9185 = vst [vmem:[#allocation14 + $0x778] sm:$0xff] %v8855_v62 }
0x3387   :  { %v8410_v20 = vpop.f32.mrf.mxu1  ;;  %v8859_v51 = vpop.f32.mrf.mxu0 }
0x3388   :  { %9186 = vst [vmem:[#allocation14 + $0x780] sm:$0xff] %v8410_v20  ;;  %9188 = vst [vmem:[#allocation14 + $0x790] sm:$0xff] %v8859_v51 }
0x3389   :  { %v8412_v17 = vpop.f32.mrf.mxu1  ;;  %v8861_v61 = vpop.f32.mrf.mxu0 }
0x338a   :  { %9187 = vst [vmem:[#allocation14 + $0x788] sm:$0xff] %v8412_v17  ;;  %9189 = vst [vmem:[#allocation14 + $0x798] sm:$0xff] %v8861_v61 }
0x338b   :  { %v8416_v52 = vpop.f32.mrf.mxu1  ;;  %v8865_v7 = vpop.f32.mrf.mxu0 }
0x338c   :  { %9190 = vst [vmem:[#allocation14 + $0x7a0] sm:$0xff] %v8416_v52  ;;  %9192 = vst [vmem:[#allocation14 + $0x7b0] sm:$0xff] %v8865_v7 }
0x338d   :  { %v8418_v9 = vpop.f32.mrf.mxu1  ;;  %v8867_v19 = vpop.f32.mrf.mxu0 }
0x338e   :  { %9191 = vst [vmem:[#allocation14 + $0x7a8] sm:$0xff] %v8418_v9  ;;  %9193 = vst [vmem:[#allocation14 + $0x7b8] sm:$0xff] %v8867_v19 }
0x338f   :  { %v8422_v2 = vpop.f32.mrf.mxu1  ;;  %v8871_v12 = vpop.f32.mrf.mxu0 }
0x3390   :  { %9194 = vst [vmem:[#allocation14 + $0x7c0] sm:$0xff] %v8422_v2  ;;  %9196 = vst [vmem:[#allocation14 + $0x7d0] sm:$0xff] %v8871_v12 }
0x3391   :  { %v8424_v13 = vpop.f32.mrf.mxu1  ;;  %v8873_v14 = vpop.f32.mrf.mxu0 }
0x3392   :  { %9195 = vst [vmem:[#allocation14 + $0x7c8] sm:$0xff] %v8424_v13  ;;  %9197 = vst [vmem:[#allocation14 + $0x7d8] sm:$0xff] %v8873_v14 }
0x3393   :  { %v8428_v49 = vpop.f32.mrf.mxu1  ;;  %v8877_v30 = vpop.f32.mrf.mxu0 }
0x3394   :  { %9198 = vst [vmem:[#allocation14 + $0x7e0] sm:$0xff] %v8428_v49  ;;  %9200 = vst [vmem:[#allocation14 + $0x7f0] sm:$0xff] %v8877_v30 }
0x3395   :  { %v8430_v18 = vpop.f32.mrf.mxu1  ;;  %v8879_v33 = vpop.f32.mrf.mxu0 }
0x3396   :  { %9199 = vst [vmem:[#allocation14 + $0x7e8] sm:$0xff] %v8430_v18  ;;  %9201 = vst [vmem:[#allocation14 + $0x7f8] sm:$0xff] %v8879_v33 }
0x3397   :  { %11407 = shalt.err (!%p11404_p11)
}
0x3398   :  { %9235 = dma.vmem_to_hbm [thread:$0]  %s9230_s7, 32768, %s13183_s8, [#allocation13], %s11433_s0, %s11433_s0, %s11434_s28  }
0x3399   :  { %11422 = dma.done.wait [#allocation4], 32  }
0x339a   :  { %11423 = vsyncadd [#allocation4], 4294967264 }
0x339b   :  { %11424 = dma.done.wait [#allocation13], 40960  }
0x339c   :  { %11425 = vsyncadd [#allocation13], 4294926336 }
0x339d   :  { %9245 = vsyncpa [#allocation3], 1 }
0x339e   :  { %9246 = vsyncpa [#allocation6], 1 }
0x339f   :  { %9247 = vsyncpa [#allocation9], 1 }
0x33a0   :  { %9248 = vsyncpa [#allocation4], 1 }
0x33a1   :  { %9249 = vsyncpa [#allocation13], 1 }

</bundles_post_ra>
